<compile_context>
chip_gen: v5e
topology: v5e:2x2
jax: 0.10.0
libtpu: 0.0.40
codegen_flags: <defaults>
</compile_context>

<pallas_src>
import functools

import jax
import jax.numpy as jnp
from jax.experimental import pallas as pl
from jax.experimental.pallas import tpu as pltpu

_NEG_SLOPE = 0.01  # nn.LeakyReLU default negative slope
_BN_EPS = 1e-5


# ----------------------------------------------------------------------------
# Kernels
# ----------------------------------------------------------------------------
def _conv3x3_kernel(x_ref, w_ref, b_ref, o_ref, *, dilation, wp, out_h, neg_slope):
    """3x3 dilated conv (+ folded BN bias, optional LeakyReLU) for one batch image.

    x_ref: (1, Cin, Hp*Wp + 2*d)  zero-padded image, flattened, plus small tail pad
    w_ref: (9, Cout, Cin)         per-tap weight matrices (BN scale already folded)
    b_ref: (Cout, 1)              folded bias
    o_ref: (1, Cout, out_h*wp)    output in "padded-width" flat layout
    """
    cout = w_ref.shape[1]
    length = out_h * wp
    acc = jnp.zeros((cout, length), jnp.float32)
    tap = 0
    for ky in range(3):
        for kx in range(3):
            off = ky * dilation * wp + kx * dilation          # static python int
            win = x_ref[0, :, off:off + length]               # (Cin, length), lane-dense
            acc = acc + jnp.dot(w_ref[tap], win,
                                preferred_element_type=jnp.float32)
            tap += 1
    acc = acc + b_ref[...].astype(jnp.float32)
    if neg_slope is not None:
        acc = jnp.where(acc >= 0, acc, acc * neg_slope)
    o_ref[0] = acc.astype(o_ref.dtype)


def _reduce_shortcut_kernel(x1_ref, x2_ref, x3_ref, x_ref,
                            wr_ref, ws_ref, b_ref, o_ref, *, neg_slope):
    """Fused: 1x1 reduce over concat([x1,x2,x3]) + 1x1 shortcut(x) + bias + LeakyReLU.

    x1/x2/x3: (1, Co, HW), x: (1, Cin, HW)
    wr: (3, Co, Co)  reduce weight split per concat chunk
    ws: (Co, Cin)    shortcut weight
    b:  (Co, 1)      reduce_bias + shortcut_bias
    o:  (1, Co, HW)
    """
    acc = jnp.dot(wr_ref[0], x1_ref[0], preferred_element_type=jnp.float32)
    acc = acc + jnp.dot(wr_ref[1], x2_ref[0], preferred_element_type=jnp.float32)
    acc = acc + jnp.dot(wr_ref[2], x3_ref[0], preferred_element_type=jnp.float32)
    acc = acc + jnp.dot(ws_ref[...], x_ref[0], preferred_element_type=jnp.float32)
    acc = acc + b_ref[...].astype(jnp.float32)
    acc = jnp.where(acc >= 0, acc, acc * neg_slope)
    o_ref[0] = acc.astype(o_ref.dtype)


# ----------------------------------------------------------------------------
# Wrappers (layout plumbing + pallas_call)
# ----------------------------------------------------------------------------
def conv3x3_bn_act_pallas(x, w, b, gamma, beta, mean, var, dilation, *,
                          neg_slope=None, eps=_BN_EPS):
    """Conv2d(k=3, padding=1, dilation=d) + eval-mode BatchNorm (+ LeakyReLU)."""
    n, cin, h, wdt = x.shape
    cout = w.shape[0]

    # Fold BN into the conv weight/bias (tiny wrapper-side math).
    scale = gamma / jnp.sqrt(var + eps)
    w_f = w * scale[:, None, None, None]
    b_f = (b - mean) * scale + beta

    hp, wp = h + 2, wdt + 2                      # padding=1
    out_h, out_w = hp - 2 * dilation, wp - 2 * dilation
    length = out_h * wp                          # padded-width flat output length
    lx = hp * wp + 2 * dilation                  # tail pad so every tap slice is in-bounds

    x_flat = jnp.pad(x, ((0, 0), (0, 0), (1, 1), (1, 1))).reshape(n, cin, hp * wp)
    x_flat = jnp.pad(x_flat, ((0, 0), (0, 0), (0, 2 * dilation)))

    w_taps = jnp.transpose(w_f, (2, 3, 0, 1)).reshape(9, cout, cin)
    b2 = b_f.reshape(cout, 1)

    kern = functools.partial(_conv3x3_kernel, dilation=dilation, wp=wp,
                             out_h=out_h, neg_slope=neg_slope)

    # Whole image per grid step (maximal tile for these sizes); grid over batch only.
    out_flat = pl.pallas_call(
        kern,
        out_shape=jax.ShapeDtypeStruct((n, cout, length), x.dtype),
        grid_spec=pltpu.PrefetchScalarGridSpec(
            num_scalar_prefetch=0,
            grid=(n,),
            in_specs=[
                pl.BlockSpec((1, cin, lx), lambda i: (i, 0, 0)),
                pl.BlockSpec((9, cout, cin), lambda i: (0, 0, 0)),
                pl.BlockSpec((cout, 1), lambda i: (0, 0)),
            ],
            out_specs=pl.BlockSpec((1, cout, length), lambda i: (i, 0, 0)),
        ),
        compiler_params=pltpu.CompilerParams(dimension_semantics=("parallel",)),
    )(x_flat, w_taps, b2)

    # Drop the garbage columns [out_w, wp) of each output row.
    return out_flat.reshape(n, cout, out_h, wp)[:, :, :, :out_w]


def resblock_pallas(x, p, dilation, *, neg_slope=_NEG_SLOPE):
    """ResBlock.forward(x, connect=False, activate=False): conv-bn-lrelu, conv-bn, align pad."""
    h, wdt = x.shape[2], x.shape[3]
    y = conv3x3_bn_act_pallas(x, p["w1"], p["b1"], p["g1"], p["be1"], p["m1"], p["v1"],
                              dilation, neg_slope=neg_slope)
    y = conv3x3_bn_act_pallas(y, p["w2"], p["b2"], p["g2"], p["be2"], p["m2"], p["v2"],
                              dilation, neg_slope=None)
    # align_tensor_shape: zero-pad back to the 1x1-shortcut spatial shape (H, W).
    dh, dw = h - y.shape[2], wdt - y.shape[3]
    return jnp.pad(y, ((0, 0), (0, 0), (dh // 2, dh - dh // 2), (dw // 2, dw - dw // 2)))


def multiblock_pallas(x, params, *, neg_slope=_NEG_SLOPE):
    n, cin, h, wdt = x.shape
    co = params["reduce_w"].shape[0]
    hw = h * wdt

    x1 = resblock_pallas(x, params["block1"], 1, neg_slope=neg_slope)
    x2 = resblock_pallas(x, params["block2"], 2, neg_slope=neg_slope)
    x3 = resblock_pallas(x, params["block3"], 3, neg_slope=neg_slope)

    # Split the (Co, 3*Co) reduce weight per concat chunk -> no materialized concat.
    wr2d = params["reduce_w"].reshape(co, 3 * co)
    wr3 = jnp.stack([wr2d[:, 0:co], wr2d[:, co:2 * co], wr2d[:, 2 * co:3 * co]], axis=0)
    ws2d = params["shortcut_w"].reshape(co, cin)
    bias = (params["reduce_b"] + params["shortcut_b"]).reshape(co, 1)

    out_flat = pl.pallas_call(
        functools.partial(_reduce_shortcut_kernel, neg_slope=neg_slope),
        out_shape=jax.ShapeDtypeStruct((n, co, hw), x.dtype),
        grid_spec=pltpu.PrefetchScalarGridSpec(
            num_scalar_prefetch=0,
            grid=(n,),
            in_specs=[
                pl.BlockSpec((1, co, hw), lambda i: (i, 0, 0)),
                pl.BlockSpec((1, co, hw), lambda i: (i, 0, 0)),
                pl.BlockSpec((1, co, hw), lambda i: (i, 0, 0)),
                pl.BlockSpec((1, cin, hw), lambda i: (i, 0, 0)),
                pl.BlockSpec((3, co, co), lambda i: (0, 0, 0)),
                pl.BlockSpec((co, cin), lambda i: (0, 0)),
                pl.BlockSpec((co, 1), lambda i: (0, 0)),
            ],
            out_specs=pl.BlockSpec((1, co, hw), lambda i: (i, 0, 0)),
        ),
        compiler_params=pltpu.CompilerParams(dimension_semantics=("parallel",)),
    )(x1.reshape(n, co, hw), x2.reshape(n, co, hw), x3.reshape(n, co, hw),
      x.reshape(n, cin, hw), wr3, ws2d, bias)

    return out_flat.reshape(n, co, h, wdt)


# ----------------------------------------------------------------------------
# Parameter construction (deterministic, PyTorch-like init)
# ----------------------------------------------------------------------------
def _conv_init(key, cout, cin, k, dtype):
    kw, kb = jax.random.split(key)
    bound = 1.0 / float(cin * k * k) ** 0.5
    w = jax.random.uniform(kw, (cout, cin, k, k), dtype, -bound, bound)
    b = jax.random.uniform(kb, (cout,), dtype, -bound, bound)
    return w, b


def _bn_init(key, c, dtype):
    k1, k2, k3, k4 = jax.random.split(key, 4)
    gamma = jax.random.uniform(k1, (c,), dtype, 0.5, 1.5)
    beta = 0.1 * jax.random.normal(k2, (c,), dtype)
    mean = 0.1 * jax.random.normal(k3, (c,), dtype)
    var = jax.random.uniform(k4, (c,), dtype, 0.5, 1.5)
    return gamma, beta, mean, var


def make_multiblock_params(key, in_channels, out_channels, dtype=jnp.float32):
    ks = jax.random.split(key, 5)

    def resblock_params(k, cin, co):
        k1, k2, k3, k4 = jax.random.split(k, 4)
        w1, b1 = _conv_init(k1, co, cin, 3, dtype)
        g1, be1, m1, v1 = _bn_init(k2, co, dtype)
        w2, b2 = _conv_init(k3, co, co, 3, dtype)
        g2, be2, m2, v2 = _bn_init(k4, co, dtype)
        # Note: ResBlock.shortcut conv is unused when connect=False (only its
        # spatial shape matters), so its parameters are omitted.
        return dict(w1=w1, b1=b1, g1=g1, be1=be1, m1=m1, v1=v1,
                    w2=w2, b2=b2, g2=g2, be2=be2, m2=m2, v2=v2)

    params = {
        "block1": resblock_params(ks[0], in_channels, out_channels),
        "block2": resblock_params(ks[1], in_channels, out_channels),
        "block3": resblock_params(ks[2], in_channels, out_channels),
    }
    params["reduce_w"], params["reduce_b"] = _conv_init(ks[3], out_channels,
                                                        3 * out_channels, 1, dtype)
    params["shortcut_w"], params["shortcut_b"] = _conv_init(ks[4], out_channels,
                                                            in_channels, 1, dtype)
    return params


# ----------------------------------------------------------------------------
# Pure-JAX reference of the same forward (eval-mode BN)
# ----------------------------------------------------------------------------
def _leaky(x, ns=_NEG_SLOPE):
    return jnp.where(x >= 0, x, ns * x)


def _ref_conv3x3(x, w, b, d):
    y = jax.lax.conv_general_dilated(
        x, w, window_strides=(1, 1), padding=((1, 1), (1, 1)),
        rhs_dilation=(d, d), dimension_numbers=("NCHW", "OIHW", "NCHW"))
    return y + b[None, :, None, None]


def _ref_bn(x, g, be, m, v, eps=_BN_EPS):
    s = g / jnp.sqrt(v + eps)
    return x * s[None, :, None, None] + (be - m * s)[None, :, None, None]


def _ref_resblock(x, p, d):
    h, wdt = x.shape[2], x.shape[3]
    y = _leaky(_ref_bn(_ref_conv3x3(x, p["w1"], p["b1"], d),
                       p["g1"], p["be1"], p["m1"], p["v1"]))
    y = _ref_bn(_ref_conv3x3(y, p["w2"], p["b2"], d),
                p["g2"], p["be2"], p["m2"], p["v2"])
    dh, dw = h - y.shape[2], wdt - y.shape[3]
    return jnp.pad(y, ((0, 0), (0, 0), (dh // 2, dh - dh // 2), (dw // 2, dw - dw // 2)))


def multiblock_ref(x, params):
    co = params["reduce_w"].shape[0]
    cin = x.shape[1]
    x1 = _ref_resblock(x, params["block1"], 1)
    x2 = _ref_resblock(x, params["block2"], 2)
    x3 = _ref_resblock(x, params["block3"], 3)
    z = jnp.concatenate([x1, x2, x3], axis=1)
    red = jnp.einsum("oc,nchw->nohw", params["reduce_w"].reshape(co, 3 * co), z)
    red = red + params["reduce_b"][None, :, None, None]
    sc = jnp.einsum("oc,nchw->nohw", params["shortcut_w"].reshape(co, cin), x)
    sc = sc + params["shortcut_b"][None, :, None, None]
    return _leaky(red + sc)


# ----------------------------------------------------------------------------
if __name__ == "__main__":
    key = jax.random.PRNGKey(0)
    k_x, k_p = jax.random.split(key)

    N, Cin, H, W = 2, 4, 16, 16
    Cout = 8

    x = jax.random.normal(k_x, (N, Cin, H, W), dtype=jnp.float32)
    params = make_multiblock_params(k_p, Cin, Cout)

    out = jax.jit(multiblock_pallas)(x, params)
    out = jax.block_until_ready(out)

    ref = multiblock_ref(x, params)

    assert out.shape == (N, Cout, H, W), out.shape
    max_err = float(jnp.max(jnp.abs(out - ref)))
    assert jnp.allclose(out, ref, atol=1e-4, rtol=1e-4), f"max abs err = {max_err}"
    print("KERNEL_OK")
</pallas_src>

<mosaic_0001>
module attributes {stable_mosaic.version = 11 : i64} {
  func.func @_conv3x3_kernel(%arg0: i32, %arg1: memref<1x4x326xf32, #tpu.memory_space<vmem>>, %arg2: memref<9x8x4xf32, #tpu.memory_space<vmem>>, %arg3: memref<8x1xf32, #tpu.memory_space<vmem>>, %arg4: memref<1x8x288xf32, #tpu.memory_space<vmem>>) attributes {dimension_semantics = [#tpu.dimension_semantics<parallel>], iteration_bounds = array<i64: 2>, scalar_prefetch = 0 : i64, scratch_operands = 0 : i64, tpu.core_type = #tpu.core_type<tc>, window_params = [{transform_indices = @transform_0, window_bounds = array<i64: 1, 4, 326>}, {pipeline_mode = #tpu.pipeline_mode<synchronous>, transform_indices = @transform_1, window_bounds = array<i64: 9, 8, 4>}, {pipeline_mode = #tpu.pipeline_mode<synchronous>, transform_indices = @transform_2, window_bounds = array<i64: 8, 1>}, {transform_indices = @transform_3, window_bounds = array<i64: 1, 8, 288>}]} {
    %cst = arith.constant 0.000000e+00 : f32
    %0 = vector.broadcast %cst : f32 to vector<8x288xf32>
    %c0 = arith.constant 0 : index
    %c0_0 = arith.constant 0 : index
    %c0_1 = arith.constant 0 : index
    %1 = vector.load %arg1[%c0, %c0_0, %c0_1] : memref<1x4x326xf32, #tpu.memory_space<vmem>>, vector<1x4x288xf32>
    %2 = vector.shape_cast %1 : vector<1x4x288xf32> to vector<4x288xf32>
    %c0_2 = arith.constant 0 : index
    %c0_3 = arith.constant 0 : index
    %c0_4 = arith.constant 0 : index
    %3 = vector.load %arg2[%c0_2, %c0_3, %c0_4] : memref<9x8x4xf32, #tpu.memory_space<vmem>>, vector<1x8x4xf32>
    %4 = vector.shape_cast %3 : vector<1x8x4xf32> to vector<8x4xf32>
    %cst_5 = arith.constant dense<0.000000e+00> : vector<8x288xf32>
    %5 = tpu.matmul %4, %2, %cst_5 {dimension_numbers = #tpu.dot_dimension_numbers<[1], [0], [0], [1], [0, 0, 1, 1], [], []>} : vector<8x4xf32>, vector<4x288xf32>, vector<8x288xf32> -> vector<8x288xf32>
    %6 = arith.addf %0, %5 : vector<8x288xf32>
    %c0_6 = arith.constant 0 : index
    %c0_7 = arith.constant 0 : index
    %c1 = arith.constant 1 : index
    %7 = vector.load %arg1[%c0_6, %c0_7, %c1] : memref<1x4x326xf32, #tpu.memory_space<vmem>>, vector<1x4x288xf32>
    %8 = vector.shape_cast %7 : vector<1x4x288xf32> to vector<4x288xf32>
    %c1_8 = arith.constant 1 : index
    %c0_9 = arith.constant 0 : index
    %c0_10 = arith.constant 0 : index
    %9 = vector.load %arg2[%c1_8, %c0_9, %c0_10] : memref<9x8x4xf32, #tpu.memory_space<vmem>>, vector<1x8x4xf32>
    %10 = vector.shape_cast %9 : vector<1x8x4xf32> to vector<8x4xf32>
    %cst_11 = arith.constant dense<0.000000e+00> : vector<8x288xf32>
    %11 = tpu.matmul %10, %8, %cst_11 {dimension_numbers = #tpu.dot_dimension_numbers<[1], [0], [0], [1], [0, 0, 1, 1], [], []>} : vector<8x4xf32>, vector<4x288xf32>, vector<8x288xf32> -> vector<8x288xf32>
    %12 = arith.addf %6, %11 : vector<8x288xf32>
    %c0_12 = arith.constant 0 : index
    %c0_13 = arith.constant 0 : index
    %c2 = arith.constant 2 : index
    %13 = vector.load %arg1[%c0_12, %c0_13, %c2] : memref<1x4x326xf32, #tpu.memory_space<vmem>>, vector<1x4x288xf32>
    %14 = vector.shape_cast %13 : vector<1x4x288xf32> to vector<4x288xf32>
    %c2_14 = arith.constant 2 : index
    %c0_15 = arith.constant 0 : index
    %c0_16 = arith.constant 0 : index
    %15 = vector.load %arg2[%c2_14, %c0_15, %c0_16] : memref<9x8x4xf32, #tpu.memory_space<vmem>>, vector<1x8x4xf32>
    %16 = vector.shape_cast %15 : vector<1x8x4xf32> to vector<8x4xf32>
    %cst_17 = arith.constant dense<0.000000e+00> : vector<8x288xf32>
    %17 = tpu.matmul %16, %14, %cst_17 {dimension_numbers = #tpu.dot_dimension_numbers<[1], [0], [0], [1], [0, 0, 1, 1], [], []>} : vector<8x4xf32>, vector<4x288xf32>, vector<8x288xf32> -> vector<8x288xf32>
    %18 = arith.addf %12, %17 : vector<8x288xf32>
    %c0_18 = arith.constant 0 : index
    %c0_19 = arith.constant 0 : index
    %c18 = arith.constant 18 : index
    %19 = vector.load %arg1[%c0_18, %c0_19, %c18] : memref<1x4x326xf32, #tpu.memory_space<vmem>>, vector<1x4x288xf32>
    %20 = vector.shape_cast %19 : vector<1x4x288xf32> to vector<4x288xf32>
    %c3 = arith.constant 3 : index
    %c0_20 = arith.constant 0 : index
    %c0_21 = arith.constant 0 : index
    %21 = vector.load %arg2[%c3, %c0_20, %c0_21] : memref<9x8x4xf32, #tpu.memory_space<vmem>>, vector<1x8x4xf32>
    %22 = vector.shape_cast %21 : vector<1x8x4xf32> to vector<8x4xf32>
    %cst_22 = arith.constant dense<0.000000e+00> : vector<8x288xf32>
    %23 = tpu.matmul %22, %20, %cst_22 {dimension_numbers = #tpu.dot_dimension_numbers<[1], [0], [0], [1], [0, 0, 1, 1], [], []>} : vector<8x4xf32>, vector<4x288xf32>, vector<8x288xf32> -> vector<8x288xf32>
    %24 = arith.addf %18, %23 : vector<8x288xf32>
    %c0_23 = arith.constant 0 : index
    %c0_24 = arith.constant 0 : index
    %c19 = arith.constant 19 : index
    %25 = vector.load %arg1[%c0_23, %c0_24, %c19] : memref<1x4x326xf32, #tpu.memory_space<vmem>>, vector<1x4x288xf32>
    %26 = vector.shape_cast %25 : vector<1x4x288xf32> to vector<4x288xf32>
    %c4 = arith.constant 4 : index
    %c0_25 = arith.constant 0 : index
    %c0_26 = arith.constant 0 : index
    %27 = vector.load %arg2[%c4, %c0_25, %c0_26] : memref<9x8x4xf32, #tpu.memory_space<vmem>>, vector<1x8x4xf32>
    %28 = vector.shape_cast %27 : vector<1x8x4xf32> to vector<8x4xf32>
    %cst_27 = arith.constant dense<0.000000e+00> : vector<8x288xf32>
    %29 = tpu.matmul %28, %26, %cst_27 {dimension_numbers = #tpu.dot_dimension_numbers<[1], [0], [0], [1], [0, 0, 1, 1], [], []>} : vector<8x4xf32>, vector<4x288xf32>, vector<8x288xf32> -> vector<8x288xf32>
    %30 = arith.addf %24, %29 : vector<8x288xf32>
    %c0_28 = arith.constant 0 : index
    %c0_29 = arith.constant 0 : index
    %c20 = arith.constant 20 : index
    %31 = vector.load %arg1[%c0_28, %c0_29, %c20] : memref<1x4x326xf32, #tpu.memory_space<vmem>>, vector<1x4x288xf32>
    %32 = vector.shape_cast %31 : vector<1x4x288xf32> to vector<4x288xf32>
    %c5 = arith.constant 5 : index
    %c0_30 = arith.constant 0 : index
    %c0_31 = arith.constant 0 : index
    %33 = vector.load %arg2[%c5, %c0_30, %c0_31] : memref<9x8x4xf32, #tpu.memory_space<vmem>>, vector<1x8x4xf32>
    %34 = vector.shape_cast %33 : vector<1x8x4xf32> to vector<8x4xf32>
    %cst_32 = arith.constant dense<0.000000e+00> : vector<8x288xf32>
    %35 = tpu.matmul %34, %32, %cst_32 {dimension_numbers = #tpu.dot_dimension_numbers<[1], [0], [0], [1], [0, 0, 1, 1], [], []>} : vector<8x4xf32>, vector<4x288xf32>, vector<8x288xf32> -> vector<8x288xf32>
    %36 = arith.addf %30, %35 : vector<8x288xf32>
    %c0_33 = arith.constant 0 : index
    %c0_34 = arith.constant 0 : index
    %c36 = arith.constant 36 : index
    %37 = vector.load %arg1[%c0_33, %c0_34, %c36] : memref<1x4x326xf32, #tpu.memory_space<vmem>>, vector<1x4x288xf32>
    %38 = vector.shape_cast %37 : vector<1x4x288xf32> to vector<4x288xf32>
    %c6 = arith.constant 6 : index
    %c0_35 = arith.constant 0 : index
    %c0_36 = arith.constant 0 : index
    %39 = vector.load %arg2[%c6, %c0_35, %c0_36] : memref<9x8x4xf32, #tpu.memory_space<vmem>>, vector<1x8x4xf32>
    %40 = vector.shape_cast %39 : vector<1x8x4xf32> to vector<8x4xf32>
    %cst_37 = arith.constant dense<0.000000e+00> : vector<8x288xf32>
    %41 = tpu.matmul %40, %38, %cst_37 {dimension_numbers = #tpu.dot_dimension_numbers<[1], [0], [0], [1], [0, 0, 1, 1], [], []>} : vector<8x4xf32>, vector<4x288xf32>, vector<8x288xf32> -> vector<8x288xf32>
    %42 = arith.addf %36, %41 : vector<8x288xf32>
    %c0_38 = arith.constant 0 : index
    %c0_39 = arith.constant 0 : index
    %c37 = arith.constant 37 : index
    %43 = vector.load %arg1[%c0_38, %c0_39, %c37] : memref<1x4x326xf32, #tpu.memory_space<vmem>>, vector<1x4x288xf32>
    %44 = vector.shape_cast %43 : vector<1x4x288xf32> to vector<4x288xf32>
    %c7 = arith.constant 7 : index
    %c0_40 = arith.constant 0 : index
    %c0_41 = arith.constant 0 : index
    %45 = vector.load %arg2[%c7, %c0_40, %c0_41] : memref<9x8x4xf32, #tpu.memory_space<vmem>>, vector<1x8x4xf32>
    %46 = vector.shape_cast %45 : vector<1x8x4xf32> to vector<8x4xf32>
    %cst_42 = arith.constant dense<0.000000e+00> : vector<8x288xf32>
    %47 = tpu.matmul %46, %44, %cst_42 {dimension_numbers = #tpu.dot_dimension_numbers<[1], [0], [0], [1], [0, 0, 1, 1], [], []>} : vector<8x4xf32>, vector<4x288xf32>, vector<8x288xf32> -> vector<8x288xf32>
    %48 = arith.addf %42, %47 : vector<8x288xf32>
    %c0_43 = arith.constant 0 : index
    %c0_44 = arith.constant 0 : index
    %c38 = arith.constant 38 : index
    %49 = vector.load %arg1[%c0_43, %c0_44, %c38] : memref<1x4x326xf32, #tpu.memory_space<vmem>>, vector<1x4x288xf32>
    %50 = vector.shape_cast %49 : vector<1x4x288xf32> to vector<4x288xf32>
    %c8 = arith.constant 8 : index
    %c0_45 = arith.constant 0 : index
    %c0_46 = arith.constant 0 : index
    %51 = vector.load %arg2[%c8, %c0_45, %c0_46] : memref<9x8x4xf32, #tpu.memory_space<vmem>>, vector<1x8x4xf32>
    %52 = vector.shape_cast %51 : vector<1x8x4xf32> to vector<8x4xf32>
    %cst_47 = arith.constant dense<0.000000e+00> : vector<8x288xf32>
    %53 = tpu.matmul %52, %50, %cst_47 {dimension_numbers = #tpu.dot_dimension_numbers<[1], [0], [0], [1], [0, 0, 1, 1], [], []>} : vector<8x4xf32>, vector<4x288xf32>, vector<8x288xf32> -> vector<8x288xf32>
    %54 = arith.addf %48, %53 : vector<8x288xf32>
    %c0_48 = arith.constant 0 : index
    %c0_49 = arith.constant 0 : index
    %55 = vector.load %arg3[%c0_48, %c0_49] : memref<8x1xf32, #tpu.memory_space<vmem>>, vector<8x1xf32>
    %56 = vector.broadcast %55 : vector<8x1xf32> to vector<8x288xf32>
    %57 = arith.addf %54, %56 : vector<8x288xf32>
    %cst_50 = arith.constant 0.000000e+00 : f32
    %58 = vector.broadcast %cst_50 : f32 to vector<8x288xf32>
    %59 = arith.cmpf oge, %57, %58 : vector<8x288xf32>
    %cst_51 = arith.constant 0.00999999977 : f32
    %60 = vector.broadcast %cst_51 : f32 to vector<8x288xf32>
    %61 = arith.mulf %57, %60 : vector<8x288xf32>
    %62 = arith.select %59, %57, %61 : vector<8x288xi1>, vector<8x288xf32>
    %c0_52 = arith.constant 0 : index
    %c0_53 = arith.constant 0 : index
    %c0_54 = arith.constant 0 : index
    %63 = vector.load %arg4[%c0_52, %c0_53, %c0_54] : memref<1x8x288xf32, #tpu.memory_space<vmem>>, vector<1x8x288xf32>
    %64 = vector.shape_cast %63 : vector<1x8x288xf32> to vector<8x288xf32>
    %65 = vector.shape_cast %62 : vector<8x288xf32> to vector<1x8x288xf32>
    tpu.vector_store %arg4[%c0_52, %c0_53, %c0_54], %65 {strides = array<i32>} : memref<1x8x288xf32, #tpu.memory_space<vmem>>, vector<1x8x288xf32>,
    return
  }
  func.func @transform_0(%arg0: i32) -> (i32, i32, i32) {
    %c0_i32 = arith.constant 0 : i32
    %c0_i32_0 = arith.constant 0 : i32
    %c0_i32_1 = arith.constant 0 : i32
    return %arg0, %c0_i32, %c0_i32_0 : i32, i32, i32
  }
  func.func @transform_1(%arg0: i32) -> (i32, i32, i32) {
    %c0_i32 = arith.constant 0 : i32
    %c0_i32_0 = arith.constant 0 : i32
    %c0_i32_1 = arith.constant 0 : i32
    %c0_i32_2 = arith.constant 0 : i32
    return %c0_i32, %c0_i32_0, %c0_i32_1 : i32, i32, i32
  }
  func.func @transform_2(%arg0: i32) -> (i32, i32) {
    %c0_i32 = arith.constant 0 : i32
    %c0_i32_0 = arith.constant 0 : i32
    %c0_i32_1 = arith.constant 0 : i32
    return %c0_i32, %c0_i32_0 : i32, i32
  }
  func.func @transform_3(%arg0: i32) -> (i32, i32, i32) {
    %c0_i32 = arith.constant 0 : i32
    %c0_i32_0 = arith.constant 0 : i32
    %c0_i32_1 = arith.constant 0 : i32
    return %arg0, %c0_i32, %c0_i32_0 : i32, i32, i32
  }
}

module attributes {stable_mosaic.version = 11 : i64} {
  func.func @_conv3x3_kernel(%arg0: i32, %arg1: memref<1x8x326xf32, #tpu.memory_space<vmem>>, %arg2: memref<9x8x8xf32, #tpu.memory_space<vmem>>, %arg3: memref<8x1xf32, #tpu.memory_space<vmem>>, %arg4: memref<1x8x288xf32, #tpu.memory_space<vmem>>) attributes {dimension_semantics = [#tpu.dimension_semantics<parallel>], iteration_bounds = array<i64: 2>, scalar_prefetch = 0 : i64, scratch_operands = 0 : i64, tpu.core_type = #tpu.core_type<tc>, window_params = [{transform_indices = @transform_0, window_bounds = array<i64: 1, 8, 326>}, {pipeline_mode = #tpu.pipeline_mode<synchronous>, transform_indices = @transform_1, window_bounds = array<i64: 9, 8, 8>}, {pipeline_mode = #tpu.pipeline_mode<synchronous>, transform_indices = @transform_2, window_bounds = array<i64: 8, 1>}, {transform_indices = @transform_3, window_bounds = array<i64: 1, 8, 288>}]} {
    %cst = arith.constant 0.000000e+00 : f32
    %0 = vector.broadcast %cst : f32 to vector<8x288xf32>
    %c0 = arith.constant 0 : index
    %c0_0 = arith.constant 0 : index
    %c0_1 = arith.constant 0 : index
    %1 = vector.load %arg1[%c0, %c0_0, %c0_1] : memref<1x8x326xf32, #tpu.memory_space<vmem>>, vector<1x8x288xf32>
    %2 = vector.shape_cast %1 : vector<1x8x288xf32> to vector<8x288xf32>
    %c0_2 = arith.constant 0 : index
    %c0_3 = arith.constant 0 : index
    %c0_4 = arith.constant 0 : index
    %3 = vector.load %arg2[%c0_2, %c0_3, %c0_4] : memref<9x8x8xf32, #tpu.memory_space<vmem>>, vector<1x8x8xf32>
    %4 = vector.shape_cast %3 : vector<1x8x8xf32> to vector<8x8xf32>
    %cst_5 = arith.constant dense<0.000000e+00> : vector<8x288xf32>
    %5 = tpu.matmul %4, %2, %cst_5 {dimension_numbers = #tpu.dot_dimension_numbers<[1], [0], [0], [1], [0, 0, 1, 1], [], []>} : vector<8x8xf32>, vector<8x288xf32>, vector<8x288xf32> -> vector<8x288xf32>
    %6 = arith.addf %0, %5 : vector<8x288xf32>
    %c0_6 = arith.constant 0 : index
    %c0_7 = arith.constant 0 : index
    %c1 = arith.constant 1 : index
    %7 = vector.load %arg1[%c0_6, %c0_7, %c1] : memref<1x8x326xf32, #tpu.memory_space<vmem>>, vector<1x8x288xf32>
    %8 = vector.shape_cast %7 : vector<1x8x288xf32> to vector<8x288xf32>
    %c1_8 = arith.constant 1 : index
    %c0_9 = arith.constant 0 : index
    %c0_10 = arith.constant 0 : index
    %9 = vector.load %arg2[%c1_8, %c0_9, %c0_10] : memref<9x8x8xf32, #tpu.memory_space<vmem>>, vector<1x8x8xf32>
    %10 = vector.shape_cast %9 : vector<1x8x8xf32> to vector<8x8xf32>
    %cst_11 = arith.constant dense<0.000000e+00> : vector<8x288xf32>
    %11 = tpu.matmul %10, %8, %cst_11 {dimension_numbers = #tpu.dot_dimension_numbers<[1], [0], [0], [1], [0, 0, 1, 1], [], []>} : vector<8x8xf32>, vector<8x288xf32>, vector<8x288xf32> -> vector<8x288xf32>
    %12 = arith.addf %6, %11 : vector<8x288xf32>
    %c0_12 = arith.constant 0 : index
    %c0_13 = arith.constant 0 : index
    %c2 = arith.constant 2 : index
    %13 = vector.load %arg1[%c0_12, %c0_13, %c2] : memref<1x8x326xf32, #tpu.memory_space<vmem>>, vector<1x8x288xf32>
    %14 = vector.shape_cast %13 : vector<1x8x288xf32> to vector<8x288xf32>
    %c2_14 = arith.constant 2 : index
    %c0_15 = arith.constant 0 : index
    %c0_16 = arith.constant 0 : index
    %15 = vector.load %arg2[%c2_14, %c0_15, %c0_16] : memref<9x8x8xf32, #tpu.memory_space<vmem>>, vector<1x8x8xf32>
    %16 = vector.shape_cast %15 : vector<1x8x8xf32> to vector<8x8xf32>
    %cst_17 = arith.constant dense<0.000000e+00> : vector<8x288xf32>
    %17 = tpu.matmul %16, %14, %cst_17 {dimension_numbers = #tpu.dot_dimension_numbers<[1], [0], [0], [1], [0, 0, 1, 1], [], []>} : vector<8x8xf32>, vector<8x288xf32>, vector<8x288xf32> -> vector<8x288xf32>
    %18 = arith.addf %12, %17 : vector<8x288xf32>
    %c0_18 = arith.constant 0 : index
    %c0_19 = arith.constant 0 : index
    %c18 = arith.constant 18 : index
    %19 = vector.load %arg1[%c0_18, %c0_19, %c18] : memref<1x8x326xf32, #tpu.memory_space<vmem>>, vector<1x8x288xf32>
    %20 = vector.shape_cast %19 : vector<1x8x288xf32> to vector<8x288xf32>
    %c3 = arith.constant 3 : index
    %c0_20 = arith.constant 0 : index
    %c0_21 = arith.constant 0 : index
    %21 = vector.load %arg2[%c3, %c0_20, %c0_21] : memref<9x8x8xf32, #tpu.memory_space<vmem>>, vector<1x8x8xf32>
    %22 = vector.shape_cast %21 : vector<1x8x8xf32> to vector<8x8xf32>
    %cst_22 = arith.constant dense<0.000000e+00> : vector<8x288xf32>
    %23 = tpu.matmul %22, %20, %cst_22 {dimension_numbers = #tpu.dot_dimension_numbers<[1], [0], [0], [1], [0, 0, 1, 1], [], []>} : vector<8x8xf32>, vector<8x288xf32>, vector<8x288xf32> -> vector<8x288xf32>
    %24 = arith.addf %18, %23 : vector<8x288xf32>
    %c0_23 = arith.constant 0 : index
    %c0_24 = arith.constant 0 : index
    %c19 = arith.constant 19 : index
    %25 = vector.load %arg1[%c0_23, %c0_24, %c19] : memref<1x8x326xf32, #tpu.memory_space<vmem>>, vector<1x8x288xf32>
    %26 = vector.shape_cast %25 : vector<1x8x288xf32> to vector<8x288xf32>
    %c4 = arith.constant 4 : index
    %c0_25 = arith.constant 0 : index
    %c0_26 = arith.constant 0 : index
    %27 = vector.load %arg2[%c4, %c0_25, %c0_26] : memref<9x8x8xf32, #tpu.memory_space<vmem>>, vector<1x8x8xf32>
    %28 = vector.shape_cast %27 : vector<1x8x8xf32> to vector<8x8xf32>
    %cst_27 = arith.constant dense<0.000000e+00> : vector<8x288xf32>
    %29 = tpu.matmul %28, %26, %cst_27 {dimension_numbers = #tpu.dot_dimension_numbers<[1], [0], [0], [1], [0, 0, 1, 1], [], []>} : vector<8x8xf32>, vector<8x288xf32>, vector<8x288xf32> -> vector<8x288xf32>
    %30 = arith.addf %24, %29 : vector<8x288xf32>
    %c0_28 = arith.constant 0 : index
    %c0_29 = arith.constant 0 : index
    %c20 = arith.constant 20 : index
    %31 = vector.load %arg1[%c0_28, %c0_29, %c20] : memref<1x8x326xf32, #tpu.memory_space<vmem>>, vector<1x8x288xf32>
    %32 = vector.shape_cast %31 : vector<1x8x288xf32> to vector<8x288xf32>
    %c5 = arith.constant 5 : index
    %c0_30 = arith.constant 0 : index
    %c0_31 = arith.constant 0 : index
    %33 = vector.load %arg2[%c5, %c0_30, %c0_31] : memref<9x8x8xf32, #tpu.memory_space<vmem>>, vector<1x8x8xf32>
    %34 = vector.shape_cast %33 : vector<1x8x8xf32> to vector<8x8xf32>
    %cst_32 = arith.constant dense<0.000000e+00> : vector<8x288xf32>
    %35 = tpu.matmul %34, %32, %cst_32 {dimension_numbers = #tpu.dot_dimension_numbers<[1], [0], [0], [1], [0, 0, 1, 1], [], []>} : vector<8x8xf32>, vector<8x288xf32>, vector<8x288xf32> -> vector<8x288xf32>
    %36 = arith.addf %30, %35 : vector<8x288xf32>
    %c0_33 = arith.constant 0 : index
    %c0_34 = arith.constant 0 : index
    %c36 = arith.constant 36 : index
    %37 = vector.load %arg1[%c0_33, %c0_34, %c36] : memref<1x8x326xf32, #tpu.memory_space<vmem>>, vector<1x8x288xf32>
    %38 = vector.shape_cast %37 : vector<1x8x288xf32> to vector<8x288xf32>
    %c6 = arith.constant 6 : index
    %c0_35 = arith.constant 0 : index
    %c0_36 = arith.constant 0 : index
    %39 = vector.load %arg2[%c6, %c0_35, %c0_36] : memref<9x8x8xf32, #tpu.memory_space<vmem>>, vector<1x8x8xf32>
    %40 = vector.shape_cast %39 : vector<1x8x8xf32> to vector<8x8xf32>
    %cst_37 = arith.constant dense<0.000000e+00> : vector<8x288xf32>
    %41 = tpu.matmul %40, %38, %cst_37 {dimension_numbers = #tpu.dot_dimension_numbers<[1], [0], [0], [1], [0, 0, 1, 1], [], []>} : vector<8x8xf32>, vector<8x288xf32>, vector<8x288xf32> -> vector<8x288xf32>
    %42 = arith.addf %36, %41 : vector<8x288xf32>
    %c0_38 = arith.constant 0 : index
    %c0_39 = arith.constant 0 : index
    %c37 = arith.constant 37 : index
    %43 = vector.load %arg1[%c0_38, %c0_39, %c37] : memref<1x8x326xf32, #tpu.memory_space<vmem>>, vector<1x8x288xf32>
    %44 = vector.shape_cast %43 : vector<1x8x288xf32> to vector<8x288xf32>
    %c7 = arith.constant 7 : index
    %c0_40 = arith.constant 0 : index
    %c0_41 = arith.constant 0 : index
    %45 = vector.load %arg2[%c7, %c0_40, %c0_41] : memref<9x8x8xf32, #tpu.memory_space<vmem>>, vector<1x8x8xf32>
    %46 = vector.shape_cast %45 : vector<1x8x8xf32> to vector<8x8xf32>
    %cst_42 = arith.constant dense<0.000000e+00> : vector<8x288xf32>
    %47 = tpu.matmul %46, %44, %cst_42 {dimension_numbers = #tpu.dot_dimension_numbers<[1], [0], [0], [1], [0, 0, 1, 1], [], []>} : vector<8x8xf32>, vector<8x288xf32>, vector<8x288xf32> -> vector<8x288xf32>
    %48 = arith.addf %42, %47 : vector<8x288xf32>
    %c0_43 = arith.constant 0 : index
    %c0_44 = arith.constant 0 : index
    %c38 = arith.constant 38 : index
    %49 = vector.load %arg1[%c0_43, %c0_44, %c38] : memref<1x8x326xf32, #tpu.memory_space<vmem>>, vector<1x8x288xf32>
    %50 = vector.shape_cast %49 : vector<1x8x288xf32> to vector<8x288xf32>
    %c8 = arith.constant 8 : index
    %c0_45 = arith.constant 0 : index
    %c0_46 = arith.constant 0 : index
    %51 = vector.load %arg2[%c8, %c0_45, %c0_46] : memref<9x8x8xf32, #tpu.memory_space<vmem>>, vector<1x8x8xf32>
    %52 = vector.shape_cast %51 : vector<1x8x8xf32> to vector<8x8xf32>
    %cst_47 = arith.constant dense<0.000000e+00> : vector<8x288xf32>
    %53 = tpu.matmul %52, %50, %cst_47 {dimension_numbers = #tpu.dot_dimension_numbers<[1], [0], [0], [1], [0, 0, 1, 1], [], []>} : vector<8x8xf32>, vector<8x288xf32>, vector<8x288xf32> -> vector<8x288xf32>
    %54 = arith.addf %48, %53 : vector<8x288xf32>
    %c0_48 = arith.constant 0 : index
    %c0_49 = arith.constant 0 : index
    %55 = vector.load %arg3[%c0_48, %c0_49] : memref<8x1xf32, #tpu.memory_space<vmem>>, vector<8x1xf32>
    %56 = vector.broadcast %55 : vector<8x1xf32> to vector<8x288xf32>
    %57 = arith.addf %54, %56 : vector<8x288xf32>
    %c0_50 = arith.constant 0 : index
    %c0_51 = arith.constant 0 : index
    %c0_52 = arith.constant 0 : index
    %58 = vector.load %arg4[%c0_50, %c0_51, %c0_52] : memref<1x8x288xf32, #tpu.memory_space<vmem>>, vector<1x8x288xf32>
    %59 = vector.shape_cast %58 : vector<1x8x288xf32> to vector<8x288xf32>
    %60 = vector.shape_cast %57 : vector<8x288xf32> to vector<1x8x288xf32>
    tpu.vector_store %arg4[%c0_50, %c0_51, %c0_52], %60 {strides = array<i32>} : memref<1x8x288xf32, #tpu.memory_space<vmem>>, vector<1x8x288xf32>,
    return
  }
  func.func @transform_0(%arg0: i32) -> (i32, i32, i32) {
    %c0_i32 = arith.constant 0 : i32
    %c0_i32_0 = arith.constant 0 : i32
    %c0_i32_1 = arith.constant 0 : i32
    return %arg0, %c0_i32, %c0_i32_0 : i32, i32, i32
  }
  func.func @transform_1(%arg0: i32) -> (i32, i32, i32) {
    %c0_i32 = arith.constant 0 : i32
    %c0_i32_0 = arith.constant 0 : i32
    %c0_i32_1 = arith.constant 0 : i32
    %c0_i32_2 = arith.constant 0 : i32
    return %c0_i32, %c0_i32_0, %c0_i32_1 : i32, i32, i32
  }
  func.func @transform_2(%arg0: i32) -> (i32, i32) {
    %c0_i32 = arith.constant 0 : i32
    %c0_i32_0 = arith.constant 0 : i32
    %c0_i32_1 = arith.constant 0 : i32
    return %c0_i32, %c0_i32_0 : i32, i32
  }
  func.func @transform_3(%arg0: i32) -> (i32, i32, i32) {
    %c0_i32 = arith.constant 0 : i32
    %c0_i32_0 = arith.constant 0 : i32
    %c0_i32_1 = arith.constant 0 : i32
    return %arg0, %c0_i32, %c0_i32_0 : i32, i32, i32
  }
}

module attributes {stable_mosaic.version = 11 : i64} {
  func.func @_conv3x3_kernel(%arg0: i32, %arg1: memref<1x4x328xf32, #tpu.memory_space<vmem>>, %arg2: memref<9x8x4xf32, #tpu.memory_space<vmem>>, %arg3: memref<8x1xf32, #tpu.memory_space<vmem>>, %arg4: memref<1x8x252xf32, #tpu.memory_space<vmem>>) attributes {dimension_semantics = [#tpu.dimension_semantics<parallel>], iteration_bounds = array<i64: 2>, scalar_prefetch = 0 : i64, scratch_operands = 0 : i64, tpu.core_type = #tpu.core_type<tc>, window_params = [{transform_indices = @transform_0, window_bounds = array<i64: 1, 4, 328>}, {pipeline_mode = #tpu.pipeline_mode<synchronous>, transform_indices = @transform_1, window_bounds = array<i64: 9, 8, 4>}, {pipeline_mode = #tpu.pipeline_mode<synchronous>, transform_indices = @transform_2, window_bounds = array<i64: 8, 1>}, {transform_indices = @transform_3, window_bounds = array<i64: 1, 8, 252>}]} {
    %cst = arith.constant 0.000000e+00 : f32
    %0 = vector.broadcast %cst : f32 to vector<8x252xf32>
    %c0 = arith.constant 0 : index
    %c0_0 = arith.constant 0 : index
    %c0_1 = arith.constant 0 : index
    %1 = vector.load %arg1[%c0, %c0_0, %c0_1] : memref<1x4x328xf32, #tpu.memory_space<vmem>>, vector<1x4x252xf32>
    %2 = vector.shape_cast %1 : vector<1x4x252xf32> to vector<4x252xf32>
    %c0_2 = arith.constant 0 : index
    %c0_3 = arith.constant 0 : index
    %c0_4 = arith.constant 0 : index
    %3 = vector.load %arg2[%c0_2, %c0_3, %c0_4] : memref<9x8x4xf32, #tpu.memory_space<vmem>>, vector<1x8x4xf32>
    %4 = vector.shape_cast %3 : vector<1x8x4xf32> to vector<8x4xf32>
    %cst_5 = arith.constant dense<0.000000e+00> : vector<8x252xf32>
    %5 = tpu.matmul %4, %2, %cst_5 {dimension_numbers = #tpu.dot_dimension_numbers<[1], [0], [0], [1], [0, 0, 1, 1], [], []>} : vector<8x4xf32>, vector<4x252xf32>, vector<8x252xf32> -> vector<8x252xf32>
    %6 = arith.addf %0, %5 : vector<8x252xf32>
    %c0_6 = arith.constant 0 : index
    %c0_7 = arith.constant 0 : index
    %c2 = arith.constant 2 : index
    %7 = vector.load %arg1[%c0_6, %c0_7, %c2] : memref<1x4x328xf32, #tpu.memory_space<vmem>>, vector<1x4x252xf32>
    %8 = vector.shape_cast %7 : vector<1x4x252xf32> to vector<4x252xf32>
    %c1 = arith.constant 1 : index
    %c0_8 = arith.constant 0 : index
    %c0_9 = arith.constant 0 : index
    %9 = vector.load %arg2[%c1, %c0_8, %c0_9] : memref<9x8x4xf32, #tpu.memory_space<vmem>>, vector<1x8x4xf32>
    %10 = vector.shape_cast %9 : vector<1x8x4xf32> to vector<8x4xf32>
    %cst_10 = arith.constant dense<0.000000e+00> : vector<8x252xf32>
    %11 = tpu.matmul %10, %8, %cst_10 {dimension_numbers = #tpu.dot_dimension_numbers<[1], [0], [0], [1], [0, 0, 1, 1], [], []>} : vector<8x4xf32>, vector<4x252xf32>, vector<8x252xf32> -> vector<8x252xf32>
    %12 = arith.addf %6, %11 : vector<8x252xf32>
    %c0_11 = arith.constant 0 : index
    %c0_12 = arith.constant 0 : index
    %c4 = arith.constant 4 : index
    %13 = vector.load %arg1[%c0_11, %c0_12, %c4] : memref<1x4x328xf32, #tpu.memory_space<vmem>>, vector<1x4x252xf32>
    %14 = vector.shape_cast %13 : vector<1x4x252xf32> to vector<4x252xf32>
    %c2_13 = arith.constant 2 : index
    %c0_14 = arith.constant 0 : index
    %c0_15 = arith.constant 0 : index
    %15 = vector.load %arg2[%c2_13, %c0_14, %c0_15] : memref<9x8x4xf32, #tpu.memory_space<vmem>>, vector<1x8x4xf32>
    %16 = vector.shape_cast %15 : vector<1x8x4xf32> to vector<8x4xf32>
    %cst_16 = arith.constant dense<0.000000e+00> : vector<8x252xf32>
    %17 = tpu.matmul %16, %14, %cst_16 {dimension_numbers = #tpu.dot_dimension_numbers<[1], [0], [0], [1], [0, 0, 1, 1], [], []>} : vector<8x4xf32>, vector<4x252xf32>, vector<8x252xf32> -> vector<8x252xf32>
    %18 = arith.addf %12, %17 : vector<8x252xf32>
    %c0_17 = arith.constant 0 : index
    %c0_18 = arith.constant 0 : index
    %c36 = arith.constant 36 : index
    %19 = vector.load %arg1[%c0_17, %c0_18, %c36] : memref<1x4x328xf32, #tpu.memory_space<vmem>>, vector<1x4x252xf32>
    %20 = vector.shape_cast %19 : vector<1x4x252xf32> to vector<4x252xf32>
    %c3 = arith.constant 3 : index
    %c0_19 = arith.constant 0 : index
    %c0_20 = arith.constant 0 : index
    %21 = vector.load %arg2[%c3, %c0_19, %c0_20] : memref<9x8x4xf32, #tpu.memory_space<vmem>>, vector<1x8x4xf32>
    %22 = vector.shape_cast %21 : vector<1x8x4xf32> to vector<8x4xf32>
    %cst_21 = arith.constant dense<0.000000e+00> : vector<8x252xf32>
    %23 = tpu.matmul %22, %20, %cst_21 {dimension_numbers = #tpu.dot_dimension_numbers<[1], [0], [0], [1], [0, 0, 1, 1], [], []>} : vector<8x4xf32>, vector<4x252xf32>, vector<8x252xf32> -> vector<8x252xf32>
    %24 = arith.addf %18, %23 : vector<8x252xf32>
    %c0_22 = arith.constant 0 : index
    %c0_23 = arith.constant 0 : index
    %c38 = arith.constant 38 : index
    %25 = vector.load %arg1[%c0_22, %c0_23, %c38] : memref<1x4x328xf32, #tpu.memory_space<vmem>>, vector<1x4x252xf32>
    %26 = vector.shape_cast %25 : vector<1x4x252xf32> to vector<4x252xf32>
    %c4_24 = arith.constant 4 : index
    %c0_25 = arith.constant 0 : index
    %c0_26 = arith.constant 0 : index
    %27 = vector.load %arg2[%c4_24, %c0_25, %c0_26] : memref<9x8x4xf32, #tpu.memory_space<vmem>>, vector<1x8x4xf32>
    %28 = vector.shape_cast %27 : vector<1x8x4xf32> to vector<8x4xf32>
    %cst_27 = arith.constant dense<0.000000e+00> : vector<8x252xf32>
    %29 = tpu.matmul %28, %26, %cst_27 {dimension_numbers = #tpu.dot_dimension_numbers<[1], [0], [0], [1], [0, 0, 1, 1], [], []>} : vector<8x4xf32>, vector<4x252xf32>, vector<8x252xf32> -> vector<8x252xf32>
    %30 = arith.addf %24, %29 : vector<8x252xf32>
    %c0_28 = arith.constant 0 : index
    %c0_29 = arith.constant 0 : index
    %c40 = arith.constant 40 : index
    %31 = vector.load %arg1[%c0_28, %c0_29, %c40] : memref<1x4x328xf32, #tpu.memory_space<vmem>>, vector<1x4x252xf32>
    %32 = vector.shape_cast %31 : vector<1x4x252xf32> to vector<4x252xf32>
    %c5 = arith.constant 5 : index
    %c0_30 = arith.constant 0 : index
    %c0_31 = arith.constant 0 : index
    %33 = vector.load %arg2[%c5, %c0_30, %c0_31] : memref<9x8x4xf32, #tpu.memory_space<vmem>>, vector<1x8x4xf32>
    %34 = vector.shape_cast %33 : vector<1x8x4xf32> to vector<8x4xf32>
    %cst_32 = arith.constant dense<0.000000e+00> : vector<8x252xf32>
    %35 = tpu.matmul %34, %32, %cst_32 {dimension_numbers = #tpu.dot_dimension_numbers<[1], [0], [0], [1], [0, 0, 1, 1], [], []>} : vector<8x4xf32>, vector<4x252xf32>, vector<8x252xf32> -> vector<8x252xf32>
    %36 = arith.addf %30, %35 : vector<8x252xf32>
    %c0_33 = arith.constant 0 : index
    %c0_34 = arith.constant 0 : index
    %c72 = arith.constant 72 : index
    %37 = vector.load %arg1[%c0_33, %c0_34, %c72] : memref<1x4x328xf32, #tpu.memory_space<vmem>>, vector<1x4x252xf32>
    %38 = vector.shape_cast %37 : vector<1x4x252xf32> to vector<4x252xf32>
    %c6 = arith.constant 6 : index
    %c0_35 = arith.constant 0 : index
    %c0_36 = arith.constant 0 : index
    %39 = vector.load %arg2[%c6, %c0_35, %c0_36] : memref<9x8x4xf32, #tpu.memory_space<vmem>>, vector<1x8x4xf32>
    %40 = vector.shape_cast %39 : vector<1x8x4xf32> to vector<8x4xf32>
    %cst_37 = arith.constant dense<0.000000e+00> : vector<8x252xf32>
    %41 = tpu.matmul %40, %38, %cst_37 {dimension_numbers = #tpu.dot_dimension_numbers<[1], [0], [0], [1], [0, 0, 1, 1], [], []>} : vector<8x4xf32>, vector<4x252xf32>, vector<8x252xf32> -> vector<8x252xf32>
    %42 = arith.addf %36, %41 : vector<8x252xf32>
    %c0_38 = arith.constant 0 : index
    %c0_39 = arith.constant 0 : index
    %c74 = arith.constant 74 : index
    %43 = vector.load %arg1[%c0_38, %c0_39, %c74] : memref<1x4x328xf32, #tpu.memory_space<vmem>>, vector<1x4x252xf32>
    %44 = vector.shape_cast %43 : vector<1x4x252xf32> to vector<4x252xf32>
    %c7 = arith.constant 7 : index
    %c0_40 = arith.constant 0 : index
    %c0_41 = arith.constant 0 : index
    %45 = vector.load %arg2[%c7, %c0_40, %c0_41] : memref<9x8x4xf32, #tpu.memory_space<vmem>>, vector<1x8x4xf32>
    %46 = vector.shape_cast %45 : vector<1x8x4xf32> to vector<8x4xf32>
    %cst_42 = arith.constant dense<0.000000e+00> : vector<8x252xf32>
    %47 = tpu.matmul %46, %44, %cst_42 {dimension_numbers = #tpu.dot_dimension_numbers<[1], [0], [0], [1], [0, 0, 1, 1], [], []>} : vector<8x4xf32>, vector<4x252xf32>, vector<8x252xf32> -> vector<8x252xf32>
    %48 = arith.addf %42, %47 : vector<8x252xf32>
    %c0_43 = arith.constant 0 : index
    %c0_44 = arith.constant 0 : index
    %c76 = arith.constant 76 : index
    %49 = vector.load %arg1[%c0_43, %c0_44, %c76] : memref<1x4x328xf32, #tpu.memory_space<vmem>>, vector<1x4x252xf32>
    %50 = vector.shape_cast %49 : vector<1x4x252xf32> to vector<4x252xf32>
    %c8 = arith.constant 8 : index
    %c0_45 = arith.constant 0 : index
    %c0_46 = arith.constant 0 : index
    %51 = vector.load %arg2[%c8, %c0_45, %c0_46] : memref<9x8x4xf32, #tpu.memory_space<vmem>>, vector<1x8x4xf32>
    %52 = vector.shape_cast %51 : vector<1x8x4xf32> to vector<8x4xf32>
    %cst_47 = arith.constant dense<0.000000e+00> : vector<8x252xf32>
    %53 = tpu.matmul %52, %50, %cst_47 {dimension_numbers = #tpu.dot_dimension_numbers<[1], [0], [0], [1], [0, 0, 1, 1], [], []>} : vector<8x4xf32>, vector<4x252xf32>, vector<8x252xf32> -> vector<8x252xf32>
    %54 = arith.addf %48, %53 : vector<8x252xf32>
    %c0_48 = arith.constant 0 : index
    %c0_49 = arith.constant 0 : index
    %55 = vector.load %arg3[%c0_48, %c0_49] : memref<8x1xf32, #tpu.memory_space<vmem>>, vector<8x1xf32>
    %56 = vector.broadcast %55 : vector<8x1xf32> to vector<8x252xf32>
    %57 = arith.addf %54, %56 : vector<8x252xf32>
    %cst_50 = arith.constant 0.000000e+00 : f32
    %58 = vector.broadcast %cst_50 : f32 to vector<8x252xf32>
    %59 = arith.cmpf oge, %57, %58 : vector<8x252xf32>
    %cst_51 = arith.constant 0.00999999977 : f32
    %60 = vector.broadcast %cst_51 : f32 to vector<8x252xf32>
    %61 = arith.mulf %57, %60 : vector<8x252xf32>
    %62 = arith.select %59, %57, %61 : vector<8x252xi1>, vector<8x252xf32>
    %c0_52 = arith.constant 0 : index
    %c0_53 = arith.constant 0 : index
    %c0_54 = arith.constant 0 : index
    %63 = vector.load %arg4[%c0_52, %c0_53, %c0_54] : memref<1x8x252xf32, #tpu.memory_space<vmem>>, vector<1x8x252xf32>
    %64 = vector.shape_cast %63 : vector<1x8x252xf32> to vector<8x252xf32>
    %65 = vector.shape_cast %62 : vector<8x252xf32> to vector<1x8x252xf32>
    tpu.vector_store %arg4[%c0_52, %c0_53, %c0_54], %65 {strides = array<i32>} : memref<1x8x252xf32, #tpu.memory_space<vmem>>, vector<1x8x252xf32>,
    return
  }
  func.func @transform_0(%arg0: i32) -> (i32, i32, i32) {
    %c0_i32 = arith.constant 0 : i32
    %c0_i32_0 = arith.constant 0 : i32
    %c0_i32_1 = arith.constant 0 : i32
    return %arg0, %c0_i32, %c0_i32_0 : i32, i32, i32
  }
  func.func @transform_1(%arg0: i32) -> (i32, i32, i32) {
    %c0_i32 = arith.constant 0 : i32
    %c0_i32_0 = arith.constant 0 : i32
    %c0_i32_1 = arith.constant 0 : i32
    %c0_i32_2 = arith.constant 0 : i32
    return %c0_i32, %c0_i32_0, %c0_i32_1 : i32, i32, i32
  }
  func.func @transform_2(%arg0: i32) -> (i32, i32) {
    %c0_i32 = arith.constant 0 : i32
    %c0_i32_0 = arith.constant 0 : i32
    %c0_i32_1 = arith.constant 0 : i32
    return %c0_i32, %c0_i32_0 : i32, i32
  }
  func.func @transform_3(%arg0: i32) -> (i32, i32, i32) {
    %c0_i32 = arith.constant 0 : i32
    %c0_i32_0 = arith.constant 0 : i32
    %c0_i32_1 = arith.constant 0 : i32
    return %arg0, %c0_i32, %c0_i32_0 : i32, i32, i32
  }
}

module attributes {stable_mosaic.version = 11 : i64} {
  func.func @_conv3x3_kernel(%arg0: i32, %arg1: memref<1x8x260xf32, #tpu.memory_space<vmem>>, %arg2: memref<9x8x8xf32, #tpu.memory_space<vmem>>, %arg3: memref<8x1xf32, #tpu.memory_space<vmem>>, %arg4: memref<1x8x192xf32, #tpu.memory_space<vmem>>) attributes {dimension_semantics = [#tpu.dimension_semantics<parallel>], iteration_bounds = array<i64: 2>, scalar_prefetch = 0 : i64, scratch_operands = 0 : i64, tpu.core_type = #tpu.core_type<tc>, window_params = [{transform_indices = @transform_0, window_bounds = array<i64: 1, 8, 260>}, {pipeline_mode = #tpu.pipeline_mode<synchronous>, transform_indices = @transform_1, window_bounds = array<i64: 9, 8, 8>}, {pipeline_mode = #tpu.pipeline_mode<synchronous>, transform_indices = @transform_2, window_bounds = array<i64: 8, 1>}, {transform_indices = @transform_3, window_bounds = array<i64: 1, 8, 192>}]} {
    %cst = arith.constant 0.000000e+00 : f32
    %0 = vector.broadcast %cst : f32 to vector<8x192xf32>
    %c0 = arith.constant 0 : index
    %c0_0 = arith.constant 0 : index
    %c0_1 = arith.constant 0 : index
    %1 = vector.load %arg1[%c0, %c0_0, %c0_1] : memref<1x8x260xf32, #tpu.memory_space<vmem>>, vector<1x8x192xf32>
    %2 = vector.shape_cast %1 : vector<1x8x192xf32> to vector<8x192xf32>
    %c0_2 = arith.constant 0 : index
    %c0_3 = arith.constant 0 : index
    %c0_4 = arith.constant 0 : index
    %3 = vector.load %arg2[%c0_2, %c0_3, %c0_4] : memref<9x8x8xf32, #tpu.memory_space<vmem>>, vector<1x8x8xf32>
    %4 = vector.shape_cast %3 : vector<1x8x8xf32> to vector<8x8xf32>
    %cst_5 = arith.constant dense<0.000000e+00> : vector<8x192xf32>
    %5 = tpu.matmul %4, %2, %cst_5 {dimension_numbers = #tpu.dot_dimension_numbers<[1], [0], [0], [1], [0, 0, 1, 1], [], []>} : vector<8x8xf32>, vector<8x192xf32>, vector<8x192xf32> -> vector<8x192xf32>
    %6 = arith.addf %0, %5 : vector<8x192xf32>
    %c0_6 = arith.constant 0 : index
    %c0_7 = arith.constant 0 : index
    %c2 = arith.constant 2 : index
    %7 = vector.load %arg1[%c0_6, %c0_7, %c2] : memref<1x8x260xf32, #tpu.memory_space<vmem>>, vector<1x8x192xf32>
    %8 = vector.shape_cast %7 : vector<1x8x192xf32> to vector<8x192xf32>
    %c1 = arith.constant 1 : index
    %c0_8 = arith.constant 0 : index
    %c0_9 = arith.constant 0 : index
    %9 = vector.load %arg2[%c1, %c0_8, %c0_9] : memref<9x8x8xf32, #tpu.memory_space<vmem>>, vector<1x8x8xf32>
    %10 = vector.shape_cast %9 : vector<1x8x8xf32> to vector<8x8xf32>
    %cst_10 = arith.constant dense<0.000000e+00> : vector<8x192xf32>
    %11 = tpu.matmul %10, %8, %cst_10 {dimension_numbers = #tpu.dot_dimension_numbers<[1], [0], [0], [1], [0, 0, 1, 1], [], []>} : vector<8x8xf32>, vector<8x192xf32>, vector<8x192xf32> -> vector<8x192xf32>
    %12 = arith.addf %6, %11 : vector<8x192xf32>
    %c0_11 = arith.constant 0 : index
    %c0_12 = arith.constant 0 : index
    %c4 = arith.constant 4 : index
    %13 = vector.load %arg1[%c0_11, %c0_12, %c4] : memref<1x8x260xf32, #tpu.memory_space<vmem>>, vector<1x8x192xf32>
    %14 = vector.shape_cast %13 : vector<1x8x192xf32> to vector<8x192xf32>
    %c2_13 = arith.constant 2 : index
    %c0_14 = arith.constant 0 : index
    %c0_15 = arith.constant 0 : index
    %15 = vector.load %arg2[%c2_13, %c0_14, %c0_15] : memref<9x8x8xf32, #tpu.memory_space<vmem>>, vector<1x8x8xf32>
    %16 = vector.shape_cast %15 : vector<1x8x8xf32> to vector<8x8xf32>
    %cst_16 = arith.constant dense<0.000000e+00> : vector<8x192xf32>
    %17 = tpu.matmul %16, %14, %cst_16 {dimension_numbers = #tpu.dot_dimension_numbers<[1], [0], [0], [1], [0, 0, 1, 1], [], []>} : vector<8x8xf32>, vector<8x192xf32>, vector<8x192xf32> -> vector<8x192xf32>
    %18 = arith.addf %12, %17 : vector<8x192xf32>
    %c0_17 = arith.constant 0 : index
    %c0_18 = arith.constant 0 : index
    %c32 = arith.constant 32 : index
    %19 = vector.load %arg1[%c0_17, %c0_18, %c32] : memref<1x8x260xf32, #tpu.memory_space<vmem>>, vector<1x8x192xf32>
    %20 = vector.shape_cast %19 : vector<1x8x192xf32> to vector<8x192xf32>
    %c3 = arith.constant 3 : index
    %c0_19 = arith.constant 0 : index
    %c0_20 = arith.constant 0 : index
    %21 = vector.load %arg2[%c3, %c0_19, %c0_20] : memref<9x8x8xf32, #tpu.memory_space<vmem>>, vector<1x8x8xf32>
    %22 = vector.shape_cast %21 : vector<1x8x8xf32> to vector<8x8xf32>
    %cst_21 = arith.constant dense<0.000000e+00> : vector<8x192xf32>
    %23 = tpu.matmul %22, %20, %cst_21 {dimension_numbers = #tpu.dot_dimension_numbers<[1], [0], [0], [1], [0, 0, 1, 1], [], []>} : vector<8x8xf32>, vector<8x192xf32>, vector<8x192xf32> -> vector<8x192xf32>
    %24 = arith.addf %18, %23 : vector<8x192xf32>
    %c0_22 = arith.constant 0 : index
    %c0_23 = arith.constant 0 : index
    %c34 = arith.constant 34 : index
    %25 = vector.load %arg1[%c0_22, %c0_23, %c34] : memref<1x8x260xf32, #tpu.memory_space<vmem>>, vector<1x8x192xf32>
    %26 = vector.shape_cast %25 : vector<1x8x192xf32> to vector<8x192xf32>
    %c4_24 = arith.constant 4 : index
    %c0_25 = arith.constant 0 : index
    %c0_26 = arith.constant 0 : index
    %27 = vector.load %arg2[%c4_24, %c0_25, %c0_26] : memref<9x8x8xf32, #tpu.memory_space<vmem>>, vector<1x8x8xf32>
    %28 = vector.shape_cast %27 : vector<1x8x8xf32> to vector<8x8xf32>
    %cst_27 = arith.constant dense<0.000000e+00> : vector<8x192xf32>
    %29 = tpu.matmul %28, %26, %cst_27 {dimension_numbers = #tpu.dot_dimension_numbers<[1], [0], [0], [1], [0, 0, 1, 1], [], []>} : vector<8x8xf32>, vector<8x192xf32>, vector<8x192xf32> -> vector<8x192xf32>
    %30 = arith.addf %24, %29 : vector<8x192xf32>
    %c0_28 = arith.constant 0 : index
    %c0_29 = arith.constant 0 : index
    %c36 = arith.constant 36 : index
    %31 = vector.load %arg1[%c0_28, %c0_29, %c36] : memref<1x8x260xf32, #tpu.memory_space<vmem>>, vector<1x8x192xf32>
    %32 = vector.shape_cast %31 : vector<1x8x192xf32> to vector<8x192xf32>
    %c5 = arith.constant 5 : index
    %c0_30 = arith.constant 0 : index
    %c0_31 = arith.constant 0 : index
    %33 = vector.load %arg2[%c5, %c0_30, %c0_31] : memref<9x8x8xf32, #tpu.memory_space<vmem>>, vector<1x8x8xf32>
    %34 = vector.shape_cast %33 : vector<1x8x8xf32> to vector<8x8xf32>
    %cst_32 = arith.constant dense<0.000000e+00> : vector<8x192xf32>
    %35 = tpu.matmul %34, %32, %cst_32 {dimension_numbers = #tpu.dot_dimension_numbers<[1], [0], [0], [1], [0, 0, 1, 1], [], []>} : vector<8x8xf32>, vector<8x192xf32>, vector<8x192xf32> -> vector<8x192xf32>
    %36 = arith.addf %30, %35 : vector<8x192xf32>
    %c0_33 = arith.constant 0 : index
    %c0_34 = arith.constant 0 : index
    %c64 = arith.constant 64 : index
    %37 = vector.load %arg1[%c0_33, %c0_34, %c64] : memref<1x8x260xf32, #tpu.memory_space<vmem>>, vector<1x8x192xf32>
    %38 = vector.shape_cast %37 : vector<1x8x192xf32> to vector<8x192xf32>
    %c6 = arith.constant 6 : index
    %c0_35 = arith.constant 0 : index
    %c0_36 = arith.constant 0 : index
    %39 = vector.load %arg2[%c6, %c0_35, %c0_36] : memref<9x8x8xf32, #tpu.memory_space<vmem>>, vector<1x8x8xf32>
    %40 = vector.shape_cast %39 : vector<1x8x8xf32> to vector<8x8xf32>
    %cst_37 = arith.constant dense<0.000000e+00> : vector<8x192xf32>
    %41 = tpu.matmul %40, %38, %cst_37 {dimension_numbers = #tpu.dot_dimension_numbers<[1], [0], [0], [1], [0, 0, 1, 1], [], []>} : vector<8x8xf32>, vector<8x192xf32>, vector<8x192xf32> -> vector<8x192xf32>
    %42 = arith.addf %36, %41 : vector<8x192xf32>
    %c0_38 = arith.constant 0 : index
    %c0_39 = arith.constant 0 : index
    %c66 = arith.constant 66 : index
    %43 = vector.load %arg1[%c0_38, %c0_39, %c66] : memref<1x8x260xf32, #tpu.memory_space<vmem>>, vector<1x8x192xf32>
    %44 = vector.shape_cast %43 : vector<1x8x192xf32> to vector<8x192xf32>
    %c7 = arith.constant 7 : index
    %c0_40 = arith.constant 0 : index
    %c0_41 = arith.constant 0 : index
    %45 = vector.load %arg2[%c7, %c0_40, %c0_41] : memref<9x8x8xf32, #tpu.memory_space<vmem>>, vector<1x8x8xf32>
    %46 = vector.shape_cast %45 : vector<1x8x8xf32> to vector<8x8xf32>
    %cst_42 = arith.constant dense<0.000000e+00> : vector<8x192xf32>
    %47 = tpu.matmul %46, %44, %cst_42 {dimension_numbers = #tpu.dot_dimension_numbers<[1], [0], [0], [1], [0, 0, 1, 1], [], []>} : vector<8x8xf32>, vector<8x192xf32>, vector<8x192xf32> -> vector<8x192xf32>
    %48 = arith.addf %42, %47 : vector<8x192xf32>
    %c0_43 = arith.constant 0 : index
    %c0_44 = arith.constant 0 : index
    %c68 = arith.constant 68 : index
    %49 = vector.load %arg1[%c0_43, %c0_44, %c68] : memref<1x8x260xf32, #tpu.memory_space<vmem>>, vector<1x8x192xf32>
    %50 = vector.shape_cast %49 : vector<1x8x192xf32> to vector<8x192xf32>
    %c8 = arith.constant 8 : index
    %c0_45 = arith.constant 0 : index
    %c0_46 = arith.constant 0 : index
    %51 = vector.load %arg2[%c8, %c0_45, %c0_46] : memref<9x8x8xf32, #tpu.memory_space<vmem>>, vector<1x8x8xf32>
    %52 = vector.shape_cast %51 : vector<1x8x8xf32> to vector<8x8xf32>
    %cst_47 = arith.constant dense<0.000000e+00> : vector<8x192xf32>
    %53 = tpu.matmul %52, %50, %cst_47 {dimension_numbers = #tpu.dot_dimension_numbers<[1], [0], [0], [1], [0, 0, 1, 1], [], []>} : vector<8x8xf32>, vector<8x192xf32>, vector<8x192xf32> -> vector<8x192xf32>
    %54 = arith.addf %48, %53 : vector<8x192xf32>
    %c0_48 = arith.constant 0 : index
    %c0_49 = arith.constant 0 : index
    %55 = vector.load %arg3[%c0_48, %c0_49] : memref<8x1xf32, #tpu.memory_space<vmem>>, vector<8x1xf32>
    %56 = vector.broadcast %55 : vector<8x1xf32> to vector<8x192xf32>
    %57 = arith.addf %54, %56 : vector<8x192xf32>
    %c0_50 = arith.constant 0 : index
    %c0_51 = arith.constant 0 : index
    %c0_52 = arith.constant 0 : index
    %58 = vector.load %arg4[%c0_50, %c0_51, %c0_52] : memref<1x8x192xf32, #tpu.memory_space<vmem>>, vector<1x8x192xf32>
    %59 = vector.shape_cast %58 : vector<1x8x192xf32> to vector<8x192xf32>
    %60 = vector.shape_cast %57 : vector<8x192xf32> to vector<1x8x192xf32>
    tpu.vector_store %arg4[%c0_50, %c0_51, %c0_52], %60 {strides = array<i32>} : memref<1x8x192xf32, #tpu.memory_space<vmem>>, vector<1x8x192xf32>,
    return
  }
  func.func @transform_0(%arg0: i32) -> (i32, i32, i32) {
    %c0_i32 = arith.constant 0 : i32
    %c0_i32_0 = arith.constant 0 : i32
    %c0_i32_1 = arith.constant 0 : i32
    return %arg0, %c0_i32, %c0_i32_0 : i32, i32, i32
  }
  func.func @transform_1(%arg0: i32) -> (i32, i32, i32) {
    %c0_i32 = arith.constant 0 : i32
    %c0_i32_0 = arith.constant 0 : i32
    %c0_i32_1 = arith.constant 0 : i32
    %c0_i32_2 = arith.constant 0 : i32
    return %c0_i32, %c0_i32_0, %c0_i32_1 : i32, i32, i32
  }
  func.func @transform_2(%arg0: i32) -> (i32, i32) {
    %c0_i32 = arith.constant 0 : i32
    %c0_i32_0 = arith.constant 0 : i32
    %c0_i32_1 = arith.constant 0 : i32
    return %c0_i32, %c0_i32_0 : i32, i32
  }
  func.func @transform_3(%arg0: i32) -> (i32, i32, i32) {
    %c0_i32 = arith.constant 0 : i32
    %c0_i32_0 = arith.constant 0 : i32
    %c0_i32_1 = arith.constant 0 : i32
    return %arg0, %c0_i32, %c0_i32_0 : i32, i32, i32
  }
}

module attributes {stable_mosaic.version = 11 : i64} {
  func.func @_conv3x3_kernel(%arg0: i32, %arg1: memref<1x4x330xf32, #tpu.memory_space<vmem>>, %arg2: memref<9x8x4xf32, #tpu.memory_space<vmem>>, %arg3: memref<8x1xf32, #tpu.memory_space<vmem>>, %arg4: memref<1x8x216xf32, #tpu.memory_space<vmem>>) attributes {dimension_semantics = [#tpu.dimension_semantics<parallel>], iteration_bounds = array<i64: 2>, scalar_prefetch = 0 : i64, scratch_operands = 0 : i64, tpu.core_type = #tpu.core_type<tc>, window_params = [{transform_indices = @transform_0, window_bounds = array<i64: 1, 4, 330>}, {pipeline_mode = #tpu.pipeline_mode<synchronous>, transform_indices = @transform_1, window_bounds = array<i64: 9, 8, 4>}, {pipeline_mode = #tpu.pipeline_mode<synchronous>, transform_indices = @transform_2, window_bounds = array<i64: 8, 1>}, {transform_indices = @transform_3, window_bounds = array<i64: 1, 8, 216>}]} {
    %cst = arith.constant 0.000000e+00 : f32
    %0 = vector.broadcast %cst : f32 to vector<8x216xf32>
    %c0 = arith.constant 0 : index
    %c0_0 = arith.constant 0 : index
    %c0_1 = arith.constant 0 : index
    %1 = vector.load %arg1[%c0, %c0_0, %c0_1] : memref<1x4x330xf32, #tpu.memory_space<vmem>>, vector<1x4x216xf32>
    %2 = vector.shape_cast %1 : vector<1x4x216xf32> to vector<4x216xf32>
    %c0_2 = arith.constant 0 : index
    %c0_3 = arith.constant 0 : index
    %c0_4 = arith.constant 0 : index
    %3 = vector.load %arg2[%c0_2, %c0_3, %c0_4] : memref<9x8x4xf32, #tpu.memory_space<vmem>>, vector<1x8x4xf32>
    %4 = vector.shape_cast %3 : vector<1x8x4xf32> to vector<8x4xf32>
    %cst_5 = arith.constant dense<0.000000e+00> : vector<8x216xf32>
    %5 = tpu.matmul %4, %2, %cst_5 {dimension_numbers = #tpu.dot_dimension_numbers<[1], [0], [0], [1], [0, 0, 1, 1], [], []>} : vector<8x4xf32>, vector<4x216xf32>, vector<8x216xf32> -> vector<8x216xf32>
    %6 = arith.addf %0, %5 : vector<8x216xf32>
    %c0_6 = arith.constant 0 : index
    %c0_7 = arith.constant 0 : index
    %c3 = arith.constant 3 : index
    %7 = vector.load %arg1[%c0_6, %c0_7, %c3] : memref<1x4x330xf32, #tpu.memory_space<vmem>>, vector<1x4x216xf32>
    %8 = vector.shape_cast %7 : vector<1x4x216xf32> to vector<4x216xf32>
    %c1 = arith.constant 1 : index
    %c0_8 = arith.constant 0 : index
    %c0_9 = arith.constant 0 : index
    %9 = vector.load %arg2[%c1, %c0_8, %c0_9] : memref<9x8x4xf32, #tpu.memory_space<vmem>>, vector<1x8x4xf32>
    %10 = vector.shape_cast %9 : vector<1x8x4xf32> to vector<8x4xf32>
    %cst_10 = arith.constant dense<0.000000e+00> : vector<8x216xf32>
    %11 = tpu.matmul %10, %8, %cst_10 {dimension_numbers = #tpu.dot_dimension_numbers<[1], [0], [0], [1], [0, 0, 1, 1], [], []>} : vector<8x4xf32>, vector<4x216xf32>, vector<8x216xf32> -> vector<8x216xf32>
    %12 = arith.addf %6, %11 : vector<8x216xf32>
    %c0_11 = arith.constant 0 : index
    %c0_12 = arith.constant 0 : index
    %c6 = arith.constant 6 : index
    %13 = vector.load %arg1[%c0_11, %c0_12, %c6] : memref<1x4x330xf32, #tpu.memory_space<vmem>>, vector<1x4x216xf32>
    %14 = vector.shape_cast %13 : vector<1x4x216xf32> to vector<4x216xf32>
    %c2 = arith.constant 2 : index
    %c0_13 = arith.constant 0 : index
    %c0_14 = arith.constant 0 : index
    %15 = vector.load %arg2[%c2, %c0_13, %c0_14] : memref<9x8x4xf32, #tpu.memory_space<vmem>>, vector<1x8x4xf32>
    %16 = vector.shape_cast %15 : vector<1x8x4xf32> to vector<8x4xf32>
    %cst_15 = arith.constant dense<0.000000e+00> : vector<8x216xf32>
    %17 = tpu.matmul %16, %14, %cst_15 {dimension_numbers = #tpu.dot_dimension_numbers<[1], [0], [0], [1], [0, 0, 1, 1], [], []>} : vector<8x4xf32>, vector<4x216xf32>, vector<8x216xf32> -> vector<8x216xf32>
    %18 = arith.addf %12, %17 : vector<8x216xf32>
    %c0_16 = arith.constant 0 : index
    %c0_17 = arith.constant 0 : index
    %c54 = arith.constant 54 : index
    %19 = vector.load %arg1[%c0_16, %c0_17, %c54] : memref<1x4x330xf32, #tpu.memory_space<vmem>>, vector<1x4x216xf32>
    %20 = vector.shape_cast %19 : vector<1x4x216xf32> to vector<4x216xf32>
    %c3_18 = arith.constant 3 : index
    %c0_19 = arith.constant 0 : index
    %c0_20 = arith.constant 0 : index
    %21 = vector.load %arg2[%c3_18, %c0_19, %c0_20] : memref<9x8x4xf32, #tpu.memory_space<vmem>>, vector<1x8x4xf32>
    %22 = vector.shape_cast %21 : vector<1x8x4xf32> to vector<8x4xf32>
    %cst_21 = arith.constant dense<0.000000e+00> : vector<8x216xf32>
    %23 = tpu.matmul %22, %20, %cst_21 {dimension_numbers = #tpu.dot_dimension_numbers<[1], [0], [0], [1], [0, 0, 1, 1], [], []>} : vector<8x4xf32>, vector<4x216xf32>, vector<8x216xf32> -> vector<8x216xf32>
    %24 = arith.addf %18, %23 : vector<8x216xf32>
    %c0_22 = arith.constant 0 : index
    %c0_23 = arith.constant 0 : index
    %c57 = arith.constant 57 : index
    %25 = vector.load %arg1[%c0_22, %c0_23, %c57] : memref<1x4x330xf32, #tpu.memory_space<vmem>>, vector<1x4x216xf32>
    %26 = vector.shape_cast %25 : vector<1x4x216xf32> to vector<4x216xf32>
    %c4 = arith.constant 4 : index
    %c0_24 = arith.constant 0 : index
    %c0_25 = arith.constant 0 : index
    %27 = vector.load %arg2[%c4, %c0_24, %c0_25] : memref<9x8x4xf32, #tpu.memory_space<vmem>>, vector<1x8x4xf32>
    %28 = vector.shape_cast %27 : vector<1x8x4xf32> to vector<8x4xf32>
    %cst_26 = arith.constant dense<0.000000e+00> : vector<8x216xf32>
    %29 = tpu.matmul %28, %26, %cst_26 {dimension_numbers = #tpu.dot_dimension_numbers<[1], [0], [0], [1], [0, 0, 1, 1], [], []>} : vector<8x4xf32>, vector<4x216xf32>, vector<8x216xf32> -> vector<8x216xf32>
    %30 = arith.addf %24, %29 : vector<8x216xf32>
    %c0_27 = arith.constant 0 : index
    %c0_28 = arith.constant 0 : index
    %c60 = arith.constant 60 : index
    %31 = vector.load %arg1[%c0_27, %c0_28, %c60] : memref<1x4x330xf32, #tpu.memory_space<vmem>>, vector<1x4x216xf32>
    %32 = vector.shape_cast %31 : vector<1x4x216xf32> to vector<4x216xf32>
    %c5 = arith.constant 5 : index
    %c0_29 = arith.constant 0 : index
    %c0_30 = arith.constant 0 : index
    %33 = vector.load %arg2[%c5, %c0_29, %c0_30] : memref<9x8x4xf32, #tpu.memory_space<vmem>>, vector<1x8x4xf32>
    %34 = vector.shape_cast %33 : vector<1x8x4xf32> to vector<8x4xf32>
    %cst_31 = arith.constant dense<0.000000e+00> : vector<8x216xf32>
    %35 = tpu.matmul %34, %32, %cst_31 {dimension_numbers = #tpu.dot_dimension_numbers<[1], [0], [0], [1], [0, 0, 1, 1], [], []>} : vector<8x4xf32>, vector<4x216xf32>, vector<8x216xf32> -> vector<8x216xf32>
    %36 = arith.addf %30, %35 : vector<8x216xf32>
    %c0_32 = arith.constant 0 : index
    %c0_33 = arith.constant 0 : index
    %c108 = arith.constant 108 : index
    %37 = vector.load %arg1[%c0_32, %c0_33, %c108] : memref<1x4x330xf32, #tpu.memory_space<vmem>>, vector<1x4x216xf32>
    %38 = vector.shape_cast %37 : vector<1x4x216xf32> to vector<4x216xf32>
    %c6_34 = arith.constant 6 : index
    %c0_35 = arith.constant 0 : index
    %c0_36 = arith.constant 0 : index
    %39 = vector.load %arg2[%c6_34, %c0_35, %c0_36] : memref<9x8x4xf32, #tpu.memory_space<vmem>>, vector<1x8x4xf32>
    %40 = vector.shape_cast %39 : vector<1x8x4xf32> to vector<8x4xf32>
    %cst_37 = arith.constant dense<0.000000e+00> : vector<8x216xf32>
    %41 = tpu.matmul %40, %38, %cst_37 {dimension_numbers = #tpu.dot_dimension_numbers<[1], [0], [0], [1], [0, 0, 1, 1], [], []>} : vector<8x4xf32>, vector<4x216xf32>, vector<8x216xf32> -> vector<8x216xf32>
    %42 = arith.addf %36, %41 : vector<8x216xf32>
    %c0_38 = arith.constant 0 : index
    %c0_39 = arith.constant 0 : index
    %c111 = arith.constant 111 : index
    %43 = vector.load %arg1[%c0_38, %c0_39, %c111] : memref<1x4x330xf32, #tpu.memory_space<vmem>>, vector<1x4x216xf32>
    %44 = vector.shape_cast %43 : vector<1x4x216xf32> to vector<4x216xf32>
    %c7 = arith.constant 7 : index
    %c0_40 = arith.constant 0 : index
    %c0_41 = arith.constant 0 : index
    %45 = vector.load %arg2[%c7, %c0_40, %c0_41] : memref<9x8x4xf32, #tpu.memory_space<vmem>>, vector<1x8x4xf32>
    %46 = vector.shape_cast %45 : vector<1x8x4xf32> to vector<8x4xf32>
    %cst_42 = arith.constant dense<0.000000e+00> : vector<8x216xf32>
    %47 = tpu.matmul %46, %44, %cst_42 {dimension_numbers = #tpu.dot_dimension_numbers<[1], [0], [0], [1], [0, 0, 1, 1], [], []>} : vector<8x4xf32>, vector<4x216xf32>, vector<8x216xf32> -> vector<8x216xf32>
    %48 = arith.addf %42, %47 : vector<8x216xf32>
    %c0_43 = arith.constant 0 : index
    %c0_44 = arith.constant 0 : index
    %c114 = arith.constant 114 : index
    %49 = vector.load %arg1[%c0_43, %c0_44, %c114] : memref<1x4x330xf32, #tpu.memory_space<vmem>>, vector<1x4x216xf32>
    %50 = vector.shape_cast %49 : vector<1x4x216xf32> to vector<4x216xf32>
    %c8 = arith.constant 8 : index
    %c0_45 = arith.constant 0 : index
    %c0_46 = arith.constant 0 : index
    %51 = vector.load %arg2[%c8, %c0_45, %c0_46] : memref<9x8x4xf32, #tpu.memory_space<vmem>>, vector<1x8x4xf32>
    %52 = vector.shape_cast %51 : vector<1x8x4xf32> to vector<8x4xf32>
    %cst_47 = arith.constant dense<0.000000e+00> : vector<8x216xf32>
    %53 = tpu.matmul %52, %50, %cst_47 {dimension_numbers = #tpu.dot_dimension_numbers<[1], [0], [0], [1], [0, 0, 1, 1], [], []>} : vector<8x4xf32>, vector<4x216xf32>, vector<8x216xf32> -> vector<8x216xf32>
    %54 = arith.addf %48, %53 : vector<8x216xf32>
    %c0_48 = arith.constant 0 : index
    %c0_49 = arith.constant 0 : index
    %55 = vector.load %arg3[%c0_48, %c0_49] : memref<8x1xf32, #tpu.memory_space<vmem>>, vector<8x1xf32>
    %56 = vector.broadcast %55 : vector<8x1xf32> to vector<8x216xf32>
    %57 = arith.addf %54, %56 : vector<8x216xf32>
    %cst_50 = arith.constant 0.000000e+00 : f32
    %58 = vector.broadcast %cst_50 : f32 to vector<8x216xf32>
    %59 = arith.cmpf oge, %57, %58 : vector<8x216xf32>
    %cst_51 = arith.constant 0.00999999977 : f32
    %60 = vector.broadcast %cst_51 : f32 to vector<8x216xf32>
    %61 = arith.mulf %57, %60 : vector<8x216xf32>
    %62 = arith.select %59, %57, %61 : vector<8x216xi1>, vector<8x216xf32>
    %c0_52 = arith.constant 0 : index
    %c0_53 = arith.constant 0 : index
    %c0_54 = arith.constant 0 : index
    %63 = vector.load %arg4[%c0_52, %c0_53, %c0_54] : memref<1x8x216xf32, #tpu.memory_space<vmem>>, vector<1x8x216xf32>
    %64 = vector.shape_cast %63 : vector<1x8x216xf32> to vector<8x216xf32>
    %65 = vector.shape_cast %62 : vector<8x216xf32> to vector<1x8x216xf32>
    tpu.vector_store %arg4[%c0_52, %c0_53, %c0_54], %65 {strides = array<i32>} : memref<1x8x216xf32, #tpu.memory_space<vmem>>, vector<1x8x216xf32>,
    return
  }
  func.func @transform_0(%arg0: i32) -> (i32, i32, i32) {
    %c0_i32 = arith.constant 0 : i32
    %c0_i32_0 = arith.constant 0 : i32
    %c0_i32_1 = arith.constant 0 : i32
    return %arg0, %c0_i32, %c0_i32_0 : i32, i32, i32
  }
  func.func @transform_1(%arg0: i32) -> (i32, i32, i32) {
    %c0_i32 = arith.constant 0 : i32
    %c0_i32_0 = arith.constant 0 : i32
    %c0_i32_1 = arith.constant 0 : i32
    %c0_i32_2 = arith.constant 0 : i32
    return %c0_i32, %c0_i32_0, %c0_i32_1 : i32, i32, i32
  }
  func.func @transform_2(%arg0: i32) -> (i32, i32) {
    %c0_i32 = arith.constant 0 : i32
    %c0_i32_0 = arith.constant 0 : i32
    %c0_i32_1 = arith.constant 0 : i32
    return %c0_i32, %c0_i32_0 : i32, i32
  }
  func.func @transform_3(%arg0: i32) -> (i32, i32, i32) {
    %c0_i32 = arith.constant 0 : i32
    %c0_i32_0 = arith.constant 0 : i32
    %c0_i32_1 = arith.constant 0 : i32
    return %arg0, %c0_i32, %c0_i32_0 : i32, i32, i32
  }
}

module attributes {stable_mosaic.version = 11 : i64} {
  func.func @_conv3x3_kernel(%arg0: i32, %arg1: memref<1x8x202xf32, #tpu.memory_space<vmem>>, %arg2: memref<9x8x8xf32, #tpu.memory_space<vmem>>, %arg3: memref<8x1xf32, #tpu.memory_space<vmem>>, %arg4: memref<1x8x112xf32, #tpu.memory_space<vmem>>) attributes {dimension_semantics = [#tpu.dimension_semantics<parallel>], iteration_bounds = array<i64: 2>, scalar_prefetch = 0 : i64, scratch_operands = 0 : i64, tpu.core_type = #tpu.core_type<tc>, window_params = [{transform_indices = @transform_0, window_bounds = array<i64: 1, 8, 202>}, {pipeline_mode = #tpu.pipeline_mode<synchronous>, transform_indices = @transform_1, window_bounds = array<i64: 9, 8, 8>}, {pipeline_mode = #tpu.pipeline_mode<synchronous>, transform_indices = @transform_2, window_bounds = array<i64: 8, 1>}, {transform_indices = @transform_3, window_bounds = array<i64: 1, 8, 112>}]} {
    %cst = arith.constant 0.000000e+00 : f32
    %0 = vector.broadcast %cst : f32 to vector<8x112xf32>
    %c0 = arith.constant 0 : index
    %c0_0 = arith.constant 0 : index
    %c0_1 = arith.constant 0 : index
    %1 = vector.load %arg1[%c0, %c0_0, %c0_1] : memref<1x8x202xf32, #tpu.memory_space<vmem>>, vector<1x8x112xf32>
    %2 = vector.shape_cast %1 : vector<1x8x112xf32> to vector<8x112xf32>
    %c0_2 = arith.constant 0 : index
    %c0_3 = arith.constant 0 : index
    %c0_4 = arith.constant 0 : index
    %3 = vector.load %arg2[%c0_2, %c0_3, %c0_4] : memref<9x8x8xf32, #tpu.memory_space<vmem>>, vector<1x8x8xf32>
    %4 = vector.shape_cast %3 : vector<1x8x8xf32> to vector<8x8xf32>
    %cst_5 = arith.constant dense<0.000000e+00> : vector<8x112xf32>
    %5 = tpu.matmul %4, %2, %cst_5 {dimension_numbers = #tpu.dot_dimension_numbers<[1], [0], [0], [1], [0, 0, 1, 1], [], []>} : vector<8x8xf32>, vector<8x112xf32>, vector<8x112xf32> -> vector<8x112xf32>
    %6 = arith.addf %0, %5 : vector<8x112xf32>
    %c0_6 = arith.constant 0 : index
    %c0_7 = arith.constant 0 : index
    %c3 = arith.constant 3 : index
    %7 = vector.load %arg1[%c0_6, %c0_7, %c3] : memref<1x8x202xf32, #tpu.memory_space<vmem>>, vector<1x8x112xf32>
    %8 = vector.shape_cast %7 : vector<1x8x112xf32> to vector<8x112xf32>
    %c1 = arith.constant 1 : index
    %c0_8 = arith.constant 0 : index
    %c0_9 = arith.constant 0 : index
    %9 = vector.load %arg2[%c1, %c0_8, %c0_9] : memref<9x8x8xf32, #tpu.memory_space<vmem>>, vector<1x8x8xf32>
    %10 = vector.shape_cast %9 : vector<1x8x8xf32> to vector<8x8xf32>
    %cst_10 = arith.constant dense<0.000000e+00> : vector<8x112xf32>
    %11 = tpu.matmul %10, %8, %cst_10 {dimension_numbers = #tpu.dot_dimension_numbers<[1], [0], [0], [1], [0, 0, 1, 1], [], []>} : vector<8x8xf32>, vector<8x112xf32>, vector<8x112xf32> -> vector<8x112xf32>
    %12 = arith.addf %6, %11 : vector<8x112xf32>
    %c0_11 = arith.constant 0 : index
    %c0_12 = arith.constant 0 : index
    %c6 = arith.constant 6 : index
    %13 = vector.load %arg1[%c0_11, %c0_12, %c6] : memref<1x8x202xf32, #tpu.memory_space<vmem>>, vector<1x8x112xf32>
    %14 = vector.shape_cast %13 : vector<1x8x112xf32> to vector<8x112xf32>
    %c2 = arith.constant 2 : index
    %c0_13 = arith.constant 0 : index
    %c0_14 = arith.constant 0 : index
    %15 = vector.load %arg2[%c2, %c0_13, %c0_14] : memref<9x8x8xf32, #tpu.memory_space<vmem>>, vector<1x8x8xf32>
    %16 = vector.shape_cast %15 : vector<1x8x8xf32> to vector<8x8xf32>
    %cst_15 = arith.constant dense<0.000000e+00> : vector<8x112xf32>
    %17 = tpu.matmul %16, %14, %cst_15 {dimension_numbers = #tpu.dot_dimension_numbers<[1], [0], [0], [1], [0, 0, 1, 1], [], []>} : vector<8x8xf32>, vector<8x112xf32>, vector<8x112xf32> -> vector<8x112xf32>
    %18 = arith.addf %12, %17 : vector<8x112xf32>
    %c0_16 = arith.constant 0 : index
    %c0_17 = arith.constant 0 : index
    %c42 = arith.constant 42 : index
    %19 = vector.load %arg1[%c0_16, %c0_17, %c42] : memref<1x8x202xf32, #tpu.memory_space<vmem>>, vector<1x8x112xf32>
    %20 = vector.shape_cast %19 : vector<1x8x112xf32> to vector<8x112xf32>
    %c3_18 = arith.constant 3 : index
    %c0_19 = arith.constant 0 : index
    %c0_20 = arith.constant 0 : index
    %21 = vector.load %arg2[%c3_18, %c0_19, %c0_20] : memref<9x8x8xf32, #tpu.memory_space<vmem>>, vector<1x8x8xf32>
    %22 = vector.shape_cast %21 : vector<1x8x8xf32> to vector<8x8xf32>
    %cst_21 = arith.constant dense<0.000000e+00> : vector<8x112xf32>
    %23 = tpu.matmul %22, %20, %cst_21 {dimension_numbers = #tpu.dot_dimension_numbers<[1], [0], [0], [1], [0, 0, 1, 1], [], []>} : vector<8x8xf32>, vector<8x112xf32>, vector<8x112xf32> -> vector<8x112xf32>
    %24 = arith.addf %18, %23 : vector<8x112xf32>
    %c0_22 = arith.constant 0 : index
    %c0_23 = arith.constant 0 : index
    %c45 = arith.constant 45 : index
    %25 = vector.load %arg1[%c0_22, %c0_23, %c45] : memref<1x8x202xf32, #tpu.memory_space<vmem>>, vector<1x8x112xf32>
    %26 = vector.shape_cast %25 : vector<1x8x112xf32> to vector<8x112xf32>
    %c4 = arith.constant 4 : index
    %c0_24 = arith.constant 0 : index
    %c0_25 = arith.constant 0 : index
    %27 = vector.load %arg2[%c4, %c0_24, %c0_25] : memref<9x8x8xf32, #tpu.memory_space<vmem>>, vector<1x8x8xf32>
    %28 = vector.shape_cast %27 : vector<1x8x8xf32> to vector<8x8xf32>
    %cst_26 = arith.constant dense<0.000000e+00> : vector<8x112xf32>
    %29 = tpu.matmul %28, %26, %cst_26 {dimension_numbers = #tpu.dot_dimension_numbers<[1], [0], [0], [1], [0, 0, 1, 1], [], []>} : vector<8x8xf32>, vector<8x112xf32>, vector<8x112xf32> -> vector<8x112xf32>
    %30 = arith.addf %24, %29 : vector<8x112xf32>
    %c0_27 = arith.constant 0 : index
    %c0_28 = arith.constant 0 : index
    %c48 = arith.constant 48 : index
    %31 = vector.load %arg1[%c0_27, %c0_28, %c48] : memref<1x8x202xf32, #tpu.memory_space<vmem>>, vector<1x8x112xf32>
    %32 = vector.shape_cast %31 : vector<1x8x112xf32> to vector<8x112xf32>
    %c5 = arith.constant 5 : index
    %c0_29 = arith.constant 0 : index
    %c0_30 = arith.constant 0 : index
    %33 = vector.load %arg2[%c5, %c0_29, %c0_30] : memref<9x8x8xf32, #tpu.memory_space<vmem>>, vector<1x8x8xf32>
    %34 = vector.shape_cast %33 : vector<1x8x8xf32> to vector<8x8xf32>
    %cst_31 = arith.constant dense<0.000000e+00> : vector<8x112xf32>
    %35 = tpu.matmul %34, %32, %cst_31 {dimension_numbers = #tpu.dot_dimension_numbers<[1], [0], [0], [1], [0, 0, 1, 1], [], []>} : vector<8x8xf32>, vector<8x112xf32>, vector<8x112xf32> -> vector<8x112xf32>
    %36 = arith.addf %30, %35 : vector<8x112xf32>
    %c0_32 = arith.constant 0 : index
    %c0_33 = arith.constant 0 : index
    %c84 = arith.constant 84 : index
    %37 = vector.load %arg1[%c0_32, %c0_33, %c84] : memref<1x8x202xf32, #tpu.memory_space<vmem>>, vector<1x8x112xf32>
    %38 = vector.shape_cast %37 : vector<1x8x112xf32> to vector<8x112xf32>
    %c6_34 = arith.constant 6 : index
    %c0_35 = arith.constant 0 : index
    %c0_36 = arith.constant 0 : index
    %39 = vector.load %arg2[%c6_34, %c0_35, %c0_36] : memref<9x8x8xf32, #tpu.memory_space<vmem>>, vector<1x8x8xf32>
    %40 = vector.shape_cast %39 : vector<1x8x8xf32> to vector<8x8xf32>
    %cst_37 = arith.constant dense<0.000000e+00> : vector<8x112xf32>
    %41 = tpu.matmul %40, %38, %cst_37 {dimension_numbers = #tpu.dot_dimension_numbers<[1], [0], [0], [1], [0, 0, 1, 1], [], []>} : vector<8x8xf32>, vector<8x112xf32>, vector<8x112xf32> -> vector<8x112xf32>
    %42 = arith.addf %36, %41 : vector<8x112xf32>
    %c0_38 = arith.constant 0 : index
    %c0_39 = arith.constant 0 : index
    %c87 = arith.constant 87 : index
    %43 = vector.load %arg1[%c0_38, %c0_39, %c87] : memref<1x8x202xf32, #tpu.memory_space<vmem>>, vector<1x8x112xf32>
    %44 = vector.shape_cast %43 : vector<1x8x112xf32> to vector<8x112xf32>
    %c7 = arith.constant 7 : index
    %c0_40 = arith.constant 0 : index
    %c0_41 = arith.constant 0 : index
    %45 = vector.load %arg2[%c7, %c0_40, %c0_41] : memref<9x8x8xf32, #tpu.memory_space<vmem>>, vector<1x8x8xf32>
    %46 = vector.shape_cast %45 : vector<1x8x8xf32> to vector<8x8xf32>
    %cst_42 = arith.constant dense<0.000000e+00> : vector<8x112xf32>
    %47 = tpu.matmul %46, %44, %cst_42 {dimension_numbers = #tpu.dot_dimension_numbers<[1], [0], [0], [1], [0, 0, 1, 1], [], []>} : vector<8x8xf32>, vector<8x112xf32>, vector<8x112xf32> -> vector<8x112xf32>
    %48 = arith.addf %42, %47 : vector<8x112xf32>
    %c0_43 = arith.constant 0 : index
    %c0_44 = arith.constant 0 : index
    %c90 = arith.constant 90 : index
    %49 = vector.load %arg1[%c0_43, %c0_44, %c90] : memref<1x8x202xf32, #tpu.memory_space<vmem>>, vector<1x8x112xf32>
    %50 = vector.shape_cast %49 : vector<1x8x112xf32> to vector<8x112xf32>
    %c8 = arith.constant 8 : index
    %c0_45 = arith.constant 0 : index
    %c0_46 = arith.constant 0 : index
    %51 = vector.load %arg2[%c8, %c0_45, %c0_46] : memref<9x8x8xf32, #tpu.memory_space<vmem>>, vector<1x8x8xf32>
    %52 = vector.shape_cast %51 : vector<1x8x8xf32> to vector<8x8xf32>
    %cst_47 = arith.constant dense<0.000000e+00> : vector<8x112xf32>
    %53 = tpu.matmul %52, %50, %cst_47 {dimension_numbers = #tpu.dot_dimension_numbers<[1], [0], [0], [1], [0, 0, 1, 1], [], []>} : vector<8x8xf32>, vector<8x112xf32>, vector<8x112xf32> -> vector<8x112xf32>
    %54 = arith.addf %48, %53 : vector<8x112xf32>
    %c0_48 = arith.constant 0 : index
    %c0_49 = arith.constant 0 : index
    %55 = vector.load %arg3[%c0_48, %c0_49] : memref<8x1xf32, #tpu.memory_space<vmem>>, vector<8x1xf32>
    %56 = vector.broadcast %55 : vector<8x1xf32> to vector<8x112xf32>
    %57 = arith.addf %54, %56 : vector<8x112xf32>
    %c0_50 = arith.constant 0 : index
    %c0_51 = arith.constant 0 : index
    %c0_52 = arith.constant 0 : index
    %58 = vector.load %arg4[%c0_50, %c0_51, %c0_52] : memref<1x8x112xf32, #tpu.memory_space<vmem>>, vector<1x8x112xf32>
    %59 = vector.shape_cast %58 : vector<1x8x112xf32> to vector<8x112xf32>
    %60 = vector.shape_cast %57 : vector<8x112xf32> to vector<1x8x112xf32>
    tpu.vector_store %arg4[%c0_50, %c0_51, %c0_52], %60 {strides = array<i32>} : memref<1x8x112xf32, #tpu.memory_space<vmem>>, vector<1x8x112xf32>,
    return
  }
  func.func @transform_0(%arg0: i32) -> (i32, i32, i32) {
    %c0_i32 = arith.constant 0 : i32
    %c0_i32_0 = arith.constant 0 : i32
    %c0_i32_1 = arith.constant 0 : i32
    return %arg0, %c0_i32, %c0_i32_0 : i32, i32, i32
  }
  func.func @transform_1(%arg0: i32) -> (i32, i32, i32) {
    %c0_i32 = arith.constant 0 : i32
    %c0_i32_0 = arith.constant 0 : i32
    %c0_i32_1 = arith.constant 0 : i32
    %c0_i32_2 = arith.constant 0 : i32
    return %c0_i32, %c0_i32_0, %c0_i32_1 : i32, i32, i32
  }
  func.func @transform_2(%arg0: i32) -> (i32, i32) {
    %c0_i32 = arith.constant 0 : i32
    %c0_i32_0 = arith.constant 0 : i32
    %c0_i32_1 = arith.constant 0 : i32
    return %c0_i32, %c0_i32_0 : i32, i32
  }
  func.func @transform_3(%arg0: i32) -> (i32, i32, i32) {
    %c0_i32 = arith.constant 0 : i32
    %c0_i32_0 = arith.constant 0 : i32
    %c0_i32_1 = arith.constant 0 : i32
    return %arg0, %c0_i32, %c0_i32_0 : i32, i32, i32
  }
}

module attributes {stable_mosaic.version = 11 : i64} {
  func.func @_reduce_shortcut_kernel(%arg0: i32, %arg1: memref<1x8x256xf32, #tpu.memory_space<vmem>>, %arg2: memref<1x8x256xf32, #tpu.memory_space<vmem>>, %arg3: memref<1x8x256xf32, #tpu.memory_space<vmem>>, %arg4: memref<1x4x256xf32, #tpu.memory_space<vmem>>, %arg5: memref<3x8x8xf32, #tpu.memory_space<vmem>>, %arg6: memref<8x4xf32, #tpu.memory_space<vmem>>, %arg7: memref<8x1xf32, #tpu.memory_space<vmem>>, %arg8: memref<1x8x256xf32, #tpu.memory_space<vmem>>) attributes {dimension_semantics = [#tpu.dimension_semantics<parallel>], iteration_bounds = array<i64: 2>, scalar_prefetch = 0 : i64, scratch_operands = 0 : i64, tpu.core_type = #tpu.core_type<tc>, window_params = [{transform_indices = @transform_0, window_bounds = array<i64: 1, 8, 256>}, {transform_indices = @transform_1, window_bounds = array<i64: 1, 8, 256>}, {transform_indices = @transform_2, window_bounds = array<i64: 1, 8, 256>}, {transform_indices = @transform_3, window_bounds = array<i64: 1, 4, 256>}, {pipeline_mode = #tpu.pipeline_mode<synchronous>, transform_indices = @transform_4, window_bounds = array<i64: 3, 8, 8>}, {pipeline_mode = #tpu.pipeline_mode<synchronous>, transform_indices = @transform_5, window_bounds = array<i64: 8, 4>}, {pipeline_mode = #tpu.pipeline_mode<synchronous>, transform_indices = @transform_6, window_bounds = array<i64: 8, 1>}, {transform_indices = @transform_7, window_bounds = array<i64: 1, 8, 256>}]} {
    %c0 = arith.constant 0 : index
    %c0_0 = arith.constant 0 : index
    %c0_1 = arith.constant 0 : index
    %0 = vector.load %arg5[%c0, %c0_0, %c0_1] : memref<3x8x8xf32, #tpu.memory_space<vmem>>, vector<1x8x8xf32>
    %1 = vector.shape_cast %0 : vector<1x8x8xf32> to vector<8x8xf32>
    %c0_2 = arith.constant 0 : index
    %c0_3 = arith.constant 0 : index
    %c0_4 = arith.constant 0 : index
    %2 = vector.load %arg1[%c0_2, %c0_3, %c0_4] : memref<1x8x256xf32, #tpu.memory_space<vmem>>, vector<1x8x256xf32>
    %3 = vector.shape_cast %2 : vector<1x8x256xf32> to vector<8x256xf32>
    %cst = arith.constant dense<0.000000e+00> : vector<8x256xf32>
    %4 = tpu.matmul %1, %3, %cst {dimension_numbers = #tpu.dot_dimension_numbers<[1], [0], [0], [1], [0, 0, 1, 1], [], []>} : vector<8x8xf32>, vector<8x256xf32>, vector<8x256xf32> -> vector<8x256xf32>
    %c1 = arith.constant 1 : index
    %c0_5 = arith.constant 0 : index
    %c0_6 = arith.constant 0 : index
    %5 = vector.load %arg5[%c1, %c0_5, %c0_6] : memref<3x8x8xf32, #tpu.memory_space<vmem>>, vector<1x8x8xf32>
    %6 = vector.shape_cast %5 : vector<1x8x8xf32> to vector<8x8xf32>
    %c0_7 = arith.constant 0 : index
    %c0_8 = arith.constant 0 : index
    %c0_9 = arith.constant 0 : index
    %7 = vector.load %arg2[%c0_7, %c0_8, %c0_9] : memref<1x8x256xf32, #tpu.memory_space<vmem>>, vector<1x8x256xf32>
    %8 = vector.shape_cast %7 : vector<1x8x256xf32> to vector<8x256xf32>
    %cst_10 = arith.constant dense<0.000000e+00> : vector<8x256xf32>
    %9 = tpu.matmul %6, %8, %cst_10 {dimension_numbers = #tpu.dot_dimension_numbers<[1], [0], [0], [1], [0, 0, 1, 1], [], []>} : vector<8x8xf32>, vector<8x256xf32>, vector<8x256xf32> -> vector<8x256xf32>
    %10 = arith.addf %4, %9 : vector<8x256xf32>
    %c2 = arith.constant 2 : index
    %c0_11 = arith.constant 0 : index
    %c0_12 = arith.constant 0 : index
    %11 = vector.load %arg5[%c2, %c0_11, %c0_12] : memref<3x8x8xf32, #tpu.memory_space<vmem>>, vector<1x8x8xf32>
    %12 = vector.shape_cast %11 : vector<1x8x8xf32> to vector<8x8xf32>
    %c0_13 = arith.constant 0 : index
    %c0_14 = arith.constant 0 : index
    %c0_15 = arith.constant 0 : index
    %13 = vector.load %arg3[%c0_13, %c0_14, %c0_15] : memref<1x8x256xf32, #tpu.memory_space<vmem>>, vector<1x8x256xf32>
    %14 = vector.shape_cast %13 : vector<1x8x256xf32> to vector<8x256xf32>
    %cst_16 = arith.constant dense<0.000000e+00> : vector<8x256xf32>
    %15 = tpu.matmul %12, %14, %cst_16 {dimension_numbers = #tpu.dot_dimension_numbers<[1], [0], [0], [1], [0, 0, 1, 1], [], []>} : vector<8x8xf32>, vector<8x256xf32>, vector<8x256xf32> -> vector<8x256xf32>
    %16 = arith.addf %10, %15 : vector<8x256xf32>
    %c0_17 = arith.constant 0 : index
    %c0_18 = arith.constant 0 : index
    %17 = vector.load %arg6[%c0_17, %c0_18] : memref<8x4xf32, #tpu.memory_space<vmem>>, vector<8x4xf32>
    %c0_19 = arith.constant 0 : index
    %c0_20 = arith.constant 0 : index
    %c0_21 = arith.constant 0 : index
    %18 = vector.load %arg4[%c0_19, %c0_20, %c0_21] : memref<1x4x256xf32, #tpu.memory_space<vmem>>, vector<1x4x256xf32>
    %19 = vector.shape_cast %18 : vector<1x4x256xf32> to vector<4x256xf32>
    %cst_22 = arith.constant dense<0.000000e+00> : vector<8x256xf32>
    %20 = tpu.matmul %17, %19, %cst_22 {dimension_numbers = #tpu.dot_dimension_numbers<[1], [0], [0], [1], [0, 0, 1, 1], [], []>} : vector<8x4xf32>, vector<4x256xf32>, vector<8x256xf32> -> vector<8x256xf32>
    %21 = arith.addf %16, %20 : vector<8x256xf32>
    %c0_23 = arith.constant 0 : index
    %c0_24 = arith.constant 0 : index
    %22 = vector.load %arg7[%c0_23, %c0_24] : memref<8x1xf32, #tpu.memory_space<vmem>>, vector<8x1xf32>
    %23 = vector.broadcast %22 : vector<8x1xf32> to vector<8x256xf32>
    %24 = arith.addf %21, %23 : vector<8x256xf32>
    %cst_25 = arith.constant 0.000000e+00 : f32
    %25 = vector.broadcast %cst_25 : f32 to vector<8x256xf32>
    %26 = arith.cmpf oge, %24, %25 : vector<8x256xf32>
    %cst_26 = arith.constant 0.00999999977 : f32
    %27 = vector.broadcast %cst_26 : f32 to vector<8x256xf32>
    %28 = arith.mulf %24, %27 : vector<8x256xf32>
    %29 = arith.select %26, %24, %28 : vector<8x256xi1>, vector<8x256xf32>
    %c0_27 = arith.constant 0 : index
    %c0_28 = arith.constant 0 : index
    %c0_29 = arith.constant 0 : index
    %30 = vector.load %arg8[%c0_27, %c0_28, %c0_29] : memref<1x8x256xf32, #tpu.memory_space<vmem>>, vector<1x8x256xf32>
    %31 = vector.shape_cast %30 : vector<1x8x256xf32> to vector<8x256xf32>
    %32 = vector.shape_cast %29 : vector<8x256xf32> to vector<1x8x256xf32>
    tpu.vector_store %arg8[%c0_27, %c0_28, %c0_29], %32 {strides = array<i32>} : memref<1x8x256xf32, #tpu.memory_space<vmem>>, vector<1x8x256xf32>,
    return
  }
  func.func @transform_0(%arg0: i32) -> (i32, i32, i32) {
    %c0_i32 = arith.constant 0 : i32
    %c0_i32_0 = arith.constant 0 : i32
    %c0_i32_1 = arith.constant 0 : i32
    return %arg0, %c0_i32, %c0_i32_0 : i32, i32, i32
  }
  func.func @transform_1(%arg0: i32) -> (i32, i32, i32) {
    %c0_i32 = arith.constant 0 : i32
    %c0_i32_0 = arith.constant 0 : i32
    %c0_i32_1 = arith.constant 0 : i32
    return %arg0, %c0_i32, %c0_i32_0 : i32, i32, i32
  }
  func.func @transform_2(%arg0: i32) -> (i32, i32, i32) {
    %c0_i32 = arith.constant 0 : i32
    %c0_i32_0 = arith.constant 0 : i32
    %c0_i32_1 = arith.constant 0 : i32
    return %arg0, %c0_i32, %c0_i32_0 : i32, i32, i32
  }
  func.func @transform_3(%arg0: i32) -> (i32, i32, i32) {
    %c0_i32 = arith.constant 0 : i32
    %c0_i32_0 = arith.constant 0 : i32
    %c0_i32_1 = arith.constant 0 : i32
    return %arg0, %c0_i32, %c0_i32_0 : i32, i32, i32
  }
  func.func @transform_4(%arg0: i32) -> (i32, i32, i32) {
    %c0_i32 = arith.constant 0 : i32
    %c0_i32_0 = arith.constant 0 : i32
    %c0_i32_1 = arith.constant 0 : i32
    %c0_i32_2 = arith.constant 0 : i32
    return %c0_i32, %c0_i32_0, %c0_i32_1 : i32, i32, i32
  }
  func.func @transform_5(%arg0: i32) -> (i32, i32) {
    %c0_i32 = arith.constant 0 : i32
    %c0_i32_0 = arith.constant 0 : i32
    %c0_i32_1 = arith.constant 0 : i32
    return %c0_i32, %c0_i32_0 : i32, i32
  }
  func.func @transform_6(%arg0: i32) -> (i32, i32) {
    %c0_i32 = arith.constant 0 : i32
    %c0_i32_0 = arith.constant 0 : i32
    %c0_i32_1 = arith.constant 0 : i32
    return %c0_i32, %c0_i32_0 : i32, i32
  }
  func.func @transform_7(%arg0: i32) -> (i32, i32, i32) {
    %c0_i32 = arith.constant 0 : i32
    %c0_i32_0 = arith.constant 0 : i32
    %c0_i32_1 = arith.constant 0 : i32
    return %arg0, %c0_i32, %c0_i32_0 : i32, i32, i32
  }
}

</mosaic_0001>

<bundles_post_ra>
// kernel: multiblock_pallas.8
= control target key start
LH: loop header
LB: loop body
LE: loop exit
PB: predicated region body
PF: predicated region fallthrough
CT: control target
= control target key end

     0   :  { %s1088_s12 = smov 0   ;;  %s1191_s0 = inlined_call_operand.vmem [shape: f32[2,8,326], index: 0, kind: input, shape index: {}]   ;;  %s1192_s1 = inlined_call_operand.vmem [shape: f32[9,8,8], index: 1, kind: input, shape index: {}]   ;;  %s1193_s2 = inlined_call_operand.vmem [shape: f32[8,1], index: 2, kind: input, shape index: {}]   ;;  %s1194_s3 = inlined_call_operand.vmem [shape: f32[2,8,288], index: 3, kind: output, shape index: {}]  }
   0x1 LB: > { %s947_s13 = sadd.s32 4294967295, %s1057_s12   ;;  %p951_p0 = scmp.ge.s32.totalorder %s1057_s12, 1  ;;  %s1057_s12 = sphi %s1088_s12, %s13_s12  }
   0x2   : > { %p137_p1 = scmp.lt.s32.totalorder %s1057_s12, 3 }
   0x4   : > { %p138_p2 = pnand %p951_p0, %p137_p1 }
   0x5   : > { %p161_p3 = scmp.lt.s32.totalorder (!%p138_p2), %s947_s13, 1  ;;  %s1059_s18 = smov (!%p138_p2), 126  }
   0x6   : > { %141 = sbr.rel (%p138_p2) target bundleno = 324 (0x144), region = 32  ;;  %s1060_s19 = smov (!%p138_p2), 127  }
   0x7   : > { %s1061_s20 = smov (!%p138_p2), 110   ;;  %s1062_s21 = smov (!%p138_p2), 109  }
   0x8   : > { %s1063_s22 = smov (!%p138_p2), 108   ;;  %s1064_s23 = smov (!%p138_p2), 92  }
   0x9   : > { %s1065_s24 = smov (!%p138_p2), 91   ;;  %s1066_s25 = smov (!%p138_p2), 90  }
   0xb   : > { %s1196_s13 = smov (!%p161_p3, %s947_s13), 1  ;;  %vm192_vm0 = vcmask 64512   ;;  %v174_v6 = vld [vmem:[%s1192_s1] sm:$0xff]  ;;  %vm327_vm1 = vcmask 1031168   ;;  %vm407_vm2 = vcmask 900096   ;;  %v954_v16 = vld [vmem:[%s1192_s1 + $0x8] sm:$0xff] }
   0xc   : > { %s991_s14 = smul.u32 24, %s1196_s13  ;;  %vm186_vm3 = vcmask 1039360   ;;  %vm567_vm4 = vcmask 883712   ;;  %v961_v28 = vld [vmem:[%s1192_s1 + $0x10] sm:$0xff]  ;;  %vm487_vm5 = vcmask 891904   ;;  %v965_v35 = vld [vmem:[%s1192_s1 + $0x18] sm:$0xff] }
   0xd   : > { %vm647_vm6 = vcmask 752640   ;;  %v969_v45 = vld [vmem:[%s1192_s1 + $0x20] sm:$0xff]  ;;  %v973_v47 = vld [vmem:[%s1192_s1 + $0x28] sm:$0xff]  ;;  %v1067_v50 = vmov 0   ;;  %vm727_vm7 = vcmask 744448   ;;  %v977_v56 = vld [vmem:[%s1192_s1 + $0x30] sm:$0xff] }
   0xe   : > { %s165_s17 = scalar_lea.vmem %s1191_s0, %s991_s14  ;;  %v879_v48 = vld [vmem:[%s1193_s2] sm:$0xff]  ;;  %1049 = vset.pattern.permute.xlu1 %v1067_v50  ;;  %1050 = vset.pattern.permute.xlu0 %v1067_v50  ;;  %vm807_vm8 = vcmask 736256   ;;  %v981_v63 = vld [vmem:[%s1192_s1 + $0x38] sm:$0xff]  ;;  %vm890_vm9 = vcmask 261120  }
   0xf   : > { %v171_v0 = vld [vmem:[%s165_s17] sm:$0xff]  ;;  %v1104_v1 = vld [vmem:[%s165_s17 + $0x8] sm:$0xff]  ;;  %v1106_v2 = vld [vmem:[%s165_s17 + $0x10] sm:$0xff] }
  0x10   : > { %v1014_v3 = vpack.i.bf16 %v1104_v1, %v171_v0  ;;  %v1009_v4 = vpack.i.bf16 %v171_v0, %v1106_v2  ;;  %v1019_v5 = vpack.i.bf16 %v1106_v2, %v1104_v1  ;;  %274 = vmatpush.msra.mxu3 %v171_v0 }
  0x11   : > { %958 = vmatmul.msk.f32.vlgmr.msra.gmra.mxu3 %vm192_vm0, %v174_v6 }
  0x12   : > { %1015 = vrot.lane.b32.xlu1 %v1014_v3, %s1059_s18  ;;  %1010 = vrot.lane.b32.xlu0 %v1009_v4, %s1060_s19 }
  0x13   : > { %1020 = vrot.lane.b32.xlu2 %v1019_v5, %s1061_s20 }
  0x1a   : > { %325 = vrot.lane.b32.xlu1 %v1106_v2, %s1059_s18  ;;  %182 = vrot.lane.b32.xlu0 %v1104_v1, %s1060_s19 }
  0x1b   : > { %401 = vrot.lane.b32.xlu2 %v171_v0, %s1061_s20 }
  0x22   : > { %483 = vrot.lane.b32.xlu1 %v1104_v1, %s1062_s21  ;;  %1025 = vrot.lane.b32.xlu0 %v1009_v4, %s1062_s21 }
  0x23   : > { %1030 = vrot.lane.b32.xlu2 %v1014_v3, %s1063_s22 }
  0x2a   : > { %565 = vrot.lane.b32.xlu1 %v1106_v2, %s1063_s22  ;;  %1035 = vrot.lane.b32.xlu0 %v1014_v3, %s1064_s23 }
  0x2b   : > { %645 = vrot.lane.b32.xlu2 %v1106_v2, %s1064_s23 }
  0x32   : > { %1040 = vrot.lane.b32.xlu0 %v1019_v5, %s1065_s24  ;;  %721 = vrot.lane.b32.xlu1 %v171_v0, %s1065_s24  ;;  %v985_v0 = vld [vmem:[%s1192_s1 + $0x40] sm:$0xff]  ;;  %s170_s24 = scalar_lea.vmem %s1194_s3, %s991_s14 }
  0x33   : > { %1045 = vrot.lane.b32.xlu2 %v1009_v4, %s1066_s25 }
  0x3a   : > { %803 = vrot.lane.b32.xlu0 %v1104_v1, %s1066_s25  ;;  %882 = vperm.xlu1 %1049, %v879_v48  }
  0x6d   : > { %v1021_v7 = vpop.permute.xlu2 %1020 }
  0x6e   : > { %v1023_v9 = vunpack.i.h.bf16 %v1021_v7  ;;  %v1022_v10 = vunpack.i.l.bf16 %v1021_v7 }
  0x70   : > { %v409_v18 = vsel %vm407_vm2, %v1022_v10, %v1023_v9 }
  0x75   : > { %v402_v8 = vpop.permute.xlu2 %401 }
  0x76   : > { %v408_v29 = vsel %vm407_vm2, %v402_v8, %v1022_v10 }
  0x7d   : > { %v1031_v19 = vpop.permute.xlu2 %1030 }
  0x7e   : > { %v1033_v23 = vunpack.i.h.bf16 %v1031_v19  ;;  %v1032_v27 = vunpack.i.l.bf16 %v1031_v19 }
  0x80   : > { %v568_v30 = vsel %vm567_vm4, %v1032_v27, %v1033_v23 }
  0x84   : > { %v1016_v11 = vpop.permute.xlu1 %1015  ;;  %v1011_v12 = vpop.permute.xlu0 %1010 }
  0x85   : > { %v1018_v13 = vunpack.i.h.bf16 %v1016_v11  ;;  %v1017_v14 = vunpack.i.l.bf16 %v1016_v11  ;;  %v1012_v15 = vunpack.i.l.bf16 %v1011_v12  ;;  %v1013_v20 = vunpack.i.h.bf16 %v1011_v12  ;;  %v646_v38 = vpop.permute.xlu2 %645 }
  0x87   : > { %251 = vmatpush.msra.mxu2 %v1012_v15  ;;  %v328_v17 = vsel %vm327_vm1, %v1017_v14, %v1018_v13 }
  0x88   : > { %957 = vmatmul.msk.f32.vlgmr.msra.gmra.mxu2 %vm192_vm0, %v954_v16 }
  0x89   : > { %351 = vmatpush.msrb.mxu2 %v328_v17 }
  0x8b   : > { %451 = vmatpush.msra.mxu2 %v409_v18 }
  0x8c   : > { %v326_v21 = vpop.permute.xlu1 %325  ;;  %v183_v22 = vpop.permute.xlu0 %182 }
  0x8d   : > { %v187_v24 = vsel %vm186_vm3, %v1013_v20, %v183_v22  ;;  %v188_v25 = vsel %vm186_vm3, %v183_v22, %v1012_v15  ;;  %v329_v26 = vsel %vm327_vm1, %v1018_v13, %v326_v21  ;;  %v1046_v49 = vpop.permute.xlu2 %1045 }
  0x8e   : > { %211 = vmatpush.msra.mxu0 %v187_v24  ;;  %231 = vmatpush.msra.mxu1 %v188_v25  ;;  %v1047_v58 = vunpack.i.l.bf16 %v1046_v49  ;;  %v1048_v59 = vunpack.i.h.bf16 %v1046_v49 }
  0x8f   : > { %371 = vmatpush.msrb.mxu3 %v329_v26  ;;  %955 = vmatmul.msk.f32.vlgmr.msra.gmra.mxu0 %vm192_vm0, %v954_v16 }
  0x90   : > { %956 = vmatmul.msk.f32.vlgmr.msra.gmra.mxu1 %vm192_vm0, %v954_v16  ;;  %294 = vmatpush.msrb.mxu0 %v1104_v1 }
  0x91   : > { %314 = vmatpush.msrb.mxu1 %v1106_v2  ;;  %471 = vmatpush.msra.mxu3 %v1023_v9 }
  0x92   : > { %962 = vmatmul.msk.f32.vlgmr.msrb.gmra.mxu2 %vm192_vm0, %v961_v28  ;;  %391 = vmatpush.msra.mxu0 %v326_v21 }
  0x93   : > { %431 = vmatpush.msra.mxu1 %v408_v29  ;;  %963 = vmatmul.msk.f32.vlgmr.msrb.gmra.mxu3 %vm192_vm0, %v961_v28 }
  0x94   : > { %v484_v31 = vpop.permute.xlu1 %483  ;;  %v1026_v32 = vpop.permute.xlu0 %1025  ;;  %591 = vmatpush.msrb.mxu3 %v568_v30 }
  0x95   : > { %v1028_v33 = vunpack.i.h.bf16 %v1026_v32  ;;  %v1027_v34 = vunpack.i.l.bf16 %v1026_v32  ;;  %v276_v4 = vpop.f32.mrf.mxu3 }
  0x97   : > { %959 = vmatmul.msk.f32.vlgmr.msrb.gmra.mxu0 %vm192_vm0, %v174_v6  ;;  %551 = vmatpush.msrb.mxu2 %v1027_v34  ;;  %v488_v36 = vsel %vm487_vm5, %v1028_v33, %v484_v31  ;;  %v489_v37 = vsel %vm487_vm5, %v484_v31, %v1027_v34 }
  0x98   : > { %960 = vmatmul.msk.f32.vlgmr.msrb.gmra.mxu1 %vm192_vm0, %v174_v6  ;;  %511 = vmatpush.msrb.mxu0 %v488_v36 }
  0x99   : > { %531 = vmatpush.msrb.mxu1 %v489_v37 }
  0x9a   : > { %967 = vmatmul.msk.f32.vlgmr.msra.gmra.mxu2 %vm192_vm0, %v965_v35 }
  0x9b   : > { %968 = vmatmul.msk.f32.vlgmr.msra.gmra.mxu3 %vm192_vm0, %v965_v35 }
  0x9c   : > { %v566_v39 = vpop.permute.xlu1 %565  ;;  %v1036_v40 = vpop.permute.xlu0 %1035 }
  0x9d   : > { %v569_v41 = vsel %vm567_vm4, %v1033_v23, %v566_v39  ;;  %v1038_v42 = vunpack.i.h.bf16 %v1036_v40  ;;  %v1037_v43 = vunpack.i.l.bf16 %v1036_v40 }
  0x9f   : > { %v649_v44 = vsel %vm647_vm6, %v1038_v42, %v646_v38  ;;  %964 = vmatmul.msk.f32.vlgmr.msra.gmra.mxu0 %vm192_vm0, %v961_v28  ;;  %v648_v46 = vsel %vm647_vm6, %v1037_v43, %v1038_v42 }
  0xa0   : > { %966 = vmatmul.msk.f32.vlgmr.msra.gmra.mxu1 %vm192_vm0, %v965_v35  ;;  %611 = vmatpush.msra.mxu0 %v569_v41 }
  0xa1   : > { %671 = vmatpush.msra.mxu2 %v648_v46  ;;  %691 = vmatpush.msra.mxu3 %v649_v44 }
  0xa2   : > { %972 = vmatmul.msk.f32.vlgmr.msrb.gmra.mxu2 %vm192_vm0, %v969_v45  ;;  %631 = vmatpush.msra.mxu1 %v566_v39 }
  0xa3   : > { %974 = vmatmul.msk.f32.vlgmr.msrb.gmra.mxu3 %vm192_vm0, %v973_v47 }
  0xa4   : > { %v1041_v51 = vpop.permute.xlu0 %1040  ;;  %v722_v52 = vpop.permute.xlu1 %721 }
  0xa5   : > { %v1043_v53 = vunpack.i.h.bf16 %v1041_v51  ;;  %v1042_v54 = vunpack.i.l.bf16 %v1041_v51 }
  0xa7   : > { %v728_v55 = vsel %vm727_vm7, %v722_v52, %v1042_v54  ;;  %970 = vmatmul.msk.f32.vlgmr.msrb.gmra.mxu0 %vm192_vm0, %v969_v45  ;;  %791 = vmatpush.msrb.mxu3 %v1043_v53  ;;  %v729_v57 = vsel %vm727_vm7, %v1042_v54, %v1043_v53 }
  0xa8   : > { %971 = vmatmul.msk.f32.vlgmr.msrb.gmra.mxu1 %vm192_vm0, %v969_v45  ;;  %711 = vmatpush.msrb.mxu0 %v646_v38 }
  0xa9   : > { %751 = vmatpush.msrb.mxu1 %v728_v55  ;;  %771 = vmatpush.msrb.mxu2 %v729_v57 }
  0xaa   : > { %978 = vmatmul.msk.f32.vlgmr.msra.gmra.mxu2 %vm192_vm0, %v977_v56 }
  0xab   : > { %979 = vmatmul.msk.f32.vlgmr.msra.gmra.mxu3 %vm192_vm0, %v977_v56  ;;  %871 = vmatpush.msra.mxu2 %v1047_v58 }
  0xac   : > { %v804_v60 = vpop.permute.xlu0 %803 }
  0xad   : > { %v808_v61 = vsel %vm807_vm8, %v1048_v59, %v804_v60  ;;  %v809_v62 = vsel %vm807_vm8, %v804_v60, %v1047_v58 }
  0xaf   : > { %975 = vmatmul.msk.f32.vlgmr.msra.gmra.mxu0 %vm192_vm0, %v973_v47 }
  0xb0   : > { %976 = vmatmul.msk.f32.vlgmr.msra.gmra.mxu1 %vm192_vm0, %v973_v47  ;;  %831 = vmatpush.msra.mxu0 %v808_v61  ;;  %v883_v47 = vpop.permute.xlu1 %882 }
  0xb1   : > { %851 = vmatpush.msra.mxu1 %v809_v62 }
  0xb2   : > { %983 = vmatmul.msk.f32.vlgmr.msrb.gmra.mxu2 %vm192_vm0, %v981_v63 }
  0xb3   : > { %984 = vmatmul.msk.f32.vlgmr.msrb.gmra.mxu3 %vm192_vm0, %v981_v63 }
  0xb7   : > { %980 = vmatmul.msk.f32.vlgmr.msrb.gmra.mxu0 %vm192_vm0, %v977_v56 }
  0xb8   : > { %982 = vmatmul.msk.f32.vlgmr.msrb.gmra.mxu1 %vm192_vm0, %v981_v63 }
  0xba   : > { %988 = vmatmul.msk.f32.vlgmr.msra.gmra.mxu2 %vm192_vm0, %v985_v0 }
  0xbf   : > { %986 = vmatmul.msk.f32.vlgmr.msra.gmra.mxu0 %vm192_vm0, %v985_v0 }
  0xc0   : > { %987 = vmatmul.msk.f32.vlgmr.msra.gmra.mxu1 %vm192_vm0, %v985_v0 }
 0x10b   : > { %v253_v1 = vpop.f32.mrf.mxu2 }
 0x10c   : > { %v213_v2 = vpop.f32.mrf.mxu0 }
 0x10d   : > { %v233_v3 = vpop.f32.mrf.mxu1  ;;  %v277_v20 = vadd.f32 %v276_v4, %v213_v2 }
 0x114   : > { %v296_v5 = vpop.f32.mrf.mxu0 }
 0x115   : > { %v353_v6 = vpop.f32.mrf.mxu2  ;;  %v316_v7 = vpop.f32.mrf.mxu1  ;;  %v297_v17 = vadd.f32 %v296_v5, %v233_v3 }
 0x116   : > { %v373_v8 = vpop.f32.mrf.mxu3  ;;  %v317_v18 = vadd.f32 %v316_v7, %v253_v1  ;;  %v396_v24 = vadd.f32 %v353_v6, %v277_v20 }
 0x117   : > { %v397_v26 = vadd.f32 %v373_v8, %v297_v17 }
 0x11c   : > { %v393_v9 = vpop.f32.mrf.mxu0 }
 0x11d   : > { %v453_v10 = vpop.f32.mrf.mxu2  ;;  %v433_v11 = vpop.f32.mrf.mxu1  ;;  %v398_v23 = vadd.f32 %v393_v9, %v317_v18 }
 0x11e   : > { %v473_v12 = vpop.f32.mrf.mxu3  ;;  %v476_v27 = vadd.f32 %v433_v11, %v396_v24  ;;  %v477_v28 = vadd.f32 %v453_v10, %v397_v26 }
 0x11f   : > { %v478_v29 = vadd.f32 %v473_v12, %v398_v23 }
 0x124   : > { %v513_v13 = vpop.f32.mrf.mxu0 }
 0x125   : > { %v553_v14 = vpop.f32.mrf.mxu2  ;;  %v533_v15 = vpop.f32.mrf.mxu1  ;;  %v556_v30 = vadd.f32 %v513_v13, %v476_v27 }
 0x126   : > { %v593_v16 = vpop.f32.mrf.mxu3  ;;  %v558_v31 = vadd.f32 %v553_v14, %v478_v29  ;;  %v557_v32 = vadd.f32 %v533_v15, %v477_v28 }
 0x127   : > { %v636_v38 = vadd.f32 %v593_v16, %v556_v30 }
 0x12c   : > { %v613_v19 = vpop.f32.mrf.mxu0 }
 0x12d   : > { %v673_v21 = vpop.f32.mrf.mxu2  ;;  %v633_v22 = vpop.f32.mrf.mxu1  ;;  %v637_v36 = vadd.f32 %v613_v19, %v557_v32 }
 0x12e   : > { %v693_v25 = vpop.f32.mrf.mxu3  ;;  %v638_v37 = vadd.f32 %v633_v22, %v558_v31  ;;  %v716_v40 = vadd.f32 %v673_v21, %v636_v38 }
 0x12f   : > { %v717_v42 = vadd.f32 %v693_v25, %v637_v36 }
 0x134   : > { %v713_v33 = vpop.f32.mrf.mxu0 }
 0x135   : > { %v773_v34 = vpop.f32.mrf.mxu2  ;;  %v753_v35 = vpop.f32.mrf.mxu1  ;;  %v718_v39 = vadd.f32 %v713_v33, %v638_v37 }
 0x136   : > { %v793_v41 = vpop.f32.mrf.mxu3  ;;  %v796_v43 = vadd.f32 %v753_v35, %v716_v40  ;;  %v797_v44 = vadd.f32 %v773_v34, %v717_v42 }
 0x137   : > { %v798_v45 = vadd.f32 %v793_v41, %v718_v39 }
 0x13c   : > { %v833_v46 = vpop.f32.mrf.mxu0 }
 0x13d   : > { %v873_v48 = vpop.f32.mrf.mxu2  ;;  %v876_v49 = vadd.f32 %v833_v46, %v796_v43  ;;  %v853_v50 = vpop.f32.mrf.mxu1 }
 0x13e   : > { %v878_v51 = vadd.f32 %v873_v48, %v798_v45  ;;  %v877_v52 = vadd.f32 %v853_v50, %v797_v44 }
 0x13f   : > { %v885_v53 = vadd.f32 %v883_v47, %v876_v49 }
 0x140   : > { %v886_v54 = vadd.f32 %v883_v47, %v877_v52  ;;  %v887_v55 = vadd.f32 %v883_v47, %v878_v51 }
 0x141   : > { %888 = vst [vmem:[%s170_s24] sm:$0xff] %v885_v53 }
 0x142   : > { %889 = vst [vmem:[%s170_s24 + $0x8] sm:$0xff] %v886_v54 }
 0x143   : > { %891 = vst.msk [vmem:[%s170_s24 + $0x10] sm:$0xff] %vm890_vm9, %v887_v55 }
 0x144 PF: > { %s13_s12 = sadd.s32 1, %s1057_s12  }
 0x145   : > { %p10_p4 = scmp.ge.s32.totalorder %s13_s12, 4  }
 0x147   :  { %12 = sbr.rel (!%p10_p4) target bundleno = 1 (0x1), region = 70 }

// kernel: multiblock_pallas.7
= control target key start
LH: loop header
LB: loop body
LE: loop exit
PB: predicated region body
PF: predicated region fallthrough
CT: control target
= control target key end

     0   :  { %s1195_s12 = smov 0   ;;  %s1335_s0 = inlined_call_operand.vmem [shape: f32[2,4,326], index: 0, kind: input, shape index: {}]   ;;  %s1336_s1 = inlined_call_operand.vmem [shape: f32[9,8,4], index: 1, kind: input, shape index: {}]   ;;  %s1337_s2 = inlined_call_operand.vmem [shape: f32[8,1], index: 2, kind: input, shape index: {}]   ;;  %s1338_s3 = inlined_call_operand.vmem [shape: f32[2,8,288], index: 3, kind: output, shape index: {}]  }
   0x1 LB: > { %s1067_s13 = sadd.s32 4294967295, %s1164_s12   ;;  %p1071_p0 = scmp.ge.s32.totalorder %s1164_s12, 1  ;;  %s1164_s12 = sphi %s1195_s12, %s13_s12  }
   0x2   : > { %p137_p1 = scmp.lt.s32.totalorder %s1164_s12, 3 }
   0x4   : > { %p138_p2 = pnand %p1071_p0, %p137_p1 }
   0x5   : > { %p161_p3 = scmp.lt.s32.totalorder (!%p138_p2), %s1067_s13, 1  ;;  %s1166_s18 = smov (!%p138_p2), 127  }
   0x6   : > { %141 = sbr.rel (%p138_p2) target bundleno = 348 (0x15c), region = 32  ;;  %s1167_s19 = smov (!%p138_p2), 126  }
   0x7   : > { %s1168_s20 = smov (!%p138_p2), 110   ;;  %s1169_s21 = smov (!%p138_p2), 109  }
   0x8   : > { %s1170_s22 = smov (!%p138_p2), 108   ;;  %s1171_s23 = smov (!%p138_p2), 92  }
   0x9   : > { %s1172_s24 = smov (!%p138_p2), 91   ;;  %s1173_s25 = smov (!%p138_p2), 90  }
   0xb   : > { %s1340_s13 = smov (!%p161_p3, %s1067_s13), 1  ;;  %vm197_vm0 = vcmask 1043456   ;;  %vm193_vm1 = vcmask 31744   ;;  %v173_v36 = vld [vmem:[%s1336_s1] sm:$0xff]  ;;  %vm190_vm2 = vcmask 1039360   ;;  %v1074_v38 = vld [vmem:[%s1336_s1 + $0x8] sm:$0xff] }
   0xc   : > { %s1138_s14 = smul.u32 12, %s1340_s13  ;;  %vm357_vm3 = vcmask 1031168   ;;  %v1087_v43 = vld [vmem:[%s1336_s1 + $0x10] sm:$0xff]  ;;  %vm450_vm4 = vcmask 900096   ;;  %v1094_v53 = vld [vmem:[%s1336_s1 + $0x18] sm:$0xff]  ;;  %vm543_vm5 = vcmask 891904  }
   0xd   : > { %v1101_v59 = vld [vmem:[%s1336_s1 + $0x20] sm:$0xff]  ;;  %v1174_v63 = vmov 0   ;;  %vm636_vm6 = vcmask 883712   ;;  %vm729_vm7 = vcmask 752640   ;;  %vm822_vm8 = vcmask 744448  }
   0xe   : > { %s1209_s17 = scalar_lea.vmem %s1335_s0, %s1138_s14  ;;  %v990_v62 = vld [vmem:[%s1337_s2] sm:$0xff]  ;;  %1157 = vset.pattern.permute.xlu0 %v1174_v63  ;;  %vm915_vm9 = vcmask 736256   ;;  %vm1010_vm13 = vcmask 261120  }
   0xf   : > { %v172_v0 = vld [vmem:[%s1209_s17 + $0x8] sm:$0xf]  ;;  %v1213_v1 = vld [vmem:[%s1209_s17] sm:$0xff] }
  0x10   : > { %180 = vst [vmem:[#allocation1 + $0x10] ss:$2 sm:$0xff] %v172_v0  ;;  %v340_v5 = vld [vmem:[%s1209_s17 + $0x8] sm:$0xf] }
  0x11   : > { %178 = vst [vmem:[#allocation1] ss:$2 sm:$0xff] %v1213_v1  ;;  %v433_v9 = vld [vmem:[%s1209_s17 + $0x8] sm:$0xf] }
  0x12   : > { %v526_v13 = vld [vmem:[%s1209_s17 + $0x8] sm:$0xf] }
  0x13   : > { %v619_v17 = vld [vmem:[%s1209_s17 + $0x8] sm:$0xf] }
  0x14   : > { %v712_v21 = vld [vmem:[%s1209_s17 + $0x8] sm:$0xf] }
  0x15   : > { %v805_v25 = vld [vmem:[%s1209_s17 + $0x8] sm:$0xf] }
  0x16   : > { %v898_v29 = vld [vmem:[%s1209_s17 + $0x8] sm:$0xf] }
  0x17   : > { %v183_v2 = vld.sshfl [vmem:[#allocation1 + $0x10] sm:$0xff pattern:$0x75316420] }
  0x18   : > { %188 = vrot.lane.b32.xlu0 %v183_v2, %s1166_s18  ;;  %266 = vst [vmem:[#allocation1 + $0x10] ss:$2 sm:$0xff] %v172_v0  ;;  %v182_v3 = vld.sshfl [vmem:[#allocation1 + $0x8] sm:$0xff pattern:$0x75316420] }
  0x19   : > { %186 = vrot.lane.b32.xlu1 %v182_v3, %s1166_s18  ;;  %v181_v4 = vld.sshfl [vmem:[#allocation1] sm:$0xff pattern:$0x75316420]  ;;  %v1108_v2 = vld [vmem:[%s1336_s1 + $0x28] sm:$0xff] }
  0x1a   : > { %264 = vst [vmem:[#allocation1] ss:$2 sm:$0xff] %v1213_v1 }
  0x1f   : > { %v1218_v6 = vld.sshfl [vmem:[#allocation1 + $0x10] sm:$0xff pattern:$0x75316420] }
  0x20   : > { %184 = vrot.lane.b32.xlu0 %v181_v4, %s1166_s18  ;;  %347 = vst [vmem:[#allocation1 + $0x10] ss:$2 sm:$0xff] %v340_v5 }
  0x21   : > { %v1220_v7 = vld.sshfl [vmem:[#allocation1] sm:$0xff pattern:$0x75316420]  ;;  %v1222_v8 = vld.sshfl [vmem:[#allocation1 + $0x8] sm:$0xff pattern:$0x75316420] }
  0x22   : > { %345 = vst [vmem:[#allocation1] ss:$2 sm:$0xff] %v1213_v1  ;;  %1081 = vmatpush.msk.msra.mxu3 %vm197_vm0, %v1220_v7 }
  0x23   : > { %1082 = vmatmul.msk.f32.vlgmr.msra.gmra.mxu3 %vm193_vm1, %v173_v36 }
  0x27   : > { %v350_v10 = vld.sshfl [vmem:[#allocation1 + $0x10] sm:$0xff pattern:$0x75316420] }
  0x28   : > { %440 = vst [vmem:[#allocation1 + $0x10] ss:$2 sm:$0xff] %v433_v9 }
  0x29   : > { %v348_v11 = vld.sshfl [vmem:[#allocation1] sm:$0xff pattern:$0x75316420]  ;;  %v349_v12 = vld.sshfl [vmem:[#allocation1 + $0x8] sm:$0xff pattern:$0x75316420] }
  0x2a   : > { %351 = vrot.lane.b32.xlu1 %v348_v11, %s1167_s19  ;;  %438 = vst [vmem:[#allocation1] ss:$2 sm:$0xff] %v1213_v1  ;;  %353 = vrot.lane.b32.xlu2 %v349_v12, %s1167_s19 }
  0x2f   : > { %v443_v14 = vld.sshfl [vmem:[#allocation1 + $0x10] sm:$0xff pattern:$0x75316420] }
  0x30   : > { %533 = vst [vmem:[#allocation1 + $0x10] ss:$2 sm:$0xff] %v526_v13 }
  0x31   : > { %v442_v15 = vld.sshfl [vmem:[#allocation1 + $0x8] sm:$0xff pattern:$0x75316420]  ;;  %v441_v16 = vld.sshfl [vmem:[#allocation1] sm:$0xff pattern:$0x75316420] }
  0x32   : > { %448 = vrot.lane.b32.xlu1 %v443_v14, %s1168_s20  ;;  %446 = vrot.lane.b32.xlu0 %v442_v15, %s1168_s20  ;;  %531 = vst [vmem:[#allocation1] ss:$2 sm:$0xff] %v1213_v1  ;;  %v1122_v14 = vld [vmem:[%s1336_s1 + $0x38] sm:$0xff] }
  0x33   : > { %355 = vrot.lane.b32.xlu2 %v350_v10, %s1167_s19  ;;  %v1115_v10 = vld [vmem:[%s1336_s1 + $0x30] sm:$0xff] }
  0x37   : > { %v536_v18 = vld.sshfl [vmem:[#allocation1 + $0x10] sm:$0xff pattern:$0x75316420] }
  0x38   : > { %626 = vst [vmem:[#allocation1 + $0x10] ss:$2 sm:$0xff] %v619_v17 }
  0x39   : > { %v535_v19 = vld.sshfl [vmem:[#allocation1 + $0x8] sm:$0xff pattern:$0x75316420]  ;;  %v534_v20 = vld.sshfl [vmem:[#allocation1] sm:$0xff pattern:$0x75316420] }
  0x3a   : > { %541 = vrot.lane.b32.xlu0 %v536_v18, %s1169_s21  ;;  %537 = vrot.lane.b32.xlu1 %v534_v20, %s1169_s21  ;;  %624 = vst [vmem:[#allocation1] ss:$2 sm:$0xff] %v1213_v1  ;;  %v1129_v20 = vld [vmem:[%s1336_s1 + $0x40] sm:$0xff] }
  0x3b   : > { %444 = vrot.lane.b32.xlu2 %v441_v16, %s1168_s20 }
  0x3f   : > { %v629_v22 = vld.sshfl [vmem:[#allocation1 + $0x10] sm:$0xff pattern:$0x75316420] }
  0x40   : > { %719 = vst [vmem:[#allocation1 + $0x10] ss:$2 sm:$0xff] %v712_v21 }
  0x41   : > { %v628_v23 = vld.sshfl [vmem:[#allocation1 + $0x8] sm:$0xff pattern:$0x75316420]  ;;  %v627_v24 = vld.sshfl [vmem:[#allocation1] sm:$0xff pattern:$0x75316420] }
  0x42   : > { %632 = vrot.lane.b32.xlu1 %v628_v23, %s1170_s22  ;;  %630 = vrot.lane.b32.xlu0 %v627_v24, %s1170_s22  ;;  %717 = vst [vmem:[#allocation1] ss:$2 sm:$0xff] %v1213_v1 }
  0x43   : > { %539 = vrot.lane.b32.xlu2 %v535_v19, %s1169_s21  ;;  %s1139_s21 = smul.u32 24, %s1340_s13 }
  0x47   : > { %v722_v26 = vld.sshfl [vmem:[#allocation1 + $0x10] sm:$0xff pattern:$0x75316420] }
  0x48   : > { %812 = vst [vmem:[#allocation1 + $0x10] ss:$2 sm:$0xff] %v805_v25 }
  0x49   : > { %v721_v27 = vld.sshfl [vmem:[#allocation1 + $0x8] sm:$0xff pattern:$0x75316420]  ;;  %v720_v28 = vld.sshfl [vmem:[#allocation1] sm:$0xff pattern:$0x75316420] }
  0x4a   : > { %634 = vrot.lane.b32.xlu1 %v629_v22, %s1170_s22  ;;  %725 = vrot.lane.b32.xlu0 %v721_v27, %s1171_s23  ;;  %810 = vst [vmem:[#allocation1] ss:$2 sm:$0xff] %v1213_v1 }
  0x4b   : > { %723 = vrot.lane.b32.xlu2 %v720_v28, %s1171_s23 }
  0x4f   : > { %v815_v30 = vld.sshfl [vmem:[#allocation1 + $0x10] sm:$0xff pattern:$0x75316420] }
  0x50   : > { %905 = vst [vmem:[#allocation1 + $0x10] ss:$2 sm:$0xff] %v898_v29 }
  0x51   : > { %v814_v31 = vld.sshfl [vmem:[#allocation1 + $0x8] sm:$0xff pattern:$0x75316420]  ;;  %v813_v32 = vld.sshfl [vmem:[#allocation1] sm:$0xff pattern:$0x75316420] }
  0x52   : > { %820 = vrot.lane.b32.xlu1 %v815_v30, %s1172_s24  ;;  %818 = vrot.lane.b32.xlu0 %v814_v31, %s1172_s24  ;;  %903 = vst [vmem:[#allocation1] ss:$2 sm:$0xff] %v1213_v1 }
  0x53   : > { %727 = vrot.lane.b32.xlu2 %v722_v26, %s1171_s23 }
  0x57   : > { %v908_v33 = vld.sshfl [vmem:[#allocation1 + $0x10] sm:$0xff pattern:$0x75316420] }
  0x59   : > { %v906_v34 = vld.sshfl [vmem:[#allocation1] sm:$0xff pattern:$0x75316420]  ;;  %v907_v35 = vld.sshfl [vmem:[#allocation1 + $0x8] sm:$0xff pattern:$0x75316420] }
  0x5a   : > { %913 = vrot.lane.b32.xlu0 %v908_v33, %s1173_s25  ;;  %909 = vrot.lane.b32.xlu1 %v906_v34, %s1173_s25 }
  0x5b   : > { %816 = vrot.lane.b32.xlu2 %v813_v32, %s1172_s24  ;;  %s170_s24 = scalar_lea.vmem %s1338_s3, %s1139_s21 }
  0x62   : > { %993 = vperm.xlu0 %1157, %v990_v62  }
  0x63   : > { %911 = vrot.lane.b32.xlu2 %v907_v35, %s1173_s25 }
  0x84   : > { %v354_v37 = vpop.permute.xlu2 %353 }
  0x8a   : > { %v189_v39 = vpop.permute.xlu0 %188 }
  0x8b   : > { %v187_v40 = vpop.permute.xlu1 %186  ;;  %1079 = vmatpush.msk.msra.mxu2 %vm197_vm0, %v189_v39 }
  0x8c   : > { %v192_v41 = vsel %vm190_vm2, %v187_v40, %v189_v39  ;;  %1080 = vmatmul.msk.f32.vlgmr.msra.gmra.mxu2 %vm193_vm1, %v1074_v38 }
  0x8d   : > { %1077 = vmatpush.msk.msra.mxu1 %vm197_vm0, %v192_v41  ;;  %v356_v42 = vpop.permute.xlu2 %355 }
  0x8e   : > { %1078 = vmatmul.msk.f32.vlgmr.msra.gmra.mxu1 %vm193_vm1, %v1074_v38  ;;  %v359_v44 = vsel %vm357_vm3, %v354_v37, %v356_v42 }
  0x8f   : > { %1090 = vmatpush.msk.msrb.mxu3 %vm197_vm0, %v359_v44  ;;  %1085 = vmatpush.msk.msrb.mxu1 %vm197_vm0, %v1218_v6 }
  0x90   : > { %1091 = vmatmul.msk.f32.vlgmr.msrb.gmra.mxu3 %vm193_vm1, %v1087_v43 }
  0x92   : > { %v185_v45 = vpop.permute.xlu0 %184 }
  0x93   : > { %v191_v46 = vsel %vm190_vm2, %v185_v45, %v187_v40 }
  0x94   : > { %1075 = vmatpush.msk.msra.mxu0 %vm197_vm0, %v191_v46 }
  0x95   : > { %1076 = vmatmul.msk.f32.vlgmr.msra.gmra.mxu0 %vm193_vm1, %v1074_v38  ;;  %v445_v47 = vpop.permute.xlu2 %444 }
  0x96   : > { %1083 = vmatpush.msk.msrb.mxu0 %vm197_vm0, %v1222_v8  ;;  %1086 = vmatmul.msk.f32.vlgmr.msrb.gmra.mxu1 %vm193_vm1, %v173_v36 }
  0x98   : > { %1092 = vmatpush.msk.msra.mxu0 %vm197_vm0, %v356_v42 }
  0x9c   : > { %v352_v48 = vpop.permute.xlu1 %351 }
  0x9d   : > { %v358_v49 = vsel %vm357_vm3, %v352_v48, %v354_v37  ;;  %1084 = vmatmul.msk.f32.vlgmr.msrb.gmra.mxu0 %vm193_vm1, %v173_v36  ;;  %v540_v50 = vpop.permute.xlu2 %539 }
  0x9e   : > { %1088 = vmatpush.msk.msrb.mxu2 %vm197_vm0, %v358_v49 }
  0x9f   : > { %1089 = vmatmul.msk.f32.vlgmr.msrb.gmra.mxu2 %vm193_vm1, %v1087_v43 }
  0xa4   : > { %v449_v51 = vpop.permute.xlu1 %448  ;;  %v447_v52 = vpop.permute.xlu0 %446 }
  0xa5   : > { %v452_v54 = vsel %vm450_vm4, %v447_v52, %v449_v51  ;;  %v451_v55 = vsel %vm450_vm4, %v445_v47, %v447_v52  ;;  %1099 = vmatpush.msk.msra.mxu3 %vm197_vm0, %v449_v51  ;;  %1093 = vmatmul.msk.f32.vlgmr.msra.gmra.mxu0 %vm193_vm1, %v1087_v43  ;;  %v724_v56 = vpop.permute.xlu2 %723 }
  0xa6   : > { %1095 = vmatpush.msk.msra.mxu1 %vm197_vm0, %v451_v55  ;;  %1097 = vmatpush.msk.msra.mxu2 %vm197_vm0, %v452_v54  ;;  %v296_v26 = vpop.f32.mrf.mxu3 }
  0xa7   : > { %1098 = vmatmul.msk.f32.vlgmr.msra.gmra.mxu2 %vm193_vm1, %v1094_v53  ;;  %1096 = vmatmul.msk.f32.vlgmr.msra.gmra.mxu1 %vm193_vm1, %v1094_v53 }
  0xa8   : > { %1100 = vmatmul.msk.f32.vlgmr.msra.gmra.mxu3 %vm193_vm1, %v1094_v53 }
  0xac   : > { %v542_v57 = vpop.permute.xlu0 %541  ;;  %v538_v58 = vpop.permute.xlu1 %537 }
  0xad   : > { %v545_v60 = vsel %vm543_vm5, %v540_v50, %v542_v57  ;;  %v544_v61 = vsel %vm543_vm5, %v538_v58, %v540_v50  ;;  %1106 = vmatpush.msk.msrb.mxu2 %vm197_vm0, %v542_v57  ;;  %v728_v4 = vpop.permute.xlu2 %727 }
  0xae   : > { %1102 = vmatpush.msk.msrb.mxu0 %vm197_vm0, %v544_v61  ;;  %1104 = vmatpush.msk.msrb.mxu1 %vm197_vm0, %v545_v60 }
  0xaf   : > { %1107 = vmatmul.msk.f32.vlgmr.msrb.gmra.mxu2 %vm193_vm1, %v1101_v59  ;;  %1103 = vmatmul.msk.f32.vlgmr.msrb.gmra.mxu0 %vm193_vm1, %v1101_v59 }
  0xb0   : > { %1105 = vmatmul.msk.f32.vlgmr.msrb.gmra.mxu1 %vm193_vm1, %v1101_v59 }
  0xb4   : > { %v633_v0 = vpop.permute.xlu1 %632  ;;  %v631_v1 = vpop.permute.xlu0 %630 }
  0xb5   : > { %v637_v3 = vsel %vm636_vm6, %v631_v1, %v633_v0  ;;  %v817_v11 = vpop.permute.xlu2 %816 }
  0xb6   : > { %1109 = vmatpush.msk.msrb.mxu3 %vm197_vm0, %v637_v3 }
  0xb7   : > { %1110 = vmatmul.msk.f32.vlgmr.msrb.gmra.mxu3 %vm193_vm1, %v1108_v2 }
  0xbc   : > { %v635_v5 = vpop.permute.xlu1 %634  ;;  %v726_v6 = vpop.permute.xlu0 %725 }
  0xbd   : > { %v638_v7 = vsel %vm636_vm6, %v633_v0, %v635_v5  ;;  %v730_v8 = vsel %vm729_vm7, %v724_v56, %v726_v6  ;;  %v731_v9 = vsel %vm729_vm7, %v726_v6, %v728_v4  ;;  %1113 = vmatpush.msk.msra.mxu1 %vm197_vm0, %v635_v5  ;;  %v912_v17 = vpop.permute.xlu2 %911 }
  0xbe   : > { %1111 = vmatpush.msk.msra.mxu0 %vm197_vm0, %v638_v7  ;;  %1114 = vmatmul.msk.f32.vlgmr.msra.gmra.mxu1 %vm193_vm1, %v1108_v2 }
  0xbf   : > { %1116 = vmatpush.msk.msra.mxu2 %vm197_vm0, %v730_v8  ;;  %1118 = vmatpush.msk.msra.mxu3 %vm197_vm0, %v731_v9 }
  0xc0   : > { %1112 = vmatmul.msk.f32.vlgmr.msra.gmra.mxu0 %vm193_vm1, %v1108_v2  ;;  %1117 = vmatmul.msk.f32.vlgmr.msra.gmra.mxu2 %vm193_vm1, %v1115_v10 }
  0xc1   : > { %1119 = vmatmul.msk.f32.vlgmr.msra.gmra.mxu3 %vm193_vm1, %v1115_v10  ;;  %1120 = vmatpush.msk.msrb.mxu0 %vm197_vm0, %v728_v4 }
  0xc4   : > { %v821_v12 = vpop.permute.xlu1 %820  ;;  %v819_v13 = vpop.permute.xlu0 %818 }
  0xc5   : > { %v824_v15 = vsel %vm822_vm8, %v819_v13, %v821_v12  ;;  %v823_v16 = vsel %vm822_vm8, %v817_v11, %v819_v13  ;;  %1127 = vmatpush.msk.msrb.mxu3 %vm197_vm0, %v821_v12 }
  0xc6   : > { %1123 = vmatpush.msk.msrb.mxu1 %vm197_vm0, %v823_v16  ;;  %1125 = vmatpush.msk.msrb.mxu2 %vm197_vm0, %v824_v15 }
  0xc7   : > { %1124 = vmatmul.msk.f32.vlgmr.msrb.gmra.mxu1 %vm193_vm1, %v1122_v14 }
  0xc8   : > { %1121 = vmatmul.msk.f32.vlgmr.msrb.gmra.mxu0 %vm193_vm1, %v1115_v10  ;;  %1126 = vmatmul.msk.f32.vlgmr.msrb.gmra.mxu2 %vm193_vm1, %v1122_v14 }
  0xc9   : > { %1128 = vmatmul.msk.f32.vlgmr.msrb.gmra.mxu3 %vm193_vm1, %v1122_v14 }
  0xcc   : > { %v914_v18 = vpop.permute.xlu0 %913  ;;  %v910_v19 = vpop.permute.xlu1 %909 }
  0xcd   : > { %v917_v21 = vsel %vm915_vm9, %v912_v17, %v914_v18  ;;  %v916_v22 = vsel %vm915_vm9, %v910_v19, %v912_v17  ;;  %1134 = vmatpush.msk.msra.mxu2 %vm197_vm0, %v914_v18 }
  0xce   : > { %1130 = vmatpush.msk.msra.mxu0 %vm197_vm0, %v916_v22  ;;  %1132 = vmatpush.msk.msra.mxu1 %vm197_vm0, %v917_v21 }
  0xcf   : > { %1133 = vmatmul.msk.f32.vlgmr.msra.gmra.mxu1 %vm193_vm1, %v1129_v20 }
  0xd0   : > { %1131 = vmatmul.msk.f32.vlgmr.msra.gmra.mxu0 %vm193_vm1, %v1129_v20  ;;  %1135 = vmatmul.msk.f32.vlgmr.msra.gmra.mxu2 %vm193_vm1, %v1129_v20 }
  0xd4   : > { %v994_v3 = vpop.permute.xlu0 %993 }
 0x10b   : > { %v241_v23 = vpop.f32.mrf.mxu1 }
 0x10f   : > { %v261_v25 = vpop.f32.mrf.mxu2 }
 0x112   : > { %v221_v24 = vpop.f32.mrf.mxu0 }
 0x113   : > { %v336_v27 = vpop.f32.mrf.mxu1  ;;  %v406_v30 = vpop.f32.mrf.mxu3  ;;  %v297_v37 = vadd.f32 %v296_v26, %v221_v24 }
 0x114   : > { %v337_v47 = vadd.f32 %v336_v27, %v261_v25 }
 0x11a   : > { %v316_v28 = vpop.f32.mrf.mxu0 }
 0x11b   : > { %v317_v41 = vadd.f32 %v316_v28, %v241_v23 }
 0x11d   : > { %v430_v44 = vadd.f32 %v406_v30, %v317_v41 }
 0x122   : > { %v386_v29 = vpop.f32.mrf.mxu2  ;;  %v426_v32 = vpop.f32.mrf.mxu0 }
 0x123   : > { %v429_v43 = vadd.f32 %v386_v29, %v297_v37  ;;  %v431_v55 = vadd.f32 %v426_v32, %v337_v47 }
 0x124   : > { %v479_v31 = vpop.f32.mrf.mxu1 }
 0x125   : > { %v522_v45 = vadd.f32 %v479_v31, %v429_v43 }
 0x12a   : > { %v499_v33 = vpop.f32.mrf.mxu2 }
 0x12b   : > { %v519_v34 = vpop.f32.mrf.mxu3  ;;  %v523_v46 = vadd.f32 %v499_v33, %v430_v44 }
 0x12c   : > { %v572_v36 = vpop.f32.mrf.mxu0  ;;  %v524_v58 = vadd.f32 %v519_v34, %v431_v55 }
 0x12d   : > { %v592_v35 = vpop.f32.mrf.mxu1  ;;  %v615_v49 = vadd.f32 %v572_v36, %v522_v45 }
 0x12e   : > { %v616_v53 = vadd.f32 %v592_v35, %v523_v46 }
 0x132   : > { %v612_v39 = vpop.f32.mrf.mxu2 }
 0x133   : > { %v617_v60 = vadd.f32 %v612_v39, %v524_v58 }
 0x13a   : > { %v665_v38 = vpop.f32.mrf.mxu3 }
 0x13b   : > { %v705_v40 = vpop.f32.mrf.mxu1  ;;  %v708_v54 = vadd.f32 %v665_v38, %v615_v49 }
 0x13c   : > { %v710_v1 = vadd.f32 %v705_v40, %v617_v60 }
 0x13d   : > { %v685_v42 = vpop.f32.mrf.mxu0 }
 0x13e   : > { %v709_v56 = vadd.f32 %v685_v42, %v616_v53 }
 0x143   : > { %v758_v48 = vpop.f32.mrf.mxu2 }
 0x144   : > { %v778_v50 = vpop.f32.mrf.mxu3  ;;  %v851_v51 = vpop.f32.mrf.mxu1  ;;  %v801_v57 = vadd.f32 %v758_v48, %v708_v54 }
 0x145   : > { %v798_v52 = vpop.f32.mrf.mxu0  ;;  %v802_v59 = vadd.f32 %v778_v50, %v709_v56 }
 0x146   : > { %v894_v62 = vadd.f32 %v851_v51, %v801_v57  ;;  %v803_v7 = vadd.f32 %v798_v52, %v710_v1 }
 0x14b   : > { %v871_v61 = vpop.f32.mrf.mxu2 }
 0x14c   : > { %v895_v63 = vadd.f32 %v871_v61, %v802_v59  ;;  %v964_v0 = vpop.f32.mrf.mxu1  ;;  %v891_v4 = vpop.f32.mrf.mxu3 }
 0x14d   : > { %v944_v2 = vpop.f32.mrf.mxu0  ;;  %v896_v10 = vadd.f32 %v891_v4, %v803_v7 }
 0x14e   : > { %v987_v5 = vadd.f32 %v944_v2, %v894_v62  ;;  %v988_v6 = vadd.f32 %v964_v0, %v895_v63 }
 0x150   : > { %v996_v8 = vadd.f32 %v994_v3, %v987_v5  ;;  %v997_v9 = vadd.f32 %v994_v3, %v988_v6 }
 0x152   : > { %vm999_vm10 = vcmp.ge.f32.partialorder %v996_v8, 0.0  ;;  %vm1000_vm11 = vcmp.ge.f32.partialorder %v997_v9, 0.0  ;;  %v1002_v11 = vmul.f32 0.01, %v996_v8  ;;  %v1003_v12 = vmul.f32 0.01, %v997_v9 }
 0x153   : > { %v984_v13 = vpop.f32.mrf.mxu2 }
 0x154   : > { %v1005_v14 = vsel %vm999_vm10, %v996_v8, %v1002_v11  ;;  %v1006_v15 = vsel %vm1000_vm11, %v997_v9, %v1003_v12  ;;  %v989_v16 = vadd.f32 %v984_v13, %v896_v10 }
 0x155   : > { %1008 = vst [vmem:[%s170_s24] sm:$0xff] %v1005_v14 }
 0x156   : > { %1009 = vst [vmem:[%s170_s24 + $0x8] sm:$0xff] %v1006_v15  ;;  %v998_v17 = vadd.f32 %v994_v3, %v989_v16 }
 0x158   : > { %vm1001_vm12 = vcmp.ge.f32.partialorder %v998_v17, 0.0  ;;  %v1004_v18 = vmul.f32 0.01, %v998_v17 }
 0x15a   : > { %v1007_v19 = vsel %vm1001_vm12, %v998_v17, %v1004_v18 }
 0x15b   : > { %1011 = vst.msk [vmem:[%s170_s24 + $0x10] sm:$0xff] %vm1010_vm13, %v1007_v19 }
 0x15c PF: > { %s13_s12 = sadd.s32 1, %s1164_s12  }
 0x15d   : > { %p10_p4 = scmp.ge.s32.totalorder %s13_s12, 4  }
 0x15f   :  { %12 = sbr.rel (!%p10_p4) target bundleno = 1 (0x1), region = 79 }

// kernel: multiblock_pallas.9
= control target key start
LH: loop header
LB: loop body
LE: loop exit
PB: predicated region body
PF: predicated region fallthrough
CT: control target
= control target key end

     0   :  { %s949_s12 = smov 0   ;;  %s1070_s0 = inlined_call_operand.vmem [shape: f32[2,4,328], index: 0, kind: input, shape index: {}]   ;;  %s1071_s1 = inlined_call_operand.vmem [shape: f32[9,8,4], index: 1, kind: input, shape index: {}]   ;;  %s1072_s2 = inlined_call_operand.vmem [shape: f32[8,1], index: 2, kind: input, shape index: {}]   ;;  %s1073_s3 = inlined_call_operand.vmem [shape: f32[2,8,252], index: 3, kind: output, shape index: {}]  }
   0x1 LB: > { %s837_s13 = sadd.s32 4294967295, %s918_s12   ;;  %p841_p0 = scmp.ge.s32.totalorder %s918_s12, 1  ;;  %s918_s12 = sphi %s949_s12, %s13_s12  }
   0x2   : > { %p137_p1 = scmp.lt.s32.totalorder %s918_s12, 3 }
   0x4   : > { %p138_p2 = pnand %p841_p0, %p137_p1 }
   0x5   : > { %p161_p3 = scmp.lt.s32.totalorder (!%p138_p2), %s837_s13, 1  ;;  %s920_s18 = smov (!%p138_p2), 126  }
   0x6   : > { %141 = sbr.rel (%p138_p2) target bundleno = 339 (0x153), region = 32  ;;  %s921_s19 = smov (!%p138_p2), 92  }
   0x7   : > { %s922_s20 = smov (!%p138_p2), 124   ;;  %s923_s21 = smov (!%p138_p2), 90  }
   0x8   : > { %s924_s22 = smov (!%p138_p2), 88   ;;  %s925_s23 = smov (!%p138_p2), 56  }
   0x9   : > { %s926_s24 = smov (!%p138_p2), 54   ;;  %s927_s25 = smov (!%p138_p2), 52  }
   0xb   : > { %s1075_s13 = smov (!%p161_p3, %s837_s13), 1  ;;  %vm189_vm0 = vcmask 1043456   ;;  %vm185_vm1 = vcmask 31744   ;;  %v172_v31 = vld [vmem:[%s1071_s1] sm:$0xff]  ;;  %vm183_vm2 = vcmask 1031168   ;;  %vm364_vm3 = vcmask 752640  }
   0xc   : > { %s892_s14 = smul.u32 12, %s1075_s13  ;;  %v845_v34 = vld [vmem:[%s1071_s1 + $0x8] sm:$0xff]  ;;  %v859_v39 = vld [vmem:[%s1071_s1 + $0x18] sm:$0xff]  ;;  %vm434_vm4 = vcmask 736256   ;;  %vm295_vm5 = vcmask 1014784   ;;  %v854_v46 = vld [vmem:[%s1071_s1 + $0x10] sm:$0xff] }
   0xd   : > { %vm504_vm6 = vcmask 719872   ;;  %v864_v52 = vld [vmem:[%s1071_s1 + $0x20] sm:$0xff]  ;;  %v869_v53 = vld [vmem:[%s1071_s1 + $0x28] sm:$0xff]  ;;  %v928_v58 = vmov 0   ;;  %vm574_vm7 = vcmask 457728   ;;  %v874_v61 = vld [vmem:[%s1071_s1 + $0x30] sm:$0xff] }
   0xe   : > { %s963_s17 = scalar_lea.vmem %s1070_s0, %s892_s14  ;;  %v766_v57 = vld [vmem:[%s1072_s2] sm:$0xff]  ;;  %910 = vset.pattern.permute.xlu1 %v928_v58  ;;  %911 = vset.pattern.permute.xlu0 %v928_v58  ;;  %vm644_vm8 = vcmask 441344   ;;  %vm714_vm9 = vcmask 424960  }
   0xf   : > { %v966_v0 = vld [vmem:[%s963_s17] sm:$0xff]  ;;  %v347_v1 = vld [vmem:[%s963_s17 + $0x8] sm:$0xf] }
  0x10   : > { %176 = vst [vmem:[#allocation1] ss:$2 sm:$0xff] %v966_v0  ;;  %v417_v2 = vld [vmem:[%s963_s17 + $0x8] sm:$0xf] }
  0x11   : > { %354 = vst [vmem:[#allocation1 + $0x10] ss:$2 sm:$0xff] %v347_v1  ;;  %v487_v6 = vld [vmem:[%s963_s17 + $0x8] sm:$0xf] }
  0x12   : > { %v557_v10 = vld [vmem:[%s963_s17 + $0x8] sm:$0xf] }
  0x13   : > { %v627_v14 = vld [vmem:[%s963_s17 + $0x8] sm:$0xf] }
  0x14   : > { %v697_v18 = vld [vmem:[%s963_s17 + $0x8] sm:$0xf] }
  0x17   : > { %v177_v3 = vld.sshfl [vmem:[#allocation1] sm:$0xff pattern:$0x75316420]  ;;  %v178_v4 = vld.sshfl [vmem:[#allocation1 + $0x8] sm:$0xff pattern:$0x75316420] }
  0x18   : > { %179 = vrot.lane.b32.xlu0 %v177_v3, %s920_s18  ;;  %234 = vst [vmem:[#allocation1] ss:$2 sm:$0xff] %v966_v0  ;;  %v357_v5 = vld.sshfl [vmem:[#allocation1 + $0x10] sm:$0xff pattern:$0x75316420]  ;;  %v879_v3 = vld [vmem:[%s1071_s1 + $0x38] sm:$0xff] }
  0x19   : > { %424 = vst [vmem:[#allocation1 + $0x10] ss:$2 sm:$0xff] %v417_v2 }
  0x1f   : > { %v973_v7 = vld.sshfl [vmem:[#allocation1] sm:$0xff pattern:$0x75316420]  ;;  %v975_v8 = vld.sshfl [vmem:[#allocation1 + $0x8] sm:$0xff pattern:$0x75316420] }
  0x20   : > { %181 = vrot.lane.b32.xlu0 %v178_v4, %s920_s18  ;;  %288 = vst [vmem:[#allocation1] ss:$2 sm:$0xff] %v966_v0  ;;  %v427_v9 = vld.sshfl [vmem:[#allocation1 + $0x10] sm:$0xff pattern:$0x75316420]  ;;  %850 = vmatpush.msk.msra.mxu2 %vm189_vm0, %v973_v7 }
  0x21   : > { %494 = vst [vmem:[#allocation1 + $0x10] ss:$2 sm:$0xff] %v487_v6  ;;  %852 = vmatpush.msk.msra.mxu3 %vm189_vm0, %v975_v8  ;;  %851 = vmatmul.msk.f32.vlgmr.msra.gmra.mxu2 %vm185_vm1, %v172_v31 }
  0x22   : > { %853 = vmatmul.msk.f32.vlgmr.msra.gmra.mxu3 %vm185_vm1, %v172_v31 }
  0x27   : > { %v289_v11 = vld.sshfl [vmem:[#allocation1] sm:$0xff pattern:$0x75316420]  ;;  %v290_v12 = vld.sshfl [vmem:[#allocation1 + $0x8] sm:$0xff pattern:$0x75316420] }
  0x28   : > { %362 = vrot.lane.b32.xlu0 %v357_v5, %s921_s19  ;;  %291 = vrot.lane.b32.xlu1 %v289_v11, %s922_s20  ;;  %352 = vst [vmem:[#allocation1] ss:$2 sm:$0xff] %v966_v0  ;;  %v497_v13 = vld.sshfl [vmem:[#allocation1 + $0x10] sm:$0xff pattern:$0x75316420] }
  0x29   : > { %564 = vst [vmem:[#allocation1 + $0x10] ss:$2 sm:$0xff] %v557_v10 }
  0x2f   : > { %v355_v15 = vld.sshfl [vmem:[#allocation1] sm:$0xff pattern:$0x75316420]  ;;  %v356_v16 = vld.sshfl [vmem:[#allocation1 + $0x8] sm:$0xff pattern:$0x75316420] }
  0x30   : > { %432 = vrot.lane.b32.xlu0 %v427_v9, %s923_s21  ;;  %293 = vrot.lane.b32.xlu1 %v290_v12, %s922_s20  ;;  %422 = vst [vmem:[#allocation1] ss:$2 sm:$0xff] %v966_v0  ;;  %v567_v17 = vld.sshfl [vmem:[#allocation1 + $0x10] sm:$0xff pattern:$0x75316420]  ;;  %v884_v9 = vld [vmem:[%s1071_s1 + $0x40] sm:$0xff] }
  0x31   : > { %358 = vrot.lane.b32.xlu2 %v355_v15, %s921_s19  ;;  %634 = vst [vmem:[#allocation1 + $0x10] ss:$2 sm:$0xff] %v627_v14 }
  0x37   : > { %v426_v19 = vld.sshfl [vmem:[#allocation1 + $0x8] sm:$0xff pattern:$0x75316420]  ;;  %v425_v20 = vld.sshfl [vmem:[#allocation1] sm:$0xff pattern:$0x75316420] }
  0x38   : > { %502 = vrot.lane.b32.xlu0 %v497_v13, %s924_s22  ;;  %428 = vrot.lane.b32.xlu1 %v425_v20, %s923_s21  ;;  %492 = vst [vmem:[#allocation1] ss:$2 sm:$0xff] %v966_v0  ;;  %v637_v21 = vld.sshfl [vmem:[#allocation1 + $0x10] sm:$0xff pattern:$0x75316420] }
  0x39   : > { %360 = vrot.lane.b32.xlu2 %v356_v16, %s921_s19  ;;  %704 = vst [vmem:[#allocation1 + $0x10] ss:$2 sm:$0xff] %v697_v18 }
  0x3f   : > { %v495_v22 = vld.sshfl [vmem:[#allocation1] sm:$0xff pattern:$0x75316420]  ;;  %v496_v23 = vld.sshfl [vmem:[#allocation1 + $0x8] sm:$0xff pattern:$0x75316420] }
  0x40   : > { %572 = vrot.lane.b32.xlu0 %v567_v17, %s925_s23  ;;  %498 = vrot.lane.b32.xlu1 %v495_v22, %s924_s22  ;;  %562 = vst [vmem:[#allocation1] ss:$2 sm:$0xff] %v966_v0  ;;  %v707_v26 = vld.sshfl [vmem:[#allocation1 + $0x10] sm:$0xff pattern:$0x75316420] }
  0x41   : > { %430 = vrot.lane.b32.xlu2 %v426_v19, %s923_s21  ;;  %s891_s21 = sshll.u32 %s1075_s13, 4 }
  0x47   : > { %v565_v24 = vld.sshfl [vmem:[#allocation1] sm:$0xff pattern:$0x75316420]  ;;  %v566_v25 = vld.sshfl [vmem:[#allocation1 + $0x8] sm:$0xff pattern:$0x75316420] }
  0x48   : > { %642 = vrot.lane.b32.xlu0 %v637_v21, %s926_s24  ;;  %568 = vrot.lane.b32.xlu1 %v565_v24, %s925_s23  ;;  %632 = vst [vmem:[#allocation1] ss:$2 sm:$0xff] %v966_v0 }
  0x49   : > { %500 = vrot.lane.b32.xlu2 %v496_v23, %s924_s22 }
  0x4f   : > { %v635_v27 = vld.sshfl [vmem:[#allocation1] sm:$0xff pattern:$0x75316420]  ;;  %v636_v28 = vld.sshfl [vmem:[#allocation1 + $0x8] sm:$0xff pattern:$0x75316420] }
  0x50   : > { %712 = vrot.lane.b32.xlu0 %v707_v26, %s927_s25  ;;  %638 = vrot.lane.b32.xlu1 %v635_v27, %s926_s24  ;;  %702 = vst [vmem:[#allocation1] ss:$2 sm:$0xff] %v966_v0 }
  0x51   : > { %570 = vrot.lane.b32.xlu2 %v566_v25, %s925_s23 }
  0x57   : > { %v705_v29 = vld.sshfl [vmem:[#allocation1] sm:$0xff pattern:$0x75316420]  ;;  %v706_v30 = vld.sshfl [vmem:[#allocation1 + $0x8] sm:$0xff pattern:$0x75316420] }
  0x58   : > { %708 = vrot.lane.b32.xlu1 %v705_v29, %s927_s25 }
  0x59   : > { %640 = vrot.lane.b32.xlu2 %v636_v28, %s926_s24  ;;  %s170_s24 = scalar_lea.vmem %s1073_s3, %s891_s21 }
  0x60   : > { %769 = vperm.xlu1 %910, %v766_v57  }
  0x61   : > { %710 = vrot.lane.b32.xlu2 %v706_v30, %s927_s25 }
  0x8a   : > { %v180_v32 = vpop.permute.xlu0 %179 }
  0x8b   : > { %v359_v33 = vpop.permute.xlu2 %358 }
  0x92   : > { %v182_v35 = vpop.permute.xlu0 %181 }
  0x93   : > { %v184_v36 = vsel %vm183_vm2, %v180_v32, %v182_v35  ;;  %v361_v37 = vpop.permute.xlu2 %360  ;;  %848 = vmatpush.msk.msra.mxu1 %vm189_vm0, %v182_v35 }
  0x94   : > { %846 = vmatpush.msk.msra.mxu0 %vm189_vm0, %v184_v36  ;;  %v365_v38 = vsel %vm364_vm3, %v359_v33, %v361_v37  ;;  %849 = vmatmul.msk.f32.vlgmr.msra.gmra.mxu1 %vm185_vm1, %v845_v34 }
  0x95   : > { %860 = vmatpush.msk.msrb.mxu2 %vm189_vm0, %v365_v38  ;;  %847 = vmatmul.msk.f32.vlgmr.msra.gmra.mxu0 %vm185_vm1, %v845_v34 }
  0x96   : > { %861 = vmatmul.msk.f32.vlgmr.msrb.gmra.mxu2 %vm185_vm1, %v859_v39 }
  0x9a   : > { %v363_v40 = vpop.permute.xlu0 %362  ;;  %v292_v41 = vpop.permute.xlu1 %291 }
  0x9b   : > { %v431_v42 = vpop.permute.xlu2 %430  ;;  %v366_v43 = vsel %vm364_vm3, %v361_v37, %v363_v40 }
  0x9c   : > { %862 = vmatpush.msk.msrb.mxu3 %vm189_vm0, %v366_v43 }
  0x9d   : > { %863 = vmatmul.msk.f32.vlgmr.msrb.gmra.mxu3 %vm185_vm1, %v859_v39 }
  0xa2   : > { %v433_v44 = vpop.permute.xlu0 %432  ;;  %v294_v45 = vpop.permute.xlu1 %293 }
  0xa3   : > { %v436_v47 = vsel %vm434_vm4, %v431_v42, %v433_v44  ;;  %857 = vmatpush.msk.msrb.mxu1 %vm189_vm0, %v294_v45  ;;  %v296_v48 = vsel %vm295_vm5, %v292_v41, %v294_v45  ;;  %v501_v49 = vpop.permute.xlu2 %500 }
  0xa4   : > { %855 = vmatpush.msk.msrb.mxu0 %vm189_vm0, %v296_v48  ;;  %858 = vmatmul.msk.f32.vlgmr.msrb.gmra.mxu1 %vm185_vm1, %v854_v46  ;;  %v261_v19 = vpop.f32.mrf.mxu2 }
  0xa5   : > { %867 = vmatpush.msk.msra.mxu1 %vm189_vm0, %v436_v47  ;;  %856 = vmatmul.msk.f32.vlgmr.msrb.gmra.mxu0 %vm185_vm1, %v854_v46  ;;  %v281_v15 = vpop.f32.mrf.mxu3 }
  0xaa   : > { %v503_v50 = vpop.permute.xlu0 %502  ;;  %v429_v51 = vpop.permute.xlu1 %428 }
  0xab   : > { %v435_v54 = vsel %vm434_vm4, %v429_v51, %v431_v42  ;;  %v506_v55 = vsel %vm504_vm6, %v501_v49, %v503_v50  ;;  %v571_v56 = vpop.permute.xlu2 %570 }
  0xac   : > { %865 = vmatpush.msk.msra.mxu0 %vm189_vm0, %v435_v54  ;;  %872 = vmatpush.msk.msra.mxu3 %vm189_vm0, %v506_v55 }
  0xad   : > { %868 = vmatmul.msk.f32.vlgmr.msra.gmra.mxu1 %vm185_vm1, %v864_v52  ;;  %873 = vmatmul.msk.f32.vlgmr.msra.gmra.mxu3 %vm185_vm1, %v869_v53 }
  0xae   : > { %866 = vmatmul.msk.f32.vlgmr.msra.gmra.mxu0 %vm185_vm1, %v864_v52 }
  0xb2   : > { %v573_v59 = vpop.permute.xlu0 %572  ;;  %v499_v60 = vpop.permute.xlu1 %498 }
  0xb3   : > { %v505_v62 = vsel %vm504_vm6, %v499_v60, %v501_v49  ;;  %v576_v63 = vsel %vm574_vm7, %v571_v56, %v573_v59  ;;  %v641_v0 = vpop.permute.xlu2 %640 }
  0xb4   : > { %870 = vmatpush.msk.msra.mxu2 %vm189_vm0, %v505_v62  ;;  %877 = vmatpush.msk.msrb.mxu1 %vm189_vm0, %v576_v63 }
  0xb5   : > { %871 = vmatmul.msk.f32.vlgmr.msra.gmra.mxu2 %vm185_vm1, %v869_v53  ;;  %878 = vmatmul.msk.f32.vlgmr.msrb.gmra.mxu1 %vm185_vm1, %v874_v61 }
  0xba   : > { %v643_v1 = vpop.permute.xlu0 %642  ;;  %v569_v2 = vpop.permute.xlu1 %568 }
  0xbb   : > { %v575_v4 = vsel %vm574_vm7, %v569_v2, %v571_v56  ;;  %v646_v5 = vsel %vm644_vm8, %v641_v0, %v643_v1  ;;  %v711_v6 = vpop.permute.xlu2 %710 }
  0xbc   : > { %875 = vmatpush.msk.msrb.mxu0 %vm189_vm0, %v575_v4  ;;  %882 = vmatpush.msk.msrb.mxu3 %vm189_vm0, %v646_v5 }
  0xbd   : > { %883 = vmatmul.msk.f32.vlgmr.msrb.gmra.mxu3 %vm185_vm1, %v879_v3  ;;  %876 = vmatmul.msk.f32.vlgmr.msrb.gmra.mxu0 %vm185_vm1, %v874_v61 }
  0xc2   : > { %v713_v7 = vpop.permute.xlu0 %712  ;;  %v639_v8 = vpop.permute.xlu1 %638 }
  0xc3   : > { %v645_v10 = vsel %vm644_vm8, %v639_v8, %v641_v0  ;;  %v716_v11 = vsel %vm714_vm9, %v711_v6, %v713_v7 }
  0xc4   : > { %880 = vmatpush.msk.msrb.mxu2 %vm189_vm0, %v645_v10  ;;  %887 = vmatpush.msk.msra.mxu1 %vm189_vm0, %v716_v11 }
  0xc5   : > { %881 = vmatmul.msk.f32.vlgmr.msrb.gmra.mxu2 %vm185_vm1, %v879_v3  ;;  %888 = vmatmul.msk.f32.vlgmr.msra.gmra.mxu1 %vm185_vm1, %v884_v9 }
  0xca   : > { %v709_v12 = vpop.permute.xlu1 %708 }
  0xcb   : > { %v715_v13 = vsel %vm714_vm9, %v709_v12, %v711_v6 }
  0xcc   : > { %885 = vmatpush.msk.msra.mxu0 %vm189_vm0, %v715_v13 }
  0xcd   : > { %886 = vmatmul.msk.f32.vlgmr.msra.gmra.mxu0 %vm185_vm1, %v884_v9 }
  0xd2   : > { %v770_v39 = vpop.permute.xlu1 %769 }
 0x111   : > { %v231_v14 = vpop.f32.mrf.mxu1 }
 0x112   : > { %v211_v16 = vpop.f32.mrf.mxu0  ;;  %v282_v18 = vadd.f32 %v281_v15, %v231_v14 }
 0x113   : > { %v262_v25 = vadd.f32 %v261_v19, %v211_v16 }
 0x119   : > { %v391_v27 = vpop.f32.mrf.mxu2 }
 0x120   : > { %v411_v20 = vpop.f32.mrf.mxu3 }
 0x121   : > { %v341_v17 = vpop.f32.mrf.mxu1 }
 0x122   : > { %v345_v21 = vadd.f32 %v341_v17, %v282_v18  ;;  %v321_v22 = vpop.f32.mrf.mxu0 }
 0x123   : > { %v344_v29 = vadd.f32 %v321_v22, %v262_v25 }
 0x124   : > { %v415_v24 = vadd.f32 %v411_v20, %v345_v21 }
 0x125   : > { %v414_v33 = vadd.f32 %v391_v27, %v344_v29 }
 0x12a   : > { %v481_v23 = vpop.f32.mrf.mxu1 }
 0x12b   : > { %v485_v26 = vadd.f32 %v481_v23, %v415_v24  ;;  %v461_v30 = vpop.f32.mrf.mxu0 }
 0x12c   : > { %v484_v37 = vadd.f32 %v461_v30, %v414_v33 }
 0x130   : > { %v551_v28 = vpop.f32.mrf.mxu3 }
 0x131   : > { %v555_v32 = vadd.f32 %v551_v28, %v485_v26 }
 0x132   : > { %v621_v31 = vpop.f32.mrf.mxu1 }
 0x133   : > { %v625_v34 = vadd.f32 %v621_v31, %v555_v32 }
 0x138   : > { %v531_v35 = vpop.f32.mrf.mxu2 }
 0x139   : > { %v554_v42 = vadd.f32 %v531_v35, %v484_v37 }
 0x13a   : > { %v601_v40 = vpop.f32.mrf.mxu0 }
 0x13b   : > { %v624_v45 = vadd.f32 %v601_v40, %v554_v42 }
 0x140   : > { %v691_v36 = vpop.f32.mrf.mxu3 }
 0x141   : > { %v695_v38 = vadd.f32 %v691_v36, %v625_v34 }
 0x142   : > { %v761_v41 = vpop.f32.mrf.mxu1 }
 0x143   : > { %v765_v43 = vadd.f32 %v761_v41, %v695_v38 }
 0x145   : > { %v773_v44 = vadd.f32 %v770_v39, %v765_v43 }
 0x147   : > { %vm775_vm10 = vcmp.ge.f32.partialorder %v773_v44, 0.0  ;;  %v777_v46 = vmul.f32 0.01, %v773_v44 }
 0x148   : > { %v671_v47 = vpop.f32.mrf.mxu2 }
 0x149   : > { %v779_v48 = vsel %vm775_vm10, %v773_v44, %v777_v46  ;;  %v694_v49 = vadd.f32 %v671_v47, %v624_v45 }
 0x14a   : > { %781 = vst.msk [vmem:[%s170_s24 + $0x8] sm:$0xff] %vm295_vm5, %v779_v48  ;;  %v741_v50 = vpop.f32.mrf.mxu0 }
 0x14b   : > { %v764_v51 = vadd.f32 %v741_v50, %v694_v49 }
 0x14d   : > { %v772_v52 = vadd.f32 %v770_v39, %v764_v51 }
 0x14f   : > { %vm774_vm11 = vcmp.ge.f32.partialorder %v772_v52, 0.0  ;;  %v776_v53 = vmul.f32 0.01, %v772_v52 }
 0x151   : > { %v778_v54 = vsel %vm774_vm11, %v772_v52, %v776_v53 }
 0x152   : > { %780 = vst [vmem:[%s170_s24] sm:$0xff] %v778_v54 }
 0x153 PF: > { %s13_s12 = sadd.s32 1, %s918_s12  }
 0x154   : > { %p10_p4 = scmp.ge.s32.totalorder %s13_s12, 4  }
 0x156   :  { %12 = sbr.rel (!%p10_p4) target bundleno = 1 (0x1), region = 76 }

// kernel: multiblock_pallas.10
= control target key start
LH: loop header
LB: loop body
LE: loop exit
PB: predicated region body
PF: predicated region fallthrough
CT: control target
= control target key end

     0   :  { %s869_s12 = smov 0   ;;  %s943_s0 = inlined_call_operand.vmem [shape: f32[2,8,260], index: 0, kind: input, shape index: {}]   ;;  %s944_s1 = inlined_call_operand.vmem [shape: f32[9,8,8], index: 1, kind: input, shape index: {}]   ;;  %s945_s2 = inlined_call_operand.vmem [shape: f32[8,1], index: 2, kind: input, shape index: {}]   ;;  %s946_s3 = inlined_call_operand.vmem [shape: f32[2,8,192], index: 3, kind: output, shape index: {}]  }
   0x1 LB: > { %s735_s13 = sadd.s32 4294967295, %s838_s12   ;;  %p739_p0 = scmp.ge.s32.totalorder %s838_s12, 1  ;;  %s838_s12 = sphi %s869_s12, %s13_s12  }
   0x2   : > { %p137_p1 = scmp.lt.s32.totalorder %s838_s12, 3 }
   0x4   : > { %p138_p2 = pnand %p739_p0, %p137_p1 }
   0x5   : > { %p161_p3 = scmp.lt.s32.totalorder (!%p138_p2), %s735_s13, 1  ;;  %s840_s20 = smov (!%p138_p2), 126  }
   0x6   : > { %141 = sbr.rel (%p138_p2) target bundleno = 300 (0x12c), region = 32  ;;  %s841_s21 = smov (!%p138_p2), 96  }
   0x7   : > { %s842_s22 = smov (!%p138_p2), 92   ;;  %s843_s23 = smov (!%p138_p2), 124  }
   0x8   : > { %s844_s24 = smov (!%p138_p2), 94   ;;  %s845_s25 = smov (!%p138_p2), 64  }
   0x9   : > { %s846_s26 = smov (!%p138_p2), 62   ;;  %s847_s27 = smov (!%p138_p2), 60  }
   0xb   : > { %s948_s13 = smov (!%p161_p3, %s735_s13), 1  ;;  %v173_v0 = vld [vmem:[%s944_s1] sm:$0xff]  ;;  %vm186_vm0 = vcmask 64512   ;;  %vm182_vm1 = vcmask 1031168   ;;  %vm334_vm2 = vcmask 785408   ;;  %v743_v13 = vld [vmem:[%s944_s1 + $0x8] sm:$0xff] }
   0xc   : > { %s772_s14 = smul.u32 24, %s948_s13  ;;  %v751_v15 = vld [vmem:[%s944_s1 + $0x18] sm:$0xff]  ;;  %vm444_vm3 = vcmask 752640   ;;  %v670_v20 = vld [vmem:[%s945_s2] sm:$0xff]  ;;  %v848_v21 = vmov 0   ;;  %vm279_vm4 = vcmask 1014784  }
   0xd   : > { %830 = vset.pattern.permute.xlu1 %v848_v21  ;;  %vm389_vm5 = vcmask 769024   ;;  %v748_v28 = vld [vmem:[%s944_s1 + $0x10] sm:$0xff]  ;;  %831 = vset.pattern.permute.xlu0 %v848_v21  ;;  %v757_v31 = vld [vmem:[%s944_s1 + $0x28] sm:$0xff]  ;;  %vm499_vm6 = vcmask 523264   ;;  %vm562_vm7 = vcmask 506880   ;;  %vm620_vm8 = vcmask 490496  }
   0xe   : > { %s165_s17 = scalar_lea.vmem %s943_s0, %s772_s14  ;;  %v754_v42 = vld [vmem:[%s944_s1 + $0x20] sm:$0xff]  ;;  %v763_v45 = vld [vmem:[%s944_s1 + $0x38] sm:$0xff]  ;;  %v760_v48 = vld [vmem:[%s944_s1 + $0x30] sm:$0xff] }
   0xf   : > { %v171_v1 = vld [vmem:[%s165_s17] sm:$0xff]  ;;  %v172_v2 = vld [vmem:[%s165_s17 + $0x8] sm:$0xff]  ;;  %v550_v4 = vld [vmem:[%s165_s17 + $0x10] sm:$0xff] }
  0x10   : > { %v790_v3 = vpack.i.bf16 %v172_v2, %v171_v1  ;;  %268 = vmatpush.msra.mxu3 %v172_v2  ;;  %248 = vmatpush.msra.mxu2 %v171_v1  ;;  %v766_v50 = vld [vmem:[%s944_s1 + $0x40] sm:$0xff] }
  0x11   : > { %747 = vmatmul.msk.f32.vlgmr.msra.gmra.mxu3 %vm186_vm0, %v173_v0  ;;  %746 = vmatmul.msk.f32.vlgmr.msra.gmra.mxu2 %vm186_vm0, %v173_v0 }
  0x12   : > { %791 = vrot.lane.b32.xlu0 %v790_v3, %s840_s20  ;;  %801 = vrot.lane.b32.xlu1 %v790_v3, %s841_s21  ;;  %s771_s21 = sshll.u32 %s948_s13, 4 }
  0x13   : > { %811 = vrot.lane.b32.xlu2 %v790_v3, %s842_s22 }
  0x1a   : > { %796 = vrot.lane.b32.xlu0 %v790_v3, %s843_s23  ;;  %806 = vrot.lane.b32.xlu1 %v790_v3, %s844_s24  ;;  %s170_s24 = scalar_lea.vmem %s946_s3, %s771_s21 }
  0x1b   : > { %816 = vrot.lane.b32.xlu2 %v790_v3, %s845_s25 }
  0x22   : > { %821 = vrot.lane.b32.xlu0 %v790_v3, %s846_s26  ;;  %560 = vrot.lane.b32.xlu1 %v550_v4, %s846_s26 }
  0x23   : > { %826 = vrot.lane.b32.xlu2 %v790_v3, %s847_s27 }
  0x2a   : > { %618 = vrot.lane.b32.xlu0 %v550_v4, %s847_s27  ;;  %673 = vperm.xlu1 %830, %v670_v20  }
  0x6d   : > { %v812_v5 = vpop.permute.xlu2 %811 }
  0x6e   : > { %v814_v8 = vunpack.i.h.bf16 %v812_v5  ;;  %v813_v9 = vunpack.i.l.bf16 %v812_v5 }
  0x70   : > { %v445_v19 = vsel %vm444_vm3, %v813_v9, %v814_v8 }
  0x75   : > { %v817_v16 = vpop.permute.xlu2 %816 }
  0x76   : > { %v819_v24 = vunpack.i.h.bf16 %v817_v16  ;;  %v818_v25 = vunpack.i.l.bf16 %v817_v16 }
  0x78   : > { %v500_v35 = vsel %vm499_vm6, %v818_v25, %v819_v24 }
  0x7d   : > { %v827_v34 = vpop.permute.xlu2 %826 }
  0x7e   : > { %v829_v36 = vunpack.i.h.bf16 %v827_v34  ;;  %v828_v37 = vunpack.i.l.bf16 %v827_v34 }
  0x80   : > { %v621_v46 = vsel %vm620_vm8, %v828_v37, %v829_v36 }
  0x84   : > { %v792_v6 = vpop.permute.xlu0 %791  ;;  %v802_v7 = vpop.permute.xlu1 %801 }
  0x85   : > { %v793_v10 = vunpack.i.l.bf16 %v792_v6  ;;  %v794_v11 = vunpack.i.h.bf16 %v792_v6  ;;  %v803_v12 = vunpack.i.l.bf16 %v802_v7  ;;  %v804_v14 = vunpack.i.h.bf16 %v802_v7 }
  0x87   : > { %225 = vmatpush.msra.mxu1 %v794_v11  ;;  %v183_v17 = vsel %vm182_vm1, %v793_v10, %v794_v11  ;;  %376 = vmatpush.msrb.mxu3 %v804_v14  ;;  %v335_v18 = vsel %vm334_vm2, %v803_v12, %v804_v14 }
  0x88   : > { %205 = vmatpush.msra.mxu0 %v183_v17  ;;  %745 = vmatmul.msk.f32.vlgmr.msra.gmra.mxu1 %vm186_vm0, %v743_v13 }
  0x89   : > { %744 = vmatmul.msk.f32.vlgmr.msra.gmra.mxu0 %vm186_vm0, %v743_v13  ;;  %753 = vmatmul.msk.f32.vlgmr.msrb.gmra.mxu3 %vm186_vm0, %v751_v15 }
  0x8a   : > { %356 = vmatpush.msrb.mxu2 %v335_v18  ;;  %486 = vmatpush.msra.mxu3 %v814_v8 }
  0x8b   : > { %752 = vmatmul.msk.f32.vlgmr.msrb.gmra.mxu2 %vm186_vm0, %v751_v15 }
  0x8c   : > { %v797_v22 = vpop.permute.xlu0 %796  ;;  %v807_v23 = vpop.permute.xlu1 %806  ;;  %466 = vmatpush.msra.mxu2 %v445_v19 }
  0x8d   : > { %v798_v26 = vunpack.i.l.bf16 %v797_v22  ;;  %v799_v27 = vunpack.i.h.bf16 %v797_v22  ;;  %v809_v29 = vunpack.i.h.bf16 %v807_v23  ;;  %v808_v30 = vunpack.i.l.bf16 %v807_v23 }
  0x8f   : > { %321 = vmatpush.msrb.mxu1 %v799_v27  ;;  %v280_v32 = vsel %vm279_vm4, %v798_v26, %v799_v27  ;;  %v390_v33 = vsel %vm389_vm5, %v808_v30, %v809_v29 }
  0x90   : > { %301 = vmatpush.msrb.mxu0 %v280_v32  ;;  %750 = vmatmul.msk.f32.vlgmr.msrb.gmra.mxu1 %vm186_vm0, %v748_v28 }
  0x91   : > { %749 = vmatmul.msk.f32.vlgmr.msrb.gmra.mxu0 %vm186_vm0, %v748_v28  ;;  %759 = vmatmul.msk.f32.vlgmr.msra.gmra.mxu3 %vm186_vm0, %v757_v31 }
  0x92   : > { %431 = vmatpush.msra.mxu1 %v809_v29  ;;  %411 = vmatpush.msra.mxu0 %v390_v33 }
  0x93   : > { %758 = vmatmul.msk.f32.vlgmr.msra.gmra.mxu2 %vm186_vm0, %v757_v31 }
  0x94   : > { %541 = vmatpush.msrb.mxu1 %v819_v24  ;;  %v822_v38 = vpop.permute.xlu0 %821  ;;  %v561_v39 = vpop.permute.xlu1 %560  ;;  %521 = vmatpush.msrb.mxu0 %v500_v35 }
  0x95   : > { %v824_v40 = vunpack.i.h.bf16 %v822_v38  ;;  %v823_v41 = vunpack.i.l.bf16 %v822_v38  ;;  %v270_v51 = vpop.f32.mrf.mxu3  ;;  %v250_v54 = vpop.f32.mrf.mxu2 }
  0x97   : > { %v564_v43 = vsel %vm562_vm7, %v824_v40, %v561_v39  ;;  %v563_v44 = vsel %vm562_vm7, %v823_v41, %v824_v40 }
  0x98   : > { %756 = vmatmul.msk.f32.vlgmr.msra.gmra.mxu1 %vm186_vm0, %v754_v42  ;;  %605 = vmatpush.msrb.mxu3 %v564_v43 }
  0x99   : > { %755 = vmatmul.msk.f32.vlgmr.msra.gmra.mxu0 %vm186_vm0, %v754_v42  ;;  %585 = vmatpush.msrb.mxu2 %v563_v44 }
  0x9a   : > { %765 = vmatmul.msk.f32.vlgmr.msrb.gmra.mxu3 %vm186_vm0, %v763_v45  ;;  %643 = vmatpush.msra.mxu0 %v621_v46 }
  0x9b   : > { %764 = vmatmul.msk.f32.vlgmr.msrb.gmra.mxu2 %vm186_vm0, %v763_v45 }
  0x9c   : > { %v619_v47 = vpop.permute.xlu0 %618  ;;  %v674_v18 = vpop.permute.xlu1 %673 }
  0x9d   : > { %v622_v49 = vsel %vm620_vm8, %v829_v36, %v619_v47 }
  0x9e   : > { %663 = vmatpush.msra.mxu1 %v622_v49 }
  0xa0   : > { %762 = vmatmul.msk.f32.vlgmr.msrb.gmra.mxu1 %vm186_vm0, %v760_v48 }
  0xa1   : > { %761 = vmatmul.msk.f32.vlgmr.msrb.gmra.mxu0 %vm186_vm0, %v760_v48 }
  0xa8   : > { %768 = vmatmul.msk.f32.vlgmr.msra.gmra.mxu1 %vm186_vm0, %v766_v50 }
  0xa9   : > { %767 = vmatmul.msk.f32.vlgmr.msra.gmra.mxu0 %vm186_vm0, %v766_v50 }
 0x105   : > { %v227_v52 = vpop.f32.mrf.mxu1 }
 0x106   : > { %v207_v53 = vpop.f32.mrf.mxu0  ;;  %v271_v59 = vadd.f32 %v270_v51, %v227_v52 }
 0x107   : > { %v251_v60 = vadd.f32 %v250_v54, %v207_v53 }
 0x10c   : > { %v378_v56 = vpop.f32.mrf.mxu3 }
 0x10d   : > { %v323_v55 = vpop.f32.mrf.mxu1 }
 0x10e   : > { %v303_v57 = vpop.f32.mrf.mxu0  ;;  %v358_v58 = vpop.f32.mrf.mxu2  ;;  %v327_v61 = vadd.f32 %v323_v55, %v271_v59 }
 0x10f   : > { %v326_v62 = vadd.f32 %v303_v57, %v251_v60 }
 0x110   : > { %v382_v2 = vadd.f32 %v378_v56, %v327_v61 }
 0x111   : > { %v381_v4 = vadd.f32 %v358_v58, %v326_v62 }
 0x114   : > { %v488_v1 = vpop.f32.mrf.mxu3 }
 0x115   : > { %v433_v63 = vpop.f32.mrf.mxu1 }
 0x116   : > { %v413_v0 = vpop.f32.mrf.mxu0  ;;  %v468_v3 = vpop.f32.mrf.mxu2  ;;  %v437_v5 = vadd.f32 %v433_v63, %v382_v2 }
 0x117   : > { %v436_v6 = vadd.f32 %v413_v0, %v381_v4 }
 0x118   : > { %v492_v8 = vadd.f32 %v488_v1, %v437_v5 }
 0x119   : > { %v491_v10 = vadd.f32 %v468_v3, %v436_v6 }
 0x11d   : > { %v543_v7 = vpop.f32.mrf.mxu1  ;;  %v607_v13 = vpop.f32.mrf.mxu3 }
 0x11e   : > { %v523_v9 = vpop.f32.mrf.mxu0  ;;  %v547_v11 = vadd.f32 %v543_v7, %v492_v8  ;;  %v587_v14 = vpop.f32.mrf.mxu2 }
 0x11f   : > { %v546_v12 = vadd.f32 %v523_v9, %v491_v10 }
 0x120   : > { %v611_v15 = vadd.f32 %v607_v13, %v547_v11 }
 0x121   : > { %v610_v16 = vadd.f32 %v587_v14, %v546_v12 }
 0x125   : > { %v665_v17 = vpop.f32.mrf.mxu1 }
 0x126   : > { %v669_v19 = vadd.f32 %v665_v17, %v611_v15  ;;  %v645_v20 = vpop.f32.mrf.mxu0 }
 0x127   : > { %v668_v21 = vadd.f32 %v645_v20, %v610_v16 }
 0x128   : > { %v677_v22 = vadd.f32 %v674_v18, %v669_v19 }
 0x129   : > { %v676_v23 = vadd.f32 %v674_v18, %v668_v21 }
 0x12a   : > { %679 = vst.msk [vmem:[%s170_s24 + $0x8] sm:$0xff] %vm499_vm6, %v677_v22 }
 0x12b   : > { %678 = vst [vmem:[%s170_s24] sm:$0xff] %v676_v23 }
 0x12c PF: > { %s13_s12 = sadd.s32 1, %s838_s12  }
 0x12d   : > { %p10_p4 = scmp.ge.s32.totalorder %s13_s12, 4  }
 0x12f   :  { %12 = sbr.rel (!%p10_p4) target bundleno = 1 (0x1), region = 70 }

// kernel: multiblock_pallas.11
= control target key start
LH: loop header
LB: loop body
LE: loop exit
PB: predicated region body
PF: predicated region fallthrough
CT: control target
= control target key end

     0   :  { %s950_s12 = smov 0   ;;  %s1069_s0 = inlined_call_operand.vmem [shape: f32[2,4,330], index: 0, kind: input, shape index: {}]   ;;  %s1070_s1 = inlined_call_operand.vmem [shape: f32[9,8,4], index: 1, kind: input, shape index: {}]   ;;  %s1071_s2 = inlined_call_operand.vmem [shape: f32[8,1], index: 2, kind: input, shape index: {}]   ;;  %s1072_s3 = inlined_call_operand.vmem [shape: f32[2,8,216], index: 3, kind: output, shape index: {}]  }
   0x1 LB: > { %s838_s13 = sadd.s32 4294967295, %s919_s12   ;;  %p842_p0 = scmp.ge.s32.totalorder %s919_s12, 1  ;;  %s919_s12 = sphi %s950_s12, %s13_s12  }
   0x2   : > { %p137_p1 = scmp.lt.s32.totalorder %s919_s12, 3 }
   0x4   : > { %p138_p2 = pnand %p842_p0, %p137_p1 }
   0x5   : > { %p161_p3 = scmp.lt.s32.totalorder (!%p138_p2), %s838_s13, 1  ;;  %s921_s18 = smov (!%p138_p2), 125  }
   0x6   : > { %141 = sbr.rel (%p138_p2) target bundleno = 339 (0x153), region = 32  ;;  %s922_s19 = smov (!%p138_p2), 74  }
   0x7   : > { %s923_s20 = smov (!%p138_p2), 122   ;;  %s924_s21 = smov (!%p138_p2), 71  }
   0x8   : > { %s925_s22 = smov (!%p138_p2), 68   ;;  %s926_s23 = smov (!%p138_p2), 20  }
   0x9   : > { %s927_s24 = smov (!%p138_p2), 17   ;;  %s928_s25 = smov (!%p138_p2), 14  }
   0xb   : > { %s1074_s13 = smov (!%p161_p3, %s838_s13), 1  ;;  %vm189_vm0 = vcmask 1043456   ;;  %vm185_vm1 = vcmask 31744   ;;  %v172_v31 = vld [vmem:[%s1070_s1] sm:$0xff]  ;;  %vm183_vm2 = vcmask 1022976   ;;  %vm364_vm3 = vcmask 605184  }
   0xc   : > { %s893_s14 = smul.u32 12, %s1074_s13  ;;  %v846_v34 = vld [vmem:[%s1070_s1 + $0x8] sm:$0xff]  ;;  %v860_v39 = vld [vmem:[%s1070_s1 + $0x18] sm:$0xff]  ;;  %vm434_vm4 = vcmask 580608   ;;  %vm295_vm5 = vcmask 998400   ;;  %v855_v46 = vld [vmem:[%s1070_s1 + $0x10] sm:$0xff] }
   0xd   : > { %vm504_vm6 = vcmask 556032   ;;  %v865_v52 = vld [vmem:[%s1070_s1 + $0x20] sm:$0xff]  ;;  %v870_v53 = vld [vmem:[%s1070_s1 + $0x28] sm:$0xff]  ;;  %v929_v58 = vmov 0   ;;  %vm574_vm7 = vcmask 162816   ;;  %v875_v61 = vld [vmem:[%s1070_s1 + $0x30] sm:$0xff] }
   0xe   : > { %s964_s17 = scalar_lea.vmem %s1069_s0, %s893_s14  ;;  %v766_v57 = vld [vmem:[%s1071_s2] sm:$0xff]  ;;  %911 = vset.pattern.permute.xlu1 %v929_v58  ;;  %912 = vset.pattern.permute.xlu0 %v929_v58  ;;  %vm644_vm8 = vcmask 138240   ;;  %vm714_vm9 = vcmask 113664   ;;  %vm781_vm10 = vcmask 719872  }
   0xf   : > { %v967_v0 = vld [vmem:[%s964_s17] sm:$0xff]  ;;  %v347_v1 = vld [vmem:[%s964_s17 + $0x8] sm:$0xf] }
  0x10   : > { %176 = vst [vmem:[#allocation1] ss:$2 sm:$0xff] %v967_v0  ;;  %v417_v2 = vld [vmem:[%s964_s17 + $0x8] sm:$0xf] }
  0x11   : > { %354 = vst [vmem:[#allocation1 + $0x10] ss:$2 sm:$0xff] %v347_v1  ;;  %v487_v6 = vld [vmem:[%s964_s17 + $0x8] sm:$0xf] }
  0x12   : > { %v557_v10 = vld [vmem:[%s964_s17 + $0x8] sm:$0xf] }
  0x13   : > { %v627_v14 = vld [vmem:[%s964_s17 + $0x8] sm:$0xf] }
  0x14   : > { %v697_v18 = vld [vmem:[%s964_s17 + $0x8] sm:$0xf] }
  0x17   : > { %v177_v3 = vld.sshfl [vmem:[#allocation1] sm:$0xff pattern:$0x75316420]  ;;  %v178_v4 = vld.sshfl [vmem:[#allocation1 + $0x8] sm:$0xff pattern:$0x75316420] }
  0x18   : > { %179 = vrot.lane.b32.xlu0 %v177_v3, %s921_s18  ;;  %234 = vst [vmem:[#allocation1] ss:$2 sm:$0xff] %v967_v0  ;;  %v357_v5 = vld.sshfl [vmem:[#allocation1 + $0x10] sm:$0xff pattern:$0x75316420]  ;;  %v880_v3 = vld [vmem:[%s1070_s1 + $0x38] sm:$0xff] }
  0x19   : > { %424 = vst [vmem:[#allocation1 + $0x10] ss:$2 sm:$0xff] %v417_v2 }
  0x1f   : > { %v974_v7 = vld.sshfl [vmem:[#allocation1] sm:$0xff pattern:$0x75316420]  ;;  %v976_v8 = vld.sshfl [vmem:[#allocation1 + $0x8] sm:$0xff pattern:$0x75316420] }
  0x20   : > { %181 = vrot.lane.b32.xlu0 %v178_v4, %s921_s18  ;;  %288 = vst [vmem:[#allocation1] ss:$2 sm:$0xff] %v967_v0  ;;  %v427_v9 = vld.sshfl [vmem:[#allocation1 + $0x10] sm:$0xff pattern:$0x75316420]  ;;  %851 = vmatpush.msk.msra.mxu2 %vm189_vm0, %v974_v7 }
  0x21   : > { %494 = vst [vmem:[#allocation1 + $0x10] ss:$2 sm:$0xff] %v487_v6  ;;  %853 = vmatpush.msk.msra.mxu3 %vm189_vm0, %v976_v8  ;;  %852 = vmatmul.msk.f32.vlgmr.msra.gmra.mxu2 %vm185_vm1, %v172_v31 }
  0x22   : > { %854 = vmatmul.msk.f32.vlgmr.msra.gmra.mxu3 %vm185_vm1, %v172_v31 }
  0x27   : > { %v289_v11 = vld.sshfl [vmem:[#allocation1] sm:$0xff pattern:$0x75316420]  ;;  %v290_v12 = vld.sshfl [vmem:[#allocation1 + $0x8] sm:$0xff pattern:$0x75316420] }
  0x28   : > { %362 = vrot.lane.b32.xlu0 %v357_v5, %s922_s19  ;;  %291 = vrot.lane.b32.xlu1 %v289_v11, %s923_s20  ;;  %352 = vst [vmem:[#allocation1] ss:$2 sm:$0xff] %v967_v0  ;;  %v497_v13 = vld.sshfl [vmem:[#allocation1 + $0x10] sm:$0xff pattern:$0x75316420] }
  0x29   : > { %564 = vst [vmem:[#allocation1 + $0x10] ss:$2 sm:$0xff] %v557_v10 }
  0x2f   : > { %v355_v15 = vld.sshfl [vmem:[#allocation1] sm:$0xff pattern:$0x75316420]  ;;  %v356_v16 = vld.sshfl [vmem:[#allocation1 + $0x8] sm:$0xff pattern:$0x75316420] }
  0x30   : > { %432 = vrot.lane.b32.xlu0 %v427_v9, %s924_s21  ;;  %293 = vrot.lane.b32.xlu1 %v290_v12, %s923_s20  ;;  %422 = vst [vmem:[#allocation1] ss:$2 sm:$0xff] %v967_v0  ;;  %v567_v17 = vld.sshfl [vmem:[#allocation1 + $0x10] sm:$0xff pattern:$0x75316420]  ;;  %v885_v9 = vld [vmem:[%s1070_s1 + $0x40] sm:$0xff] }
  0x31   : > { %358 = vrot.lane.b32.xlu2 %v355_v15, %s922_s19  ;;  %634 = vst [vmem:[#allocation1 + $0x10] ss:$2 sm:$0xff] %v627_v14 }
  0x37   : > { %v426_v19 = vld.sshfl [vmem:[#allocation1 + $0x8] sm:$0xff pattern:$0x75316420]  ;;  %v425_v20 = vld.sshfl [vmem:[#allocation1] sm:$0xff pattern:$0x75316420] }
  0x38   : > { %502 = vrot.lane.b32.xlu0 %v497_v13, %s925_s22  ;;  %428 = vrot.lane.b32.xlu1 %v425_v20, %s924_s21  ;;  %492 = vst [vmem:[#allocation1] ss:$2 sm:$0xff] %v967_v0  ;;  %v637_v21 = vld.sshfl [vmem:[#allocation1 + $0x10] sm:$0xff pattern:$0x75316420] }
  0x39   : > { %360 = vrot.lane.b32.xlu2 %v356_v16, %s922_s19  ;;  %704 = vst [vmem:[#allocation1 + $0x10] ss:$2 sm:$0xff] %v697_v18 }
  0x3f   : > { %v495_v22 = vld.sshfl [vmem:[#allocation1] sm:$0xff pattern:$0x75316420]  ;;  %v496_v23 = vld.sshfl [vmem:[#allocation1 + $0x8] sm:$0xff pattern:$0x75316420] }
  0x40   : > { %572 = vrot.lane.b32.xlu0 %v567_v17, %s926_s23  ;;  %498 = vrot.lane.b32.xlu1 %v495_v22, %s925_s22  ;;  %562 = vst [vmem:[#allocation1] ss:$2 sm:$0xff] %v967_v0  ;;  %v707_v26 = vld.sshfl [vmem:[#allocation1 + $0x10] sm:$0xff pattern:$0x75316420] }
  0x41   : > { %430 = vrot.lane.b32.xlu2 %v426_v19, %s924_s21  ;;  %s892_s21 = sshll.u32 %s1074_s13, 4 }
  0x47   : > { %v565_v24 = vld.sshfl [vmem:[#allocation1] sm:$0xff pattern:$0x75316420]  ;;  %v566_v25 = vld.sshfl [vmem:[#allocation1 + $0x8] sm:$0xff pattern:$0x75316420] }
  0x48   : > { %642 = vrot.lane.b32.xlu0 %v637_v21, %s927_s24  ;;  %568 = vrot.lane.b32.xlu1 %v565_v24, %s926_s23  ;;  %632 = vst [vmem:[#allocation1] ss:$2 sm:$0xff] %v967_v0 }
  0x49   : > { %500 = vrot.lane.b32.xlu2 %v496_v23, %s925_s22 }
  0x4f   : > { %v635_v27 = vld.sshfl [vmem:[#allocation1] sm:$0xff pattern:$0x75316420]  ;;  %v636_v28 = vld.sshfl [vmem:[#allocation1 + $0x8] sm:$0xff pattern:$0x75316420] }
  0x50   : > { %712 = vrot.lane.b32.xlu0 %v707_v26, %s928_s25  ;;  %638 = vrot.lane.b32.xlu1 %v635_v27, %s927_s24  ;;  %702 = vst [vmem:[#allocation1] ss:$2 sm:$0xff] %v967_v0 }
  0x51   : > { %570 = vrot.lane.b32.xlu2 %v566_v25, %s926_s23 }
  0x57   : > { %v705_v29 = vld.sshfl [vmem:[#allocation1] sm:$0xff pattern:$0x75316420]  ;;  %v706_v30 = vld.sshfl [vmem:[#allocation1 + $0x8] sm:$0xff pattern:$0x75316420] }
  0x58   : > { %708 = vrot.lane.b32.xlu1 %v705_v29, %s928_s25 }
  0x59   : > { %640 = vrot.lane.b32.xlu2 %v636_v28, %s927_s24  ;;  %s170_s24 = scalar_lea.vmem %s1072_s3, %s892_s21 }
  0x60   : > { %769 = vperm.xlu1 %911, %v766_v57  }
  0x61   : > { %710 = vrot.lane.b32.xlu2 %v706_v30, %s928_s25 }
  0x8a   : > { %v180_v32 = vpop.permute.xlu0 %179 }
  0x8b   : > { %v359_v33 = vpop.permute.xlu2 %358 }
  0x92   : > { %v182_v35 = vpop.permute.xlu0 %181 }
  0x93   : > { %v184_v36 = vsel %vm183_vm2, %v180_v32, %v182_v35  ;;  %v361_v37 = vpop.permute.xlu2 %360  ;;  %849 = vmatpush.msk.msra.mxu1 %vm189_vm0, %v182_v35 }
  0x94   : > { %847 = vmatpush.msk.msra.mxu0 %vm189_vm0, %v184_v36  ;;  %v365_v38 = vsel %vm364_vm3, %v359_v33, %v361_v37  ;;  %850 = vmatmul.msk.f32.vlgmr.msra.gmra.mxu1 %vm185_vm1, %v846_v34 }
  0x95   : > { %861 = vmatpush.msk.msrb.mxu2 %vm189_vm0, %v365_v38  ;;  %848 = vmatmul.msk.f32.vlgmr.msra.gmra.mxu0 %vm185_vm1, %v846_v34 }
  0x96   : > { %862 = vmatmul.msk.f32.vlgmr.msrb.gmra.mxu2 %vm185_vm1, %v860_v39 }
  0x9a   : > { %v363_v40 = vpop.permute.xlu0 %362  ;;  %v292_v41 = vpop.permute.xlu1 %291 }
  0x9b   : > { %v431_v42 = vpop.permute.xlu2 %430  ;;  %v366_v43 = vsel %vm364_vm3, %v361_v37, %v363_v40 }
  0x9c   : > { %863 = vmatpush.msk.msrb.mxu3 %vm189_vm0, %v366_v43 }
  0x9d   : > { %864 = vmatmul.msk.f32.vlgmr.msrb.gmra.mxu3 %vm185_vm1, %v860_v39 }
  0xa2   : > { %v433_v44 = vpop.permute.xlu0 %432  ;;  %v294_v45 = vpop.permute.xlu1 %293 }
  0xa3   : > { %v436_v47 = vsel %vm434_vm4, %v431_v42, %v433_v44  ;;  %858 = vmatpush.msk.msrb.mxu1 %vm189_vm0, %v294_v45  ;;  %v296_v48 = vsel %vm295_vm5, %v292_v41, %v294_v45  ;;  %v501_v49 = vpop.permute.xlu2 %500 }
  0xa4   : > { %856 = vmatpush.msk.msrb.mxu0 %vm189_vm0, %v296_v48  ;;  %859 = vmatmul.msk.f32.vlgmr.msrb.gmra.mxu1 %vm185_vm1, %v855_v46  ;;  %v261_v19 = vpop.f32.mrf.mxu2 }
  0xa5   : > { %868 = vmatpush.msk.msra.mxu1 %vm189_vm0, %v436_v47  ;;  %857 = vmatmul.msk.f32.vlgmr.msrb.gmra.mxu0 %vm185_vm1, %v855_v46  ;;  %v281_v15 = vpop.f32.mrf.mxu3 }
  0xaa   : > { %v503_v50 = vpop.permute.xlu0 %502  ;;  %v429_v51 = vpop.permute.xlu1 %428 }
  0xab   : > { %v435_v54 = vsel %vm434_vm4, %v429_v51, %v431_v42  ;;  %v506_v55 = vsel %vm504_vm6, %v501_v49, %v503_v50  ;;  %v571_v56 = vpop.permute.xlu2 %570 }
  0xac   : > { %866 = vmatpush.msk.msra.mxu0 %vm189_vm0, %v435_v54  ;;  %873 = vmatpush.msk.msra.mxu3 %vm189_vm0, %v506_v55 }
  0xad   : > { %869 = vmatmul.msk.f32.vlgmr.msra.gmra.mxu1 %vm185_vm1, %v865_v52  ;;  %874 = vmatmul.msk.f32.vlgmr.msra.gmra.mxu3 %vm185_vm1, %v870_v53 }
  0xae   : > { %867 = vmatmul.msk.f32.vlgmr.msra.gmra.mxu0 %vm185_vm1, %v865_v52 }
  0xb2   : > { %v573_v59 = vpop.permute.xlu0 %572  ;;  %v499_v60 = vpop.permute.xlu1 %498 }
  0xb3   : > { %v505_v62 = vsel %vm504_vm6, %v499_v60, %v501_v49  ;;  %v576_v63 = vsel %vm574_vm7, %v571_v56, %v573_v59  ;;  %v641_v0 = vpop.permute.xlu2 %640 }
  0xb4   : > { %871 = vmatpush.msk.msra.mxu2 %vm189_vm0, %v505_v62  ;;  %878 = vmatpush.msk.msrb.mxu1 %vm189_vm0, %v576_v63 }
  0xb5   : > { %872 = vmatmul.msk.f32.vlgmr.msra.gmra.mxu2 %vm185_vm1, %v870_v53  ;;  %879 = vmatmul.msk.f32.vlgmr.msrb.gmra.mxu1 %vm185_vm1, %v875_v61 }
  0xba   : > { %v643_v1 = vpop.permute.xlu0 %642  ;;  %v569_v2 = vpop.permute.xlu1 %568 }
  0xbb   : > { %v575_v4 = vsel %vm574_vm7, %v569_v2, %v571_v56  ;;  %v646_v5 = vsel %vm644_vm8, %v641_v0, %v643_v1  ;;  %v711_v6 = vpop.permute.xlu2 %710 }
  0xbc   : > { %876 = vmatpush.msk.msrb.mxu0 %vm189_vm0, %v575_v4  ;;  %883 = vmatpush.msk.msrb.mxu3 %vm189_vm0, %v646_v5 }
  0xbd   : > { %884 = vmatmul.msk.f32.vlgmr.msrb.gmra.mxu3 %vm185_vm1, %v880_v3  ;;  %877 = vmatmul.msk.f32.vlgmr.msrb.gmra.mxu0 %vm185_vm1, %v875_v61 }
  0xc2   : > { %v713_v7 = vpop.permute.xlu0 %712  ;;  %v639_v8 = vpop.permute.xlu1 %638 }
  0xc3   : > { %v645_v10 = vsel %vm644_vm8, %v639_v8, %v641_v0  ;;  %v716_v11 = vsel %vm714_vm9, %v711_v6, %v713_v7 }
  0xc4   : > { %881 = vmatpush.msk.msrb.mxu2 %vm189_vm0, %v645_v10  ;;  %888 = vmatpush.msk.msra.mxu1 %vm189_vm0, %v716_v11 }
  0xc5   : > { %882 = vmatmul.msk.f32.vlgmr.msrb.gmra.mxu2 %vm185_vm1, %v880_v3  ;;  %889 = vmatmul.msk.f32.vlgmr.msra.gmra.mxu1 %vm185_vm1, %v885_v9 }
  0xca   : > { %v709_v12 = vpop.permute.xlu1 %708 }
  0xcb   : > { %v715_v13 = vsel %vm714_vm9, %v709_v12, %v711_v6 }
  0xcc   : > { %886 = vmatpush.msk.msra.mxu0 %vm189_vm0, %v715_v13 }
  0xcd   : > { %887 = vmatmul.msk.f32.vlgmr.msra.gmra.mxu0 %vm185_vm1, %v885_v9 }
  0xd2   : > { %v770_v39 = vpop.permute.xlu1 %769 }
 0x111   : > { %v231_v14 = vpop.f32.mrf.mxu1 }
 0x112   : > { %v211_v16 = vpop.f32.mrf.mxu0  ;;  %v282_v18 = vadd.f32 %v281_v15, %v231_v14 }
 0x113   : > { %v262_v25 = vadd.f32 %v261_v19, %v211_v16 }
 0x119   : > { %v391_v27 = vpop.f32.mrf.mxu2 }
 0x120   : > { %v411_v20 = vpop.f32.mrf.mxu3 }
 0x121   : > { %v341_v17 = vpop.f32.mrf.mxu1 }
 0x122   : > { %v345_v21 = vadd.f32 %v341_v17, %v282_v18  ;;  %v321_v22 = vpop.f32.mrf.mxu0 }
 0x123   : > { %v344_v29 = vadd.f32 %v321_v22, %v262_v25 }
 0x124   : > { %v415_v24 = vadd.f32 %v411_v20, %v345_v21 }
 0x125   : > { %v414_v33 = vadd.f32 %v391_v27, %v344_v29 }
 0x12a   : > { %v481_v23 = vpop.f32.mrf.mxu1 }
 0x12b   : > { %v485_v26 = vadd.f32 %v481_v23, %v415_v24  ;;  %v461_v30 = vpop.f32.mrf.mxu0 }
 0x12c   : > { %v484_v37 = vadd.f32 %v461_v30, %v414_v33 }
 0x130   : > { %v551_v28 = vpop.f32.mrf.mxu3 }
 0x131   : > { %v555_v32 = vadd.f32 %v551_v28, %v485_v26 }
 0x132   : > { %v621_v31 = vpop.f32.mrf.mxu1 }
 0x133   : > { %v625_v34 = vadd.f32 %v621_v31, %v555_v32 }
 0x138   : > { %v531_v35 = vpop.f32.mrf.mxu2 }
 0x139   : > { %v554_v42 = vadd.f32 %v531_v35, %v484_v37 }
 0x13a   : > { %v601_v40 = vpop.f32.mrf.mxu0 }
 0x13b   : > { %v624_v45 = vadd.f32 %v601_v40, %v554_v42 }
 0x140   : > { %v691_v36 = vpop.f32.mrf.mxu3 }
 0x141   : > { %v695_v38 = vadd.f32 %v691_v36, %v625_v34 }
 0x142   : > { %v761_v41 = vpop.f32.mrf.mxu1 }
 0x143   : > { %v765_v43 = vadd.f32 %v761_v41, %v695_v38 }
 0x145   : > { %v773_v44 = vadd.f32 %v770_v39, %v765_v43 }
 0x147   : > { %vm775_vm11 = vcmp.ge.f32.partialorder %v773_v44, 0.0  ;;  %v777_v46 = vmul.f32 0.01, %v773_v44 }
 0x148   : > { %v671_v47 = vpop.f32.mrf.mxu2 }
 0x149   : > { %v779_v48 = vsel %vm775_vm11, %v773_v44, %v777_v46  ;;  %v694_v49 = vadd.f32 %v671_v47, %v624_v45 }
 0x14a   : > { %782 = vst.msk [vmem:[%s170_s24 + $0x8] sm:$0xff] %vm781_vm10, %v779_v48  ;;  %v741_v50 = vpop.f32.mrf.mxu0 }
 0x14b   : > { %v764_v51 = vadd.f32 %v741_v50, %v694_v49 }
 0x14d   : > { %v772_v52 = vadd.f32 %v770_v39, %v764_v51 }
 0x14f   : > { %vm774_vm12 = vcmp.ge.f32.partialorder %v772_v52, 0.0  ;;  %v776_v53 = vmul.f32 0.01, %v772_v52 }
 0x151   : > { %v778_v54 = vsel %vm774_vm12, %v772_v52, %v776_v53 }
 0x152   : > { %780 = vst [vmem:[%s170_s24] sm:$0xff] %v778_v54 }
 0x153 PF: > { %s13_s12 = sadd.s32 1, %s919_s12  }
 0x154   : > { %p10_p4 = scmp.ge.s32.totalorder %s13_s12, 4  }
 0x156   :  { %12 = sbr.rel (!%p10_p4) target bundleno = 1 (0x1), region = 76 }

// kernel: multiblock_pallas.12
= control target key start
LH: loop header
LB: loop body
LE: loop exit
PB: predicated region body
PF: predicated region fallthrough
CT: control target
= control target key end

     0   :  { %s631_s12 = smov 0   ;;  %s691_s0 = inlined_call_operand.vmem [shape: f32[2,8,202], index: 0, kind: input, shape index: {}]   ;;  %s692_s1 = inlined_call_operand.vmem [shape: f32[9,8,8], index: 1, kind: input, shape index: {}]   ;;  %s693_s2 = inlined_call_operand.vmem [shape: f32[8,1], index: 2, kind: input, shape index: {}]   ;;  %s694_s3 = inlined_call_operand.vmem [shape: f32[2,8,112], index: 3, kind: output, shape index: {}]  }
   0x1 LB: > { %s517_s13 = sadd.s32 4294967295, %s600_s12   ;;  %p521_p0 = scmp.ge.s32.totalorder %s600_s12, 1  ;;  %s600_s12 = sphi %s631_s12, %s13_s12  }
   0x2   : > { %p137_p1 = scmp.lt.s32.totalorder %s600_s12, 3 }
   0x4   : > { %p138_p2 = pnand %p521_p0, %p137_p1 }
   0x5   : > { %p160_p3 = scmp.lt.s32.totalorder (!%p138_p2), %s517_s13, 1  ;;  %s602_s18 = smov (!%p138_p2), 122  }
   0x6   : > { %141 = sbr.rel (%p138_p2) target bundleno = 289 (0x121), region = 32  ;;  %s603_s19 = smov (!%p138_p2), 125  }
   0x7   : > { %s604_s20 = smov (!%p138_p2), 83   ;;  %s605_s21 = smov (!%p138_p2), 86  }
   0x8   : > { %s606_s22 = smov (!%p138_p2), 44   ;;  %s607_s23 = smov (!%p138_p2), 41  }
   0x9   : > { %s608_s24 = smov (!%p138_p2), 80   ;;  %s609_s25 = smov (!%p138_p2), 38  }
   0xb   : > { %s696_s13 = smov (!%p160_p3, %s517_s13), 1  ;;  %vm177_vm0 = vcmask 64512   ;;  %v170_v3 = vld [vmem:[%s692_s1] sm:$0xff]  ;;  %v610_v5 = vmov 0   ;;  %vm296_vm1 = vcmask 678912   ;;  %v528_v10 = vld [vmem:[%s692_s1 + $0x10] sm:$0xff] }
   0xc   : > { %s544_s14 = sshll.u32 %s696_s13, 4  ;;  %v455_v4 = vld [vmem:[%s693_s2] sm:$0xff]  ;;  %592 = vset.pattern.permute.xlu2 %v610_v5  ;;  %593 = vset.pattern.permute.xlu0 %v610_v5  ;;  %v525_v13 = vld [vmem:[%s692_s1 + $0x8] sm:$0xff]  ;;  %vm263_vm2 = vcmask 703488   ;;  %vm362_vm3 = vcmask 359424   ;;  %vm395_vm4 = vcmask 334848  }
   0xd   : > { %s164_s17 = scalar_lea.vmem %s691_s0, %s544_s14  ;;  %v532_v19 = vld [vmem:[%s692_s1 + $0x20] sm:$0xff]  ;;  %v530_v24 = vld [vmem:[%s692_s1 + $0x18] sm:$0xff]  ;;  %v536_v25 = vld [vmem:[%s692_s1 + $0x30] sm:$0xff]  ;;  %vm329_vm5 = vcmask 654336   ;;  %vm428_vm6 = vcmask 310272   ;;  %vm462_vm7 = vcmask 916480  }
   0xe   : > { %v169_v0 = vld [vmem:[%s164_s17] sm:$0xff]  ;;  %v254_v1 = vld [vmem:[%s164_s17 + $0x8] sm:$0xff]  ;;  %v538_v35 = vld [vmem:[%s692_s1 + $0x38] sm:$0xff] }
   0xf   : > { %226 = vrot.lane.b32.xlu0 %v169_v0, %s602_s18  ;;  %174 = vrot.lane.b32.xlu1 %v169_v0, %s603_s19  ;;  %v562_v2 = vpack.i.bf16 %v254_v1, %v169_v0  ;;  %v534_v36 = vld [vmem:[%s692_s1 + $0x28] sm:$0xff]  ;;  %v540_v39 = vld [vmem:[%s692_s1 + $0x40] sm:$0xff] }
  0x10   : > { %219 = vmatpush.msra.mxu1 %v169_v0 }
  0x11   : > { %573 = vrot.lane.b32.xlu2 %v562_v2, %s604_s20  ;;  %527 = vmatmul.msk.f32.vlgmr.msra.gmra.mxu1 %vm177_vm0, %v170_v3 }
  0x17   : > { %563 = vrot.lane.b32.xlu0 %v562_v2, %s605_s21  ;;  %568 = vrot.lane.b32.xlu1 %v562_v2, %s606_s22  ;;  %s524_s21 = sshll.u32 %s696_s13, 3 }
  0x19   : > { %578 = vrot.lane.b32.xlu2 %v562_v2, %s607_s23 }
  0x1f   : > { %583 = vrot.lane.b32.xlu0 %v562_v2, %s608_s24  ;;  %588 = vrot.lane.b32.xlu1 %v562_v2, %s609_s25  ;;  %s168_s24 = scalar_lea.vmem %s694_s3, %s524_s21 }
  0x21   : > { %458 = vperm.xlu2 %592, %v455_v4  }
  0x6b   : > { %v574_v6 = vpop.permute.xlu2 %573 }
  0x6c   : > { %v576_v7 = vunpack.i.h.bf16 %v574_v6  ;;  %v575_v8 = vunpack.i.l.bf16 %v574_v6 }
  0x6e   : > { %v297_v9 = vsel %vm296_vm1, %v575_v8, %v576_v7 }
  0x73   : > { %v579_v14 = vpop.permute.xlu2 %578 }
  0x74   : > { %v581_v15 = vunpack.i.h.bf16 %v579_v14  ;;  %v580_v16 = vunpack.i.l.bf16 %v579_v14 }
  0x76   : > { %v396_v28 = vsel %vm395_vm4, %v580_v16, %v581_v15 }
  0x7b   : > { %v459_v56 = vpop.permute.xlu2 %458 }
  0x81   : > { %v227_v11 = vpop.permute.xlu0 %226  ;;  %v175_v12 = vpop.permute.xlu1 %174 }
  0x82   : > { %247 = vmatpush.msra.mxu2 %v227_v11  ;;  %196 = vmatpush.msra.mxu0 %v175_v12 }
  0x83   : > { %529 = vmatmul.msk.f32.vlgmr.msra.gmra.mxu2 %vm177_vm0, %v528_v10  ;;  %526 = vmatmul.msk.f32.vlgmr.msra.gmra.mxu0 %vm177_vm0, %v525_v13 }
  0x84   : > { %317 = vmatpush.msrb.mxu0 %v297_v9 }
  0x89   : > { %v564_v17 = vpop.permute.xlu0 %563  ;;  %v569_v18 = vpop.permute.xlu1 %568 }
  0x8a   : > { %v566_v20 = vunpack.i.h.bf16 %v564_v17  ;;  %v565_v21 = vunpack.i.l.bf16 %v564_v17  ;;  %v571_v22 = vunpack.i.h.bf16 %v569_v18  ;;  %v570_v23 = vunpack.i.l.bf16 %v569_v18 }
  0x8b   : > { %533 = vmatmul.msk.f32.vlgmr.msrb.gmra.mxu0 %vm177_vm0, %v532_v19 }
  0x8c   : > { %v264_v26 = vsel %vm263_vm2, %v565_v21, %v566_v20  ;;  %v363_v27 = vsel %vm362_vm3, %v570_v23, %v571_v22 }
  0x8d   : > { %284 = vmatpush.msra.mxu3 %v264_v26  ;;  %383 = vmatpush.msrb.mxu2 %v363_v27 }
  0x8e   : > { %531 = vmatmul.msk.f32.vlgmr.msra.gmra.mxu3 %vm177_vm0, %v530_v24  ;;  %537 = vmatmul.msk.f32.vlgmr.msrb.gmra.mxu2 %vm177_vm0, %v536_v25  ;;  %v221_v41 = vpop.f32.mrf.mxu1 }
  0x8f   : > { %416 = vmatpush.msrb.mxu3 %v396_v28 }
  0x91   : > { %v584_v29 = vpop.permute.xlu0 %583  ;;  %v589_v30 = vpop.permute.xlu1 %588 }
  0x92   : > { %v586_v31 = vunpack.i.h.bf16 %v584_v29  ;;  %v585_v32 = vunpack.i.l.bf16 %v584_v29  ;;  %v591_v33 = vunpack.i.h.bf16 %v589_v30  ;;  %v590_v34 = vunpack.i.l.bf16 %v589_v30 }
  0x94   : > { %v330_v37 = vsel %vm329_vm5, %v585_v32, %v586_v31  ;;  %v429_v38 = vsel %vm428_vm6, %v590_v34, %v591_v33 }
  0x95   : > { %350 = vmatpush.msrb.mxu1 %v330_v37  ;;  %449 = vmatpush.msra.mxu0 %v429_v38 }
  0x96   : > { %539 = vmatmul.msk.f32.vlgmr.msrb.gmra.mxu3 %vm177_vm0, %v538_v35  ;;  %535 = vmatmul.msk.f32.vlgmr.msrb.gmra.mxu1 %vm177_vm0, %v534_v36 }
  0x97   : > { %541 = vmatmul.msk.f32.vlgmr.msra.gmra.mxu0 %vm177_vm0, %v540_v39 }
 0x100   : > { %v198_v40 = vpop.f32.mrf.mxu0 }
 0x101   : > { %v222_v42 = vadd.f32 %v221_v41, %v198_v40 }
 0x106   : > { %v249_v43 = vpop.f32.mrf.mxu2 }
 0x107   : > { %v252_v45 = vadd.f32 %v249_v43, %v222_v42 }
 0x108   : > { %v319_v44 = vpop.f32.mrf.mxu0 }
 0x111   : > { %v286_v46 = vpop.f32.mrf.mxu3  ;;  %v385_v50 = vpop.f32.mrf.mxu2 }
 0x112   : > { %v289_v47 = vadd.f32 %v286_v46, %v252_v45 }
 0x113   : > { %v352_v48 = vpop.f32.mrf.mxu1 }
 0x114   : > { %v322_v49 = vadd.f32 %v319_v44, %v289_v47  ;;  %v451_v54 = vpop.f32.mrf.mxu0 }
 0x116   : > { %v355_v51 = vadd.f32 %v352_v48, %v322_v49 }
 0x118   : > { %v388_v52 = vadd.f32 %v385_v50, %v355_v51 }
 0x119   : > { %v418_v53 = vpop.f32.mrf.mxu3 }
 0x11a   : > { %v421_v55 = vadd.f32 %v418_v53, %v388_v52 }
 0x11c   : > { %v454_v57 = vadd.f32 %v451_v54, %v421_v55 }
 0x11e   : > { %v461_v58 = vadd.f32 %v459_v56, %v454_v57 }
 0x120   : > { %463 = vst.msk [vmem:[%s168_s24] sm:$0xff] %vm462_vm7, %v461_v58 }
 0x121 PF: > { %s13_s12 = sadd.s32 1, %s600_s12  }
 0x122   : > { %p10_p4 = scmp.ge.s32.totalorder %s13_s12, 4  }
 0x124   :  { %12 = sbr.rel (!%p10_p4) target bundleno = 1 (0x1), region = 70 }

// kernel: multiblock_pallas.13
= control target key start
LH: loop header
LB: loop body
LE: loop exit
PB: predicated region body
PF: predicated region fallthrough
CT: control target
= control target key end

     0   :  { %s739_s24 = smov 0   ;;  %s792_s0 = inlined_call_operand.vmem [shape: f32[2,8,256], index: 0, kind: input, shape index: {}]   ;;  %s793_s1 = inlined_call_operand.vmem [shape: f32[2,8,256], index: 1, kind: input, shape index: {}]   ;;  %s794_s2 = inlined_call_operand.vmem [shape: f32[2,8,256], index: 2, kind: input, shape index: {}]   ;;  %s795_s3 = inlined_call_operand.vmem [shape: f32[2,4,256], index: 3, kind: input, shape index: {}]   ;;  %s796_s4 = inlined_call_operand.vmem [shape: f32[3,8,8], index: 4, kind: input, shape index: {}]   ;;  %s797_s5 = inlined_call_operand.vmem [shape: f32[8,4], index: 5, kind: input, shape index: {}]   ;;  %s798_s6 = inlined_call_operand.vmem [shape: f32[8,1], index: 6, kind: input, shape index: {}]   ;;  %s799_s7 = inlined_call_operand.vmem [shape: f32[2,8,256], index: 7, kind: output, shape index: {}]  }
   0x1 LB: > { %s646_s25 = sadd.s32 4294967295, %s696_s24   ;;  %p650_p0 = scmp.ge.s32.totalorder %s696_s24, 1  ;;  %s696_s24 = sphi %s739_s24, %s17_s24  }
   0x2   : > { %p267_p1 = scmp.lt.s32.totalorder %s696_s24, 3 }
   0x4   : > { %p268_p2 = pnand %p650_p0, %p267_p1 }
   0x5   : > { %p314_p3 = scmp.lt.s32.totalorder (!%p268_p2), %s646_s25, 1 }
   0x6   : > { %271 = sbr.rel (%p268_p2) target bundleno = 166 (0xa6), region = 48 }
   0xb   : > { %v539_v0 = vld [vmem:[%s798_s6] sm:$0xff]  ;;  %s801_s25 = smov (!%p314_p3, %s646_s25), 1  ;;  %v698_v1 = vmov 0   ;;  %vm346_vm0 = vcmask 64512   ;;  %v661_v8 = vld [vmem:[%s796_s4 + $0x8] sm:$0xff]  ;;  %vm492_vm1 = vcmask 1043456  }
   0xc   : > { %689 = vset.pattern.permute.xlu0 %v698_v1  ;;  %s750_s28 = sshll.u32 %s801_s25, 4  ;;  %s678_s29 = sshll.u32 %s801_s25, 3  ;;  %v339_v2 = vld [vmem:[%s796_s4] sm:$0xff]  ;;  %vm488_vm2 = vcmask 31744   ;;  %v666_v14 = vld [vmem:[%s796_s4 + $0x10] sm:$0xff] }
   0xd   : > { %542 = vperm.xlu0 %689, %v539_v0   ;;  %s318_s9 = scalar_lea.vmem %s792_s0, %s750_s28  ;;  %s333_s12 = scalar_lea.vmem %s795_s3, %s678_s29  ;;  %v482_v11 = vld [vmem:[%s797_s5] sm:$0xff] }
   0xe   : > { %v340_v3 = vld [vmem:[%s318_s9] sm:$0xff]  ;;  %v341_v5 = vld [vmem:[%s318_s9 + $0x8] sm:$0xff]  ;;  %s323_s17 = scalar_lea.vmem %s793_s1, %s750_s28  ;;  %s328_s20 = scalar_lea.vmem %s794_s2, %s750_s28 }
   0xf   : > { %v483_v4 = vld [vmem:[%s333_s12] sm:$0xff]  ;;  %408 = vmatpush.msra.mxu2 %v340_v3  ;;  %428 = vmatpush.msra.mxu3 %v341_v5  ;;  %v345_v7 = vld [vmem:[%s323_s17 + $0x8] sm:$0xff]  ;;  %s338_s8 = scalar_lea.vmem %s799_s7, %s750_s28 }
  0x10   : > { %485 = vst [vmem:[#allocation1] ss:$2 sm:$0xff] %v483_v4  ;;  %v344_v6 = vld [vmem:[%s323_s17] sm:$0xff]  ;;  %664 = vmatmul.msk.f32.vlgmr.msra.gmra.mxu2 %vm346_vm0, %v339_v2  ;;  %665 = vmatmul.msk.f32.vlgmr.msra.gmra.mxu3 %vm346_vm0, %v339_v2  ;;  %v436_v10 = vld [vmem:[%s328_s20 + $0x8] sm:$0xff] }
  0x11   : > { %v435_v9 = vld [vmem:[%s328_s20] sm:$0xff]  ;;  %365 = vmatpush.msra.mxu0 %v344_v6  ;;  %385 = vmatpush.msra.mxu1 %v345_v7 }
  0x12   : > { %662 = vmatmul.msk.f32.vlgmr.msra.gmra.mxu0 %vm346_vm0, %v661_v8  ;;  %663 = vmatmul.msk.f32.vlgmr.msra.gmra.mxu1 %vm346_vm0, %v661_v8 }
  0x13   : > { %455 = vmatpush.msrb.mxu0 %v435_v9  ;;  %475 = vmatpush.msrb.mxu1 %v436_v10 }
  0x17   : > { %v486_v12 = vld.sshfl [vmem:[#allocation1] sm:$0xff pattern:$0x75316420]  ;;  %v487_v13 = vld.sshfl [vmem:[#allocation1 + $0x8] sm:$0xff pattern:$0x75316420] }
  0x18   : > { %669 = vmatpush.msk.msrb.mxu2 %vm492_vm1, %v486_v12  ;;  %671 = vmatpush.msk.msrb.mxu3 %vm492_vm1, %v487_v13 }
  0x19   : > { %670 = vmatmul.msk.f32.vlgmr.msrb.gmra.mxu2 %vm488_vm2, %v482_v11  ;;  %672 = vmatmul.msk.f32.vlgmr.msrb.gmra.mxu3 %vm488_vm2, %v482_v11 }
  0x1a   : > { %667 = vmatmul.msk.f32.vlgmr.msrb.gmra.mxu0 %vm346_vm0, %v666_v14  ;;  %668 = vmatmul.msk.f32.vlgmr.msrb.gmra.mxu1 %vm346_vm0, %v666_v14 }
  0x7f   : > { %v543_v25 = vpop.permute.xlu0 %542 }
  0x8f   : > { %v367_v15 = vpop.f32.mrf.mxu0  ;;  %v387_v16 = vpop.f32.mrf.mxu1 }
  0x93   : > { %v410_v17 = vpop.f32.mrf.mxu2  ;;  %v430_v18 = vpop.f32.mrf.mxu3 }
  0x94   : > { %v411_v19 = vadd.f32 %v410_v17, %v367_v15  ;;  %v431_v20 = vadd.f32 %v430_v18, %v387_v16 }
  0x97   : > { %v457_v21 = vpop.f32.mrf.mxu0  ;;  %v477_v22 = vpop.f32.mrf.mxu1 }
  0x98   : > { %v480_v23 = vadd.f32 %v457_v21, %v411_v19  ;;  %v481_v24 = vadd.f32 %v477_v22, %v431_v20 }
  0x9c   : > { %v514_v26 = vpop.f32.mrf.mxu2  ;;  %v534_v27 = vpop.f32.mrf.mxu3 }
  0x9d   : > { %v537_v28 = vadd.f32 %v514_v26, %v480_v23  ;;  %v538_v29 = vadd.f32 %v534_v27, %v481_v24 }
  0x9f   : > { %v545_v30 = vadd.f32 %v543_v25, %v537_v28  ;;  %v546_v31 = vadd.f32 %v543_v25, %v538_v29 }
  0xa1   : > { %vm547_vm3 = vcmp.ge.f32.partialorder %v545_v30, 0.0  ;;  %vm548_vm4 = vcmp.ge.f32.partialorder %v546_v31, 0.0  ;;  %v549_v32 = vmul.f32 0.01, %v545_v30  ;;  %v550_v33 = vmul.f32 0.01, %v546_v31 }
  0xa3   : > { %v551_v34 = vsel %vm547_vm3, %v545_v30, %v549_v32  ;;  %v552_v35 = vsel %vm548_vm4, %v546_v31, %v550_v33 }
  0xa4   : > { %553 = vst [vmem:[%s338_s8] sm:$0xff] %v551_v34 }
  0xa5   : > { %554 = vst [vmem:[%s338_s8 + $0x8] sm:$0xff] %v552_v35 }
  0xa6 PF: > { %s17_s24 = sadd.s32 1, %s696_s24  }
  0xa7   : > { %p14_p4 = scmp.ge.s32.totalorder %s17_s24, 4  }
  0xa9   :  { %16 = sbr.rel (!%p14_p4) target bundleno = 1 (0x1), region = 89 }

</bundles_post_ra>
